<compile_context>
chip_gen: v7x
topology: tpu7x:2x2x1
jax: 0.10.0
libtpu: 0.0.40
codegen_flags: <defaults>
</compile_context>

<pallas_src>
import jax
import jax.numpy as jnp
from jax.experimental import pallas as pl
from jax.experimental.pallas import tpu as pltpu

HIDDEN = 200          # "nn" in the PyTorch module
H_PAD = 256           # hidden padded to 2 lane tiles
NUM_FEATURES = 16     # dataset.num_features stand-in (synthetic)
F_PAD = 128           # features padded to 1 lane tile
NUM_CLASSES = 2
C_PAD = 128           # fc2 output padded to 1 lane tile
NP = 32               # node slots per graph (PTC nmax=109 -> use 128 in production)
GPB = 8               # graphs per grid step  -> node tile of 256 rows, output block [8,128]
TILE_N = GPB * NP     # 256
BIG = 1e30
NEG_INF = -BIG
BN_EPS = 1e-5


# ----------------------------------------------------------------------------- kernel
def gin_net_kernel(eps_ref,      # SMEM (2,) f32 : (1+eps1, 1+eps2)
                   a_ref,        # [TILE_N, TILE_N] f32 : block-diagonal adjacency block
                   x_ref,        # [TILE_N, F_PAD]  f32 : node features (zero-padded)
                   w1a_ref,      # [F_PAD, H_PAD]   f32 : nn1 first Linear (resident)
                   wstack_ref,   # [3, H_PAD, H_PAD] f32: nn1 second, nn2 first, nn2 second
                   vecs_ref,     # [8, H_PAD] f32 : b1a,b1b,b2a,b2b, bn1 s, bn1 t, bn2 s, bn2 t
                   wfc_ref,      # [2, H_PAD, C_PAD] f32: fc2 weight split (add / max half)
                   bfc_ref,      # [1, C_PAD] f32 : fc2 bias, padded cols = -1e30
                   padd_ref,     # [GPB, TILE_N] f32 : global_add_pool one-hot
                   pmax_ref,     # [TILE_N, 1]   f32 : per-node mask (0 real / -1e30 pad)
                   out_ref):     # [GPB, C_PAD]  f32 : log_softmax (cols >= 2 are junk)
    f32 = jnp.float32

    a = a_ref[...]                                   # [T, T]
    V = vecs_ref[...]                                # [8, H_PAD]
    b1a, b1b, b2a, b2b = V[0:1], V[1:2], V[2:3], V[3:4]
    s1, t1, s2, t2 = V[4:5], V[5:6], V[6:7], V[7:8]
    e1 = eps_ref[0]                                  # 1 + eps1 (scalar from SMEM)
    e2 = eps_ref[1]                                  # 1 + eps2

    def gin_block(h, e, w_first, b_first, w_second, b_second, scale, shift):
        # GINConv: (1 + eps) * h + A @ h, then the 2-layer MLP, the module-level ReLU,
        # and the folded eval-mode BatchNorm.
        agg = jnp.dot(a, h, preferred_element_type=f32)                           # [T, Fh]
        z = e * h + agg
        hid = jnp.maximum(jnp.dot(z, w_first, preferred_element_type=f32) + b_first, 0.0)
        out = jnp.maximum(jnp.dot(hid, w_second, preferred_element_type=f32) + b_second, 0.0)
        return out * scale + shift                                                # BN (eval)

    h = x_ref[...]                                                                # [T, F_PAD]
    h = gin_block(h, e1, w1a_ref[...], b1a, wstack_ref[0], b1b, s1, t1)           # [T, H_PAD]
    h = gin_block(h, e2, wstack_ref[1], b2a, wstack_ref[2], b2b, s2, t2)          # [T, H_PAD]

    # global_add_pool: one matmul [GPB, T] @ [T, H]; padded node slots have 0 in padd.
    padd = padd_ref[...]
    add_pool = jnp.dot(padd, h, preferred_element_type=f32)                       # [GPB, H_PAD]

    # global_max_pool: vectorized — additive -1e30 mask on padded node slots, then a
    # single reshape (nodes are contiguous per graph) + max reduce over the node axis.
    h_masked = h + pmax_ref[...]                                                  # [T, H_PAD]
    max_pool = jnp.max(h_masked.reshape(GPB, NP, H_PAD), axis=1)                  # [GPB, H_PAD]

    # fc2 over concat([add_pool, max_pool]) as split matmuls (no concat); padded logit
    # columns get a -1e30 bias so the 128-lane log_softmax is exact.
    logits = (jnp.dot(add_pool, wfc_ref[0], preferred_element_type=f32)
              + jnp.dot(max_pool, wfc_ref[1], preferred_element_type=f32)
              + bfc_ref[...])                                                     # [GPB, C_PAD]
    m = jnp.max(logits, axis=1, keepdims=True)
    lse = m + jnp.log(jnp.sum(jnp.exp(logits - m), axis=1, keepdims=True))
    out_ref[...] = logits - lse


# ----------------------------------------------------------------------------- glue
def _bn_fold(gamma, beta, mean, var):
    scale = gamma * jax.lax.rsqrt(var + BN_EPS)
    shift = beta - mean * scale
    return scale, shift


def _pad_mat(w, rows, cols):
    return jnp.pad(w, ((0, rows - w.shape[0]), (0, cols - w.shape[1])))


def _pad_vec(v, n):
    return jnp.pad(v, (0, n - v.shape[0]))


def _pack_params(p):
    """Pack logical-size params into a few padded f32 kernel inputs.

    Invariant: all hidden-dim padding is exactly zero; fc2 bias padding is -1e30.
    """
    f32 = jnp.float32
    H = HIDDEN

    w1a = _pad_mat(p["w1a"], F_PAD, H_PAD).astype(f32)                          # [128, 256]
    wstack = jnp.stack([_pad_mat(p["w1b"], H_PAD, H_PAD),
                        _pad_mat(p["w2a"], H_PAD, H_PAD),
                        _pad_mat(p["w2b"], H_PAD, H_PAD)]).astype(f32)          # [3, 256, 256]

    s1, t1 = _bn_fold(p["bn1_gamma"], p["bn1_beta"], p["bn1_mean"], p["bn1_var"])
    s2, t2 = _bn_fold(p["bn2_gamma"], p["bn2_beta"], p["bn2_mean"], p["bn2_var"])
    vecs = jnp.stack([_pad_vec(p["b1a"], H_PAD), _pad_vec(p["b1b"], H_PAD),
                      _pad_vec(p["b2a"], H_PAD), _pad_vec(p["b2b"], H_PAD),
                      _pad_vec(s1, H_PAD), _pad_vec(t1, H_PAD),
                      _pad_vec(s2, H_PAD), _pad_vec(t2, H_PAD)]).astype(f32)    # [8, 256]

    wfc = jnp.stack([_pad_mat(p["wfc"][:H], H_PAD, C_PAD),                      # add-pool half
                     _pad_mat(p["wfc"][H:], H_PAD, C_PAD)]).astype(f32)         # [2, 256, 128]
    bfc = jnp.full((1, C_PAD), NEG_INF, f32).at[0, :NUM_CLASSES].set(p["bfc"])

    eps = jnp.stack([p["eps1"] + 1.0, p["eps2"] + 1.0]).astype(f32)             # (2,)
    return eps, w1a, wstack, vecs, wfc, bfc


def gin_net_forward(x, edge_index, batch, params, num_graphs):
    """Inference forward pass matching GinNet.forward (dropout = identity, BN eval).

    Assumes `batch` is sorted by graph (as PyG's Batch guarantees) and each graph has at
    most NP nodes; each graph is packed into NP contiguous node slots so a grid step
    covers GPB whole graphs.
    """
    f32 = jnp.float32
    n_real, n_feat = x.shape
    G = int(num_graphs)
    G_pad = ((G + GPB - 1) // GPB) * GPB
    N_tot = G_pad * NP

    # Per-graph slot packing: node j of graph g goes to slot g*NP + (rank of j within g).
    counts = jnp.sum((batch[None, :] == jnp.arange(G, dtype=jnp.int32)[:, None]).astype(jnp.int32),
                     axis=1)                                                     # [G]
    starts = jnp.concatenate([jnp.zeros((1,), jnp.int32), jnp.cumsum(counts)[:-1]])
    slot = batch.astype(jnp.int32) * NP + (jnp.arange(n_real, dtype=jnp.int32) - starts[batch])

    x_feat = jnp.pad(x.astype(f32), ((0, 0), (0, F_PAD - n_feat)))
    x_pad = jnp.zeros((N_tot, F_PAD), f32).at[slot].set(x_feat)
    # A[i, j] = #edges j -> i; block-diagonal by construction (graphs never interconnect),
    # f32 so edge multiplicities are exact.
    adj = jnp.zeros((N_tot, N_tot), f32).at[slot[edge_index[1]], slot[edge_index[0]]].add(1.0)
    padd = jnp.zeros((G_pad, N_tot), f32).at[batch, slot].set(1.0)               # add-pool one-hot
    valid = jnp.zeros((N_tot,), f32).at[slot].set(1.0)
    pmax = ((valid - 1.0) * BIG).reshape(N_tot, 1)                               # 0 real / -1e30 pad

    eps, w1a, wstack, vecs, wfc, bfc = _pack_params(params)

    grid = (G_pad // GPB,)
    in_specs = [
        pl.BlockSpec(memory_space=pltpu.MemorySpace.SMEM),             # eps scalars
        pl.BlockSpec((TILE_N, TILE_N), lambda i: (i, i)),              # diag adjacency block
        pl.BlockSpec((TILE_N, F_PAD), lambda i: (i, 0)),               # node features
        pl.BlockSpec((F_PAD, H_PAD), lambda i: (0, 0)),                # resident weights ...
        pl.BlockSpec((3, H_PAD, H_PAD), lambda i: (0, 0, 0)),
        pl.BlockSpec((8, H_PAD), lambda i: (0, 0)),
        pl.BlockSpec((2, H_PAD, C_PAD), lambda i: (0, 0, 0)),
        pl.BlockSpec((1, C_PAD), lambda i: (0, 0)),
        pl.BlockSpec((GPB, TILE_N), lambda i: (i, i)),                 # add-pool one-hot block
        pl.BlockSpec((TILE_N, 1), lambda i: (i, 0)),                   # max-pool node mask
    ]

    out = pl.pallas_call(
        gin_net_kernel,
        out_shape=jax.ShapeDtypeStruct((G_pad, C_PAD), f32),
        grid=grid,
        in_specs=in_specs,
        out_specs=pl.BlockSpec((GPB, C_PAD), lambda i: (i, 0)),
        compiler_params=pltpu.CompilerParams(dimension_semantics=("parallel",)),
    )(eps, adj, x_pad, w1a, wstack, vecs, wfc, bfc, padd, pmax)
    return out[:G, :NUM_CLASSES]


# ----------------------------------------------------------------------------- params / reference
def init_params(key, num_features, hidden=HIDDEN):
    ks = jax.random.split(key, 20)
    f32 = jnp.float32

    def lin(k, fin, fout):
        return jax.random.normal(k, (fin, fout), f32) / jnp.sqrt(jnp.float32(fin))

    def vec(k, n, scale=0.1):
        return scale * jax.random.normal(k, (n,), f32)

    p = {}
    p["w1a"] = lin(ks[0], num_features, hidden)
    p["b1a"] = vec(ks[1], hidden)
    p["w1b"] = lin(ks[2], hidden, hidden)
    p["b1b"] = vec(ks[3], hidden)
    p["w2a"] = lin(ks[4], hidden, hidden)
    p["b2a"] = vec(ks[5], hidden)
    p["w2b"] = lin(ks[6], hidden, hidden)
    p["b2b"] = vec(ks[7], hidden)
    p["eps1"] = jnp.float32(0.1)            # train_eps=True -> learnable scalars
    p["eps2"] = jnp.float32(-0.05)
    p["bn1_gamma"] = 1.0 + vec(ks[8], hidden)
    p["bn1_beta"] = vec(ks[9], hidden)
    p["bn1_mean"] = vec(ks[10], hidden)
    p["bn1_var"] = jax.random.uniform(ks[11], (hidden,), f32, 0.5, 1.5)
    p["bn2_gamma"] = 1.0 + vec(ks[12], hidden)
    p["bn2_beta"] = vec(ks[13], hidden)
    p["bn2_mean"] = vec(ks[14], hidden)
    p["bn2_var"] = jax.random.uniform(ks[15], (hidden,), f32, 0.5, 1.5)
    # modest output scale so logits stay O(1) in the synthetic test
    p["wfc"] = jax.random.normal(ks[16], (2 * hidden, NUM_CLASSES), f32) / (2.0 * hidden)
    p["bfc"] = vec(ks[17], NUM_CLASSES)
    return p


def reference_forward(x, edge_index, batch, params, num_graphs):
    """Pure-JAX f32 reference (precision=HIGHEST) of GinNet.forward in eval mode."""
    f32 = jnp.float32
    hp = jax.lax.Precision.HIGHEST
    N = x.shape[0]
    H = HIDDEN

    adj = jnp.zeros((N, N), f32).at[edge_index[1], edge_index[0]].add(1.0)

    def mm(a, b):
        return jnp.dot(a, b, precision=hp, preferred_element_type=f32)

    s1, t1 = _bn_fold(params["bn1_gamma"], params["bn1_beta"], params["bn1_mean"], params["bn1_var"])
    s2, t2 = _bn_fold(params["bn2_gamma"], params["bn2_beta"], params["bn2_mean"], params["bn2_var"])

    def gin_block(h, eps, wa, ba, wb, bb, scale, shift):
        z = (1.0 + eps) * h + mm(adj, h)
        hid = jnp.maximum(mm(z, wa) + ba, 0.0)
        out = jnp.maximum(mm(hid, wb) + bb, 0.0)
        return out * scale + shift

    h = x.astype(f32)
    h = gin_block(h, params["eps1"], params["w1a"], params["b1a"], params["w1b"], params["b1b"], s1, t1)
    h = gin_block(h, params["eps2"], params["w2a"], params["b2a"], params["w2b"], params["b2b"], s2, t2)

    onehot = (batch[None, :] == jnp.arange(num_graphs)[:, None]).astype(f32)
    add_pool = mm(onehot, h)
    max_pool = jnp.max(jnp.where(onehot[:, :, None] > 0, h[None, :, :], NEG_INF), axis=1)

    logits = mm(add_pool, params["wfc"][:H]) + mm(max_pool, params["wfc"][H:]) + params["bfc"]
    m = jnp.max(logits, axis=1, keepdims=True)
    return logits - (m + jnp.log(jnp.sum(jnp.exp(logits - m), axis=1, keepdims=True)))


# ----------------------------------------------------------------------------- main
if __name__ == "__main__":
    key = jax.random.PRNGKey(0)
    kx, ks, kd, kp = jax.random.split(key, 4)

    # Synthetic mini-batch of G=16 small graphs, 16 real nodes each (2 grid steps x 8 graphs).
    G = 16
    nodes_per = 16            # <= NP node slots per graph
    edges_per = 24
    N = G * nodes_per

    x = jax.random.normal(kx, (N, NUM_FEATURES), jnp.float32)
    batch = jnp.repeat(jnp.arange(G, dtype=jnp.int32), nodes_per)

    src_local = jax.random.randint(ks, (G * edges_per,), 0, nodes_per, dtype=jnp.int32)
    dst_local = jax.random.randint(kd, (G * edges_per,), 0, nodes_per, dtype=jnp.int32)
    offs = jnp.repeat(jnp.arange(G, dtype=jnp.int32) * nodes_per, edges_per)
    src = src_local + offs
    dst = dst_local + offs
    # undirected: include both directions, like typical PyG edge_index
    edge_index = jnp.stack([jnp.concatenate([src, dst]),
                            jnp.concatenate([dst, src])], axis=0)

    params = init_params(kp, NUM_FEATURES)

    fwd = jax.jit(gin_net_forward, static_argnums=4)
    out = jax.block_until_ready(fwd(x, edge_index, batch, params, G))
    ref = reference_forward(x, edge_index, batch, params, G)

    assert out.shape == (G, NUM_CLASSES)
    assert bool(jnp.all(jnp.isfinite(out)))
    # f32 kernel vs f32 HIGHEST-precision reference: typically < 1e-4; margin covers
    # platform differences in f32 matmul decomposition.
    err = float(jnp.max(jnp.abs(out - ref)))
    assert err < 5e-2, f"mismatch vs pure-JAX reference: {err}"

    print("KERNEL_OK")
</pallas_src>

<mosaic_0001>
module attributes {stable_mosaic.version = 11 : i64} {
  func.func private @main(%arg0: i32) attributes {dimension_semantics = [#tpu.dimension_semantics<core_parallel>], iteration_bounds = array<i64: 2>, tpu.core_type = #tpu.core_type<sc_scalar_subcore>, window_params = []} {
    return
  }
}

module attributes {stable_mosaic.version = 11 : i64} {
  func.func private @main(%arg0: i32) attributes {dimension_semantics = [#tpu.dimension_semantics<core_parallel>], iteration_bounds = array<i64: 2>, tpu.core_type = #tpu.core_type<sc_scalar_subcore>, window_params = []} {
    return
  }
}

module attributes {stable_mosaic.version = 11 : i64} {
  func.func @gin_net_kernel(%arg0: i32, %arg1: memref<2xf32, #tpu.memory_space<smem>>, %arg2: memref<256x256xf32, #tpu.memory_space<vmem>>, %arg3: memref<256x128xf32, #tpu.memory_space<vmem>>, %arg4: memref<128x256xf32, #tpu.memory_space<vmem>>, %arg5: memref<3x256x256xf32, #tpu.memory_space<vmem>>, %arg6: memref<8x256xf32, #tpu.memory_space<vmem>>, %arg7: memref<2x256x128xf32, #tpu.memory_space<vmem>>, %arg8: memref<1x128xf32, #tpu.memory_space<vmem>>, %arg9: memref<8x256xf32, #tpu.memory_space<vmem>>, %arg10: memref<256x1xf32, #tpu.memory_space<vmem>>, %arg11: memref<8x128xf32, #tpu.memory_space<vmem>>) attributes {dimension_semantics = [#tpu.dimension_semantics<parallel>], iteration_bounds = array<i64: 2>, scalar_prefetch = 0 : i64, scratch_operands = 0 : i64, tpu.core_type = #tpu.core_type<tc>, window_params = [{transform_indices = @transform_0, window_bounds = array<i64: 2>}, {transform_indices = @transform_1, window_bounds = array<i64: 256, 256>}, {transform_indices = @transform_2, window_bounds = array<i64: 256, 128>}, {pipeline_mode = #tpu.pipeline_mode<synchronous>, transform_indices = @transform_3, window_bounds = array<i64: 128, 256>}, {pipeline_mode = #tpu.pipeline_mode<synchronous>, transform_indices = @transform_4, window_bounds = array<i64: 3, 256, 256>}, {pipeline_mode = #tpu.pipeline_mode<synchronous>, transform_indices = @transform_5, window_bounds = array<i64: 8, 256>}, {pipeline_mode = #tpu.pipeline_mode<synchronous>, transform_indices = @transform_6, window_bounds = array<i64: 2, 256, 128>}, {pipeline_mode = #tpu.pipeline_mode<synchronous>, transform_indices = @transform_7, window_bounds = array<i64: 1, 128>}, {transform_indices = @transform_8, window_bounds = array<i64: 8, 256>}, {transform_indices = @transform_9, window_bounds = array<i64: 256, 1>}, {transform_indices = @transform_10, window_bounds = array<i64: 8, 128>}]} {
    %c0 = arith.constant 0 : index
    %c0_0 = arith.constant 0 : index
    %0 = vector.load %arg2[%c0, %c0_0] : memref<256x256xf32, #tpu.memory_space<vmem>>, vector<256x256xf32>
    %c0_1 = arith.constant 0 : index
    %c0_2 = arith.constant 0 : index
    %1 = vector.load %arg6[%c0_1, %c0_2] : memref<8x256xf32, #tpu.memory_space<vmem>>, vector<8x256xf32>
    %2 = vector.extract_strided_slice %1 {offsets = [0, 0], sizes = [1, 256], strides = [1, 1]} : vector<8x256xf32> to vector<1x256xf32>
    %3 = vector.extract_strided_slice %1 {offsets = [1, 0], sizes = [1, 256], strides = [1, 1]} : vector<8x256xf32> to vector<1x256xf32>
    %4 = vector.extract_strided_slice %1 {offsets = [2, 0], sizes = [1, 256], strides = [1, 1]} : vector<8x256xf32> to vector<1x256xf32>
    %5 = vector.extract_strided_slice %1 {offsets = [3, 0], sizes = [1, 256], strides = [1, 1]} : vector<8x256xf32> to vector<1x256xf32>
    %6 = vector.extract_strided_slice %1 {offsets = [4, 0], sizes = [1, 256], strides = [1, 1]} : vector<8x256xf32> to vector<1x256xf32>
    %7 = vector.extract_strided_slice %1 {offsets = [5, 0], sizes = [1, 256], strides = [1, 1]} : vector<8x256xf32> to vector<1x256xf32>
    %8 = vector.extract_strided_slice %1 {offsets = [6, 0], sizes = [1, 256], strides = [1, 1]} : vector<8x256xf32> to vector<1x256xf32>
    %9 = vector.extract_strided_slice %1 {offsets = [7, 0], sizes = [1, 256], strides = [1, 1]} : vector<8x256xf32> to vector<1x256xf32>
    %c0_3 = arith.constant 0 : index
    %10 = memref.load %arg1[%c0_3] : memref<2xf32, #tpu.memory_space<smem>>
    %c1 = arith.constant 1 : index
    %11 = memref.load %arg1[%c1] : memref<2xf32, #tpu.memory_space<smem>>
    %c0_4 = arith.constant 0 : index
    %c0_5 = arith.constant 0 : index
    %12 = vector.load %arg3[%c0_4, %c0_5] : memref<256x128xf32, #tpu.memory_space<vmem>>, vector<256x128xf32>
    %c0_6 = arith.constant 0 : index
    %c0_7 = arith.constant 0 : index
    %13 = vector.load %arg4[%c0_6, %c0_7] : memref<128x256xf32, #tpu.memory_space<vmem>>, vector<128x256xf32>
    %c0_8 = arith.constant 0 : index
    %c0_9 = arith.constant 0 : index
    %c0_10 = arith.constant 0 : index
    %14 = vector.load %arg5[%c0_8, %c0_9, %c0_10] : memref<3x256x256xf32, #tpu.memory_space<vmem>>, vector<1x256x256xf32>
    %15 = vector.shape_cast %14 : vector<1x256x256xf32> to vector<256x256xf32>
    %cst = arith.constant dense<0.000000e+00> : vector<256x128xf32>
    %16 = tpu.matmul %0, %12, %cst {dimension_numbers = #tpu.dot_dimension_numbers<[1], [0], [0], [1], [0, 0, 1, 1], [], []>} : vector<256x256xf32>, vector<256x128xf32>, vector<256x128xf32> -> vector<256x128xf32>
    %17 = vector.broadcast %10 : f32 to vector<256x128xf32>
    %18 = arith.mulf %17, %12 : vector<256x128xf32>
    %19 = arith.addf %18, %16 : vector<256x128xf32>
    %cst_11 = arith.constant dense<0.000000e+00> : vector<256x256xf32>
    %20 = tpu.matmul %19, %13, %cst_11 {dimension_numbers = #tpu.dot_dimension_numbers<[1], [0], [0], [1], [0, 0, 1, 1], [], []>} : vector<256x128xf32>, vector<128x256xf32>, vector<256x256xf32> -> vector<256x256xf32>
    %21 = vector.broadcast %2 : vector<1x256xf32> to vector<256x256xf32>
    %22 = arith.addf %20, %21 : vector<256x256xf32>
    %cst_12 = arith.constant 0.000000e+00 : f32
    %23 = vector.broadcast %cst_12 : f32 to vector<256x256xf32>
    %24 = arith.maximumf %22, %23 : vector<256x256xf32>
    %cst_13 = arith.constant dense<0.000000e+00> : vector<256x256xf32>
    %25 = tpu.matmul %24, %15, %cst_13 {dimension_numbers = #tpu.dot_dimension_numbers<[1], [0], [0], [1], [0, 0, 1, 1], [], []>} : vector<256x256xf32>, vector<256x256xf32>, vector<256x256xf32> -> vector<256x256xf32>
    %26 = vector.broadcast %3 : vector<1x256xf32> to vector<256x256xf32>
    %27 = arith.addf %25, %26 : vector<256x256xf32>
    %cst_14 = arith.constant 0.000000e+00 : f32
    %28 = vector.broadcast %cst_14 : f32 to vector<256x256xf32>
    %29 = arith.maximumf %27, %28 : vector<256x256xf32>
    %30 = vector.broadcast %6 : vector<1x256xf32> to vector<256x256xf32>
    %31 = arith.mulf %29, %30 : vector<256x256xf32>
    %32 = vector.broadcast %7 : vector<1x256xf32> to vector<256x256xf32>
    %33 = arith.addf %31, %32 : vector<256x256xf32>
    %c1_15 = arith.constant 1 : index
    %c0_16 = arith.constant 0 : index
    %c0_17 = arith.constant 0 : index
    %34 = vector.load %arg5[%c1_15, %c0_16, %c0_17] : memref<3x256x256xf32, #tpu.memory_space<vmem>>, vector<1x256x256xf32>
    %35 = vector.shape_cast %34 : vector<1x256x256xf32> to vector<256x256xf32>
    %c2 = arith.constant 2 : index
    %c0_18 = arith.constant 0 : index
    %c0_19 = arith.constant 0 : index
    %36 = vector.load %arg5[%c2, %c0_18, %c0_19] : memref<3x256x256xf32, #tpu.memory_space<vmem>>, vector<1x256x256xf32>
    %37 = vector.shape_cast %36 : vector<1x256x256xf32> to vector<256x256xf32>
    %cst_20 = arith.constant dense<0.000000e+00> : vector<256x256xf32>
    %38 = tpu.matmul %0, %33, %cst_20 {dimension_numbers = #tpu.dot_dimension_numbers<[1], [0], [0], [1], [0, 0, 1, 1], [], []>} : vector<256x256xf32>, vector<256x256xf32>, vector<256x256xf32> -> vector<256x256xf32>
    %39 = vector.broadcast %11 : f32 to vector<256x256xf32>
    %40 = arith.mulf %39, %33 : vector<256x256xf32>
    %41 = arith.addf %40, %38 : vector<256x256xf32>
    %cst_21 = arith.constant dense<0.000000e+00> : vector<256x256xf32>
    %42 = tpu.matmul %41, %35, %cst_21 {dimension_numbers = #tpu.dot_dimension_numbers<[1], [0], [0], [1], [0, 0, 1, 1], [], []>} : vector<256x256xf32>, vector<256x256xf32>, vector<256x256xf32> -> vector<256x256xf32>
    %43 = vector.broadcast %4 : vector<1x256xf32> to vector<256x256xf32>
    %44 = arith.addf %42, %43 : vector<256x256xf32>
    %cst_22 = arith.constant 0.000000e+00 : f32
    %45 = vector.broadcast %cst_22 : f32 to vector<256x256xf32>
    %46 = arith.maximumf %44, %45 : vector<256x256xf32>
    %cst_23 = arith.constant dense<0.000000e+00> : vector<256x256xf32>
    %47 = tpu.matmul %46, %37, %cst_23 {dimension_numbers = #tpu.dot_dimension_numbers<[1], [0], [0], [1], [0, 0, 1, 1], [], []>} : vector<256x256xf32>, vector<256x256xf32>, vector<256x256xf32> -> vector<256x256xf32>
    %48 = vector.broadcast %5 : vector<1x256xf32> to vector<256x256xf32>
    %49 = arith.addf %47, %48 : vector<256x256xf32>
    %cst_24 = arith.constant 0.000000e+00 : f32
    %50 = vector.broadcast %cst_24 : f32 to vector<256x256xf32>
    %51 = arith.maximumf %49, %50 : vector<256x256xf32>
    %52 = vector.broadcast %8 : vector<1x256xf32> to vector<256x256xf32>
    %53 = arith.mulf %51, %52 : vector<256x256xf32>
    %54 = vector.broadcast %9 : vector<1x256xf32> to vector<256x256xf32>
    %55 = arith.addf %53, %54 : vector<256x256xf32>
    %c0_25 = arith.constant 0 : index
    %c0_26 = arith.constant 0 : index
    %56 = vector.load %arg9[%c0_25, %c0_26] : memref<8x256xf32, #tpu.memory_space<vmem>>, vector<8x256xf32>
    %cst_27 = arith.constant dense<0.000000e+00> : vector<8x256xf32>
    %57 = tpu.matmul %56, %55, %cst_27 {dimension_numbers = #tpu.dot_dimension_numbers<[1], [0], [0], [1], [0, 0, 1, 1], [], []>} : vector<8x256xf32>, vector<256x256xf32>, vector<8x256xf32> -> vector<8x256xf32>
    %c0_28 = arith.constant 0 : index
    %c0_29 = arith.constant 0 : index
    %58 = vector.load %arg10[%c0_28, %c0_29] : memref<256x1xf32, #tpu.memory_space<vmem>>, vector<256x1xf32>
    %59 = vector.broadcast %58 : vector<256x1xf32> to vector<256x256xf32>
    %60 = arith.addf %55, %59 : vector<256x256xf32>
    %61 = vector.shape_cast %60 : vector<256x256xf32> to vector<8x32x256xf32>
    %cst_30 = arith.constant dense<0xFF800000> : vector<8x256xf32>
    %62 = vector.multi_reduction <maximumf>, %61, %cst_30 [1] : vector<8x32x256xf32> to vector<8x256xf32>
    %c0_31 = arith.constant 0 : index
    %c0_32 = arith.constant 0 : index
    %c0_33 = arith.constant 0 : index
    %63 = vector.load %arg7[%c0_31, %c0_32, %c0_33] : memref<2x256x128xf32, #tpu.memory_space<vmem>>, vector<1x256x128xf32>
    %64 = vector.shape_cast %63 : vector<1x256x128xf32> to vector<256x128xf32>
    %cst_34 = arith.constant dense<0.000000e+00> : vector<8x128xf32>
    %65 = tpu.matmul %57, %64, %cst_34 {dimension_numbers = #tpu.dot_dimension_numbers<[1], [0], [0], [1], [0, 0, 1, 1], [], []>} : vector<8x256xf32>, vector<256x128xf32>, vector<8x128xf32> -> vector<8x128xf32>
    %c1_35 = arith.constant 1 : index
    %c0_36 = arith.constant 0 : index
    %c0_37 = arith.constant 0 : index
    %66 = vector.load %arg7[%c1_35, %c0_36, %c0_37] : memref<2x256x128xf32, #tpu.memory_space<vmem>>, vector<1x256x128xf32>
    %67 = vector.shape_cast %66 : vector<1x256x128xf32> to vector<256x128xf32>
    %cst_38 = arith.constant dense<0.000000e+00> : vector<8x128xf32>
    %68 = tpu.matmul %62, %67, %cst_38 {dimension_numbers = #tpu.dot_dimension_numbers<[1], [0], [0], [1], [0, 0, 1, 1], [], []>} : vector<8x256xf32>, vector<256x128xf32>, vector<8x128xf32> -> vector<8x128xf32>
    %69 = arith.addf %65, %68 : vector<8x128xf32>
    %c0_39 = arith.constant 0 : index
    %c0_40 = arith.constant 0 : index
    %70 = vector.load %arg8[%c0_39, %c0_40] : memref<1x128xf32, #tpu.memory_space<vmem>>, vector<1x128xf32>
    %71 = vector.broadcast %70 : vector<1x128xf32> to vector<8x128xf32>
    %72 = arith.addf %69, %71 : vector<8x128xf32>
    %cst_41 = arith.constant dense<0xFF800000> : vector<8xf32>
    %73 = vector.multi_reduction <maximumf>, %72, %cst_41 [1] : vector<8x128xf32> to vector<8xf32>
    %74 = vector.shape_cast %73 : vector<8xf32> to vector<8x1xf32>
    %75 = vector.broadcast %74 : vector<8x1xf32> to vector<8x128xf32>
    %76 = arith.subf %72, %75 : vector<8x128xf32>
    %77 = math.exp %76 : vector<8x128xf32>
    %cst_42 = arith.constant dense<0.000000e+00> : vector<8xf32>
    %78 = vector.multi_reduction <add>, %77, %cst_42 [1] : vector<8x128xf32> to vector<8xf32>
    %79 = vector.shape_cast %78 : vector<8xf32> to vector<8x1xf32>
    %80 = math.log %79 : vector<8x1xf32>
    %81 = arith.addf %74, %80 : vector<8x1xf32>
    %82 = vector.broadcast %81 : vector<8x1xf32> to vector<8x128xf32>
    %83 = arith.subf %72, %82 : vector<8x128xf32>
    %c0_43 = arith.constant 0 : index
    %c0_44 = arith.constant 0 : index
    %84 = vector.load %arg11[%c0_43, %c0_44] : memref<8x128xf32, #tpu.memory_space<vmem>>, vector<8x128xf32>
    tpu.vector_store %arg11[%c0_43, %c0_44], %83 {strides = array<i32>} : memref<8x128xf32, #tpu.memory_space<vmem>>, vector<8x128xf32>,
    return
  }
  func.func @transform_0(%arg0: i32) -> i32 {
    %c0_i32 = arith.constant 0 : i32
    %c0_i32_0 = arith.constant 0 : i32
    return %c0_i32 : i32
  }
  func.func @transform_1(%arg0: i32) -> (i32, i32) {
    %c0_i32 = arith.constant 0 : i32
    return %arg0, %arg0 : i32, i32
  }
  func.func @transform_2(%arg0: i32) -> (i32, i32) {
    %c0_i32 = arith.constant 0 : i32
    %c0_i32_0 = arith.constant 0 : i32
    return %arg0, %c0_i32 : i32, i32
  }
  func.func @transform_3(%arg0: i32) -> (i32, i32) {
    %c0_i32 = arith.constant 0 : i32
    %c0_i32_0 = arith.constant 0 : i32
    %c0_i32_1 = arith.constant 0 : i32
    return %c0_i32, %c0_i32_0 : i32, i32
  }
  func.func @transform_4(%arg0: i32) -> (i32, i32, i32) {
    %c0_i32 = arith.constant 0 : i32
    %c0_i32_0 = arith.constant 0 : i32
    %c0_i32_1 = arith.constant 0 : i32
    %c0_i32_2 = arith.constant 0 : i32
    return %c0_i32, %c0_i32_0, %c0_i32_1 : i32, i32, i32
  }
  func.func @transform_5(%arg0: i32) -> (i32, i32) {
    %c0_i32 = arith.constant 0 : i32
    %c0_i32_0 = arith.constant 0 : i32
    %c0_i32_1 = arith.constant 0 : i32
    return %c0_i32, %c0_i32_0 : i32, i32
  }
  func.func @transform_6(%arg0: i32) -> (i32, i32, i32) {
    %c0_i32 = arith.constant 0 : i32
    %c0_i32_0 = arith.constant 0 : i32
    %c0_i32_1 = arith.constant 0 : i32
    %c0_i32_2 = arith.constant 0 : i32
    return %c0_i32, %c0_i32_0, %c0_i32_1 : i32, i32, i32
  }
  func.func @transform_7(%arg0: i32) -> (i32, i32) {
    %c0_i32 = arith.constant 0 : i32
    %c0_i32_0 = arith.constant 0 : i32
    %c0_i32_1 = arith.constant 0 : i32
    return %c0_i32, %c0_i32_0 : i32, i32
  }
  func.func @transform_8(%arg0: i32) -> (i32, i32) {
    %c0_i32 = arith.constant 0 : i32
    return %arg0, %arg0 : i32, i32
  }
  func.func @transform_9(%arg0: i32) -> (i32, i32) {
    %c0_i32 = arith.constant 0 : i32
    %c0_i32_0 = arith.constant 0 : i32
    return %arg0, %c0_i32 : i32, i32
  }
  func.func @transform_10(%arg0: i32) -> (i32, i32) {
    %c0_i32 = arith.constant 0 : i32
    %c0_i32_0 = arith.constant 0 : i32
    return %arg0, %c0_i32 : i32, i32
  }
}

</mosaic_0001>

<bundles_post_ra>
// kernel: gin_net_forward.1
= control target key start
LH: loop header
LB: loop body
LE: loop exit
PB: predicated region body
PF: predicated region fallthrough
CT: control target
= control target key end

     0   :  { %s7433_s0 = inlined_call_operand.vmem [shape: f32[2], index: 0, kind: input, shape index: {}]   ;;  %s7434_s1 = inlined_call_operand.hbm [shape: f32[512,512], index: 1, kind: input, shape index: {}]   ;;  %s7435_s2 = inlined_call_operand.vmem [shape: f32[512,128], index: 2, kind: input, shape index: {}]   ;;  %s7436_s3 = inlined_call_operand.vmem [shape: f32[128,256], index: 3, kind: input, shape index: {}]   ;;  %s7437_s4 = inlined_call_operand.vmem [shape: f32[3,256,256], index: 4, kind: input, shape index: {}]   ;;  %s7438_s5 = inlined_call_operand.vmem [shape: f32[8,256], index: 5, kind: input, shape index: {}]   ;;  %s7439_s6 = inlined_call_operand.vmem [shape: f32[2,256,128], index: 6, kind: input, shape index: {}]   ;;  %s7440_s7 = inlined_call_operand.vmem [shape: f32[1,128], index: 7, kind: input, shape index: {}]   ;;  %s7441_s8 = inlined_call_operand.vmem [shape: f32[16,512], index: 8, kind: input, shape index: {}]   ;;  %s7442_s9 = inlined_call_operand.vmem [shape: f32[512,1], index: 9, kind: input, shape index: {}]   ;;  %s7443_s10 = inlined_call_operand.vmem [shape: f32[16,128], index: 10, kind: output, shape index: {}]  }
   0x1   :  { %7468 = sst [smem:[#allocation29_spill]] %s7433_s0 }
   0x2   :  { %15 = vsyncpa [#allocation4], 0 }
   0x3   :  { %16 = vsyncpa [#allocation3], 0 }
   0x4   :  { %18 = vsyncpa [#allocation3 + $0x1], 0  ;;  %s4939_s13 = smov 0   ;;  %s4941_s14 = smov 0  }
   0x5   :  { %s4943_s15 = smov 0   ;;  %s4945_s16 = smov 0  }
   0x6 LB: > { %7469 = sst [smem:[#allocation8_spill]] %s4870_s15  ;;  %s4958_s17 = sadd.s32 4294967295, %s4874_s16   ;;  %s4874_s16 = sphi %s4945_s16, %s7515_s16   ;;  %s4870_s15 = sphi %s4943_s15, %s7520_s15   ;;  %s4866_s14 = sphi %s4941_s14, %s7519_s14   ;;  %s4862_s13 = sphi %s4939_s13, %s7518_s13  }
   0x7   : > { %s4961_s18 = sadd.s32 1, %s4874_s16   ;;  %s54_s20 = sadd.s32 1, %s4870_s15 }
   0x8   : > { %7470 = sst [smem:[#allocation9_spill]] %s4961_s18  ;;  %s49_s19 = ssub.s32 %s4874_s16, %s4961_s18 }
   0x9   : > { %s51_s21 = sor.u32 %s49_s19, %s49_s19  ;;  %p61_p0 = scmp.ne.s32.totalorder %s4870_s15, %s4866_s14 }
   0xa   : > { %p52_p1 = scmp.eq.s32.totalorder %s51_s21, 0  ;;  %p62_p2 = scmp.eq.s32.totalorder %s4874_s16, 0 }
   0xb   : > { %p67_p3 = scmp.ne.s32.totalorder %s4866_s14, %s4862_s13  ;;  %p68_p4 = scmp.eq.s32.totalorder %s4958_s17, 0 }
   0xc   : > { %s4972_s22 = scalar_select %p52_p1, %s4870_s15, %s54_s20  }
   0xd   : > { %p63_p5 = por %p62_p2, %p61_p0  ;;  %p4976_p6 = por %p68_p4, %p67_p3 }
   0xe   : > { %7471 = sst [smem:[#allocation10_spill]] %s4972_s22  ;;  %p3945_p7 = scmp.ge.s32.totalorder %s4874_s16, 1 }
   0xf   : > { %s7472_s23 = scalar_select %p4976_p6, 1, 0 }
  0x10   : > { %p289_p8 = scmp.lt.s32.totalorder %s4874_s16, 3  ;;  %s7473_s0 = sld [smem:[#allocation29_spill]] }
  0x11   : > { %p4678_p11 = scmp.lt.s32.totalorder %s4874_s16, 2  ;;  %s328_s28 = sand.u32 1, %s4870_s15  }
  0x12   : > { %p4985_p9 = pnand %p3945_p7, %p289_p8  ;;  %s3950_s29 = sshll.u32 %s4874_s16, 1 }
  0x13   : > { %p5000_p13 = pnand %p4678_p11, %p63_p5  ;;  %s3948_s12 = sshll.u32 %s328_s28, 9 }
  0x14   : > { %s7474_s27 = scalar_select %p4985_p9, 1, 0 }
  0x15   : > { %p4669_p10 = pneg %p4985_p9 }
  0x16   : > { %s302_s26 = sshll.u32 %s7473_s0, 4  ;;  %s303_s26 = int_to_ptr.vmem [resolvable:$true] %s302_s26 }
  0x17   : > { %p4996_p12 = pnand %p4669_p10, %p68_p4  ;;  %s4791_s13 = scalar_lea.vmem %s303_s26, 16 }
  0x18   : > { %p4792_p0 = scmp.ne.s32.totalorder %s303_s26, %s4791_s13  ;;  %p4799_p7 = scmp.lt.s32.totalorder %s303_s26, %s303_s26 }
  0x19   : > { %p4793_p1 = pneg %p4996_p12  ;;  %p4800_p8 = scmp.lt.s32.totalorder %s4791_s13, %s4791_s13 }
  0x1b   : > { %p4794_p2 = pnand %p4793_p1, %p4792_p0  ;;  %p4801_p6 = por %p4800_p8, %p4799_p7 }
  0x1d   : > { %p4795_p3 = pneg %p4794_p2 }
  0x1f   : > { %p4802_p9 = pnand %p4801_p6, %p4795_p3 }
  0x21   : > { %4805 = shalt.err (!%p4802_p9)
}
  0x22   : > { %s4876_s19 = smov [#allocation2]   ;;  %s4128_s20 = sshll.u32 %s4874_s16, 7 }
  0x23   : > { %4672 = dma.vmem_to_smem (!%p4996_p12), %s303_s26, 16, %s4876_s19, [#allocation4]  }
  0x24   : > { %s339_s21 = sadd.s32 %s4128_s20, %s3950_s29  ;;  %s332_s24 = scalar_lea.vmem [#allocation5], %s3948_s12 }
  0x25   : > { %s342_s25 = sshll.u32 %s332_s24, 4  ;;  %s3952_s0 = sshll.u32 %s339_s21, 7  ;;  %s5009_s25 = int_to_ptr.vmem [resolvable:$true] %s342_s25 }
  0x26   : > { %s5014_s13 = scalar_lea.hbm %s7434_s1, %s3952_s0  ;;  %s5016_s30 = scalar_lea.sflag [#allocation3], %s328_s28 }
  0x27   : > { %s4806_s18 = scalar_lea.hbm %s5014_s13, 8192  ;;  %p4808_p6 = pneg %p5000_p13 }
  0x28   : > { %p4807_p5 = scmp.ne.s32.totalorder %s5014_s13, %s4806_s18  ;;  %s4811_s15 = scalar_lea.hbm %s7434_s1, 32768 }
  0x29   : > { %p4812_p11 = scmp.lt.u32.totalorder %s5014_s13, %s7434_s1  ;;  %p4813_p12 = scmp.lt.u32.totalorder %s4811_s15, %s4806_s18 }
  0x2a   : > { %p4809_p9 = pnand %p4808_p6, %p4807_p5  ;;  %p4815_p1 = scmp.lt.u32.totalorder %s4806_s18, %s5014_s13 }
  0x2b   : > { %p4814_p0 = por %p4813_p12, %p4812_p11 }
  0x2c   : > { %p4810_p10 = pneg %p4809_p9 }
  0x2d   : > { %p4816_p2 = por %p4815_p1, %p4814_p0 }
  0x2f   : > { %p4817_p3 = pnand %p4816_p2, %p4810_p10 }
  0x31   : > { %4820 = shalt.err (!%p4817_p3)
}
  0x32   : > { %s4821_s28 = scalar_lea.vmem %s5009_s25, 8192  ;;  %s4877_s29 = smov [#allocation5]  }
  0x33   : > { %p4822_p7 = scmp.ne.s32.totalorder %s5009_s25, %s4821_s28  ;;  %s4826_s12 = sshll.u32 %s4877_s29, 4  ;;  %s4827_s12 = int_to_ptr.vmem [resolvable:$false] %s4826_s12 }
  0x34   : > { %s4828_s19 = scalar_lea.vmem %s4827_s12, 16384  ;;  %p4829_p9 = scmp.lt.s32.totalorder %s5009_s25, %s4827_s12 }
  0x35   : > { %p4824_p8 = pnand %p4822_p7, %p4808_p6  ;;  %p4830_p11 = scmp.lt.s32.totalorder %s4828_s19, %s4821_s28 }
  0x37   : > { %p4825_p5 = pneg %p4824_p8  ;;  %p4831_p12 = por %p4830_p11, %p4829_p9 }
  0x39   : > { %p4832_p0 = pnand %p4831_p12, %p4825_p5 }
  0x3b   : > { %4835 = shalt.err (!%p4832_p0)
}
  0x3c   : > { %s4878_s18 = smov 512   ;;  %s4879_s20 = smov 256  }
  0x3d   : > { %s4880_s21 = smov 16   ;;  %p7477_p6 = scmp.ne.s32.totalorder %s7474_s27, 0 }
  0x3e   : > { %4676 = dma.hbm_to_vmem [thread:$0]  (!%p5000_p13), %s5014_s13, 8192, %s5009_s25, %s5016_s30, %s4878_s18, %s4879_s20, %s4880_s21  }
  0x3f   : > { %385 = sbr.rel (%p7477_p6) target bundleno = 2468 (0x9a4), region = 60 }
  0x46   : > { %4853 = dma.done.wait (%p68_p4), [#allocation4], 16  }
  0x47   : > { %4855 = vsyncadd (%p68_p4), [#allocation4], 4294967280  ;;  %s391_s24 = sand.u32 1, %s4866_s14   ;;  %p7478_p10 = scmp.ne.s32.totalorder %s7472_s23, 0 }
  0x48   : > { %s3955_s16 = sshll.u32 %s391_s24, 9  ;;  %s392_s26 = scalar_lea.sflag [#allocation3], %s391_s24 }
  0x49   : > { %s5051_s15 = scalar_lea.vmem [#allocation5], %s3955_s16 }
  0x4a   : > { %4857 = dma.done.wait (%p7478_p10), %s392_s26, 8192  }
  0x4b   : > { %4859 = vsyncadd (%p7478_p10), %s392_s26, 4294959104 }
  0x4c   : > { %400 = sfence }
  0x4d   : > { %s3956_s27 = sshll.u32 %s4958_s17, 5  ;;  %v5059_v0 = vld [vmem:[%s5051_s15 + $0x8] sm:$0xff]  ;;  %v4881_v1 = vmov 0.0|0.0   ;;  %v479_v50 = vld [vmem:[%s5051_s15] sm:$0xff]  ;;  %v482_v51 = vld [vmem:[%s5051_s15 + $0x18] sm:$0xff]  ;;  %s545_s20 = sld [smem:[#allocation2]] }
  0x4e   : > { %4199 = vmatprep.subr.bf16.mxu0 %v4881_v1  ;;  %p454_p4 = scmp.lt.s32.totalorder %s3956_s27, 63  ;;  %739 = vmatprep.mubr.f32.mxu0 %v5059_v0  ;;  %v580_v52 = vld [vmem:[%s7436_s3 + $0x8] sm:$0xff]  ;;  %v582_v53 = vld [vmem:[%s7436_s3 + $0x18] sm:$0xff]  ;;  %v579_v54 = vld [vmem:[%s7436_s3] sm:$0xff]  ;;  %s3964_s29 = sld [smem:[#allocation2 + $0x1]]  ;;  %vm3639_vm0 = vcmask 1041409  }
  0x4f   : > { %v4247_v55 = vpack.c.bf16 %v582_v53, %v580_v52  ;;  %v581_v56 = vld [vmem:[%s7436_s3 + $0x10] sm:$0xff]  ;;  %v584_v57 = vld [vmem:[%s7436_s3 + $0x28] sm:$0xff]  ;;  %v586_v58 = vld [vmem:[%s7436_s3 + $0x38] sm:$0xff]  ;;  %s3958_s16 = sshll.u32 %s4958_s17, 1  ;;  %p460_p13 = scmp.lt.s32.totalorder %s4958_s17, 1  ;;  %vm3641_vm1 = vcmask 1042434  }
  0x50   : > { %s7522_s27 = smov (!%p454_p4, %s3956_s27), 63  ;;  %v4249_v59 = vpack.c.bf16 %v581_v56, %v579_v54  ;;  %v4251_v60 = vpack.c.bf16 %v586_v58, %v584_v57  ;;  %v583_v61 = vld [vmem:[%s7436_s3 + $0x20] sm:$0xff]  ;;  %v585_v62 = vld [vmem:[%s7436_s3 + $0x30] sm:$0xff]  ;;  %v588_v63 = vld [vmem:[%s7436_s3 + $0x48] sm:$0xff]  ;;  %p462_p1 = scmp.lt.s32.totalorder %s3958_s16, 3  ;;  %vm3643_vm2 = vcmask 1043459  }
  0x51   : > { %s3957_s11 = sshll.u32 %s7522_s27, 3  ;;  %4248 = vmatprep.subr.bf16.mxu1 %v4247_v55  ;;  %v595_v52 = vld [vmem:[%s7436_s3 + $0x80] sm:$0xff]  ;;  %v597_v53 = vld [vmem:[%s7436_s3 + $0x90] sm:$0xff]  ;;  %v488_v54 = vld [vmem:[%s5051_s15 + $0x48] sm:$0xff]  ;;  %s7524_s17 = smov (!%p460_p13, %s4958_s17), 1  ;;  %vm3645_vm3 = vcmask 1044484  }
  0x52   : > { %s5071_s13 = scalar_lea.vmem %s7435_s2, %s3957_s11  ;;  %4250 = vmatpush1.bf16.msra.mxu1 %v4249_v59  ;;  %v600_v55 = vld [vmem:[%s7436_s3 + $0xa8] sm:$0xff]  ;;  %v602_v56 = vld [vmem:[%s7436_s3 + $0xb8] sm:$0xff]  ;;  %v4265_v57 = vpack.c.bf16 %v597_v53, %v595_v52  ;;  %v487_v58 = vld [vmem:[%s5051_s15 + $0x40] sm:$0xff]  ;;  %s6733_s26 = scalar_lea.vmem %s7442_s9, %s3957_s11  ;;  %vm3647_vm4 = vcmask 1045509   ;;  %vm3649_vm5 = vcmask 1046534   ;;  %vm3651_vm6 = vcmask 1047559  }
  0x53   : > { %v5074_v2 = vld [vmem:[%s5071_s13] sm:$0xff]  ;;  %v5077_v3 = vld [vmem:[%s5071_s13 + $0x8] sm:$0xff]  ;;  %v5080_v4 = vld [vmem:[%s5071_s13 + $0x10] sm:$0xff]  ;;  %4252 = vmatprep.subr.bf16.mxu1 %v4251_v60  ;;  %v4267_v59 = vpack.c.bf16 %v602_v56, %v600_v55  ;;  %s7526_s16 = smov (!%p462_p1, %s3958_s16), 3  ;;  %s3959_s22 = sshll.u32 %s7524_s17, 2 }
  0x54   : > { %v4200_v5 = vpack.c.bf16 %v5077_v3, %v5074_v2  ;;  %v5085_v6 = vld [vmem:[%s5071_s13 + $0x18] sm:$0xff]  ;;  %v5091_v8 = vld [vmem:[%s5071_s13 + $0x20] sm:$0xff]  ;;  %v5094_v9 = vld [vmem:[%s5071_s13 + $0x28] sm:$0xff]  ;;  %s465_s28 = sadd.s32 %s3959_s22, %s7526_s16 }
  0x55   : > { %v4203_v7 = vpack.c.bf16 %v5085_v6, %v5080_v4  ;;  %v4206_v10 = vpack.c.bf16 %v5094_v9, %v5091_v8  ;;  %v5100_v11 = vld [vmem:[%s5071_s13 + $0x30] sm:$0xff]  ;;  %v5103_v12 = vld [vmem:[%s5071_s13 + $0x38] sm:$0xff]  ;;  %v5109_v14 = vld [vmem:[%s5071_s13 + $0x40] sm:$0xff] }
  0x56   : > { %4201 = vmatpush1.bf16.msra.mxu0 %v4200_v5  ;;  %v4209_v13 = vpack.c.bf16 %v5103_v12, %v5100_v11  ;;  %v5112_v15 = vld [vmem:[%s5071_s13 + $0x48] sm:$0xff]  ;;  %v5118_v17 = vld [vmem:[%s5071_s13 + $0x50] sm:$0xff]  ;;  %v5121_v18 = vld [vmem:[%s5071_s13 + $0x58] sm:$0xff]  ;;  %v4253_v5 = vpack.c.bf16 %v585_v62, %v583_v61 }
  0x57   : > { %4202 = vmatprep.subr.bf16.mxu0 %v4881_v1  ;;  %v4212_v16 = vpack.c.bf16 %v5112_v15, %v5109_v14  ;;  %v4215_v19 = vpack.c.bf16 %v5121_v18, %v5118_v17  ;;  %v5127_v20 = vld [vmem:[%s5071_s13 + $0x60] sm:$0xff]  ;;  %v5130_v21 = vld [vmem:[%s5071_s13 + $0x68] sm:$0xff]  ;;  %v5136_v23 = vld [vmem:[%s5071_s13 + $0x70] sm:$0xff] }
  0x58   : > { %v4218_v22 = vpack.c.bf16 %v5130_v21, %v5127_v20  ;;  %v5139_v24 = vld [vmem:[%s5071_s13 + $0x78] sm:$0xff]  ;;  %v5145_v26 = vld [vmem:[%s5071_s13 + $0x80] sm:$0xff]  ;;  %v5148_v27 = vld [vmem:[%s5071_s13 + $0x88] sm:$0xff]  ;;  %4254 = vmatpush1.bf16.msra.mxu1 %v4253_v5 }
  0x59   : > { %v4221_v25 = vpack.c.bf16 %v5139_v24, %v5136_v23  ;;  %v4224_v28 = vpack.c.bf16 %v5148_v27, %v5145_v26  ;;  %v5154_v29 = vld [vmem:[%s5071_s13 + $0x90] sm:$0xff]  ;;  %v5157_v30 = vld [vmem:[%s5071_s13 + $0x98] sm:$0xff]  ;;  %v5163_v32 = vld [vmem:[%s5071_s13 + $0xa0] sm:$0xff] }
  0x5a   : > { %4204 = vmatpush1.bf16.msra.mxu0 %v4203_v7  ;;  %v4227_v31 = vpack.c.bf16 %v5157_v30, %v5154_v29  ;;  %v5166_v33 = vld [vmem:[%s5071_s13 + $0xa8] sm:$0xff]  ;;  %v5172_v35 = vld [vmem:[%s5071_s13 + $0xb0] sm:$0xff]  ;;  %v5175_v36 = vld [vmem:[%s5071_s13 + $0xb8] sm:$0xff] }
  0x5b   : > { %4205 = vmatprep.subr.bf16.mxu0 %v4881_v1  ;;  %v4230_v34 = vpack.c.bf16 %v5166_v33, %v5163_v32  ;;  %v4233_v37 = vpack.c.bf16 %v5175_v36, %v5172_v35  ;;  %v5181_v38 = vld [vmem:[%s5071_s13 + $0xc0] sm:$0xff]  ;;  %v5184_v39 = vld [vmem:[%s5071_s13 + $0xc8] sm:$0xff]  ;;  %v5190_v41 = vld [vmem:[%s5071_s13 + $0xd0] sm:$0xff] }
  0x5c   : > { %v4236_v40 = vpack.c.bf16 %v5184_v39, %v5181_v38  ;;  %v5193_v42 = vld [vmem:[%s5071_s13 + $0xd8] sm:$0xff]  ;;  %v5199_v44 = vld [vmem:[%s5071_s13 + $0xe0] sm:$0xff]  ;;  %v5202_v45 = vld [vmem:[%s5071_s13 + $0xe8] sm:$0xff] }
  0x5d   : > { %v4239_v43 = vpack.c.bf16 %v5193_v42, %v5190_v41  ;;  %v4242_v46 = vpack.c.bf16 %v5202_v45, %v5199_v44  ;;  %v5208_v47 = vld [vmem:[%s5071_s13 + $0xf0] sm:$0xff]  ;;  %v578_v48 = vld [vmem:[%s5071_s13 + $0xf8] sm:$0xff]  ;;  %v599_v60 = vld [vmem:[%s7436_s3 + $0xa0] sm:$0xff] }
  0x5e   : > { %4207 = vmatpush1.bf16.msra.mxu0 %v4206_v10  ;;  %v4245_v49 = vpack.c.bf16 %v578_v48, %v5208_v47  ;;  %v481_v7 = vld [vmem:[%s5051_s15 + $0x10] sm:$0xff]  ;;  %v598_v48 = vld [vmem:[%s7436_s3 + $0x98] sm:$0xff]  ;;  %v503_v55 = vld [vmem:[%s5051_s15 + $0xc0] sm:$0xff] }
  0x5f   : > { %4208 = vmatprep.subr.bf16.mxu0 %v4881_v1  ;;  %v601_v61 = vld [vmem:[%s7436_s3 + $0xb0] sm:$0xff]  ;;  %v490_v62 = vld [vmem:[%s5051_s15 + $0x58] sm:$0xff] }
  0x60   : > { %v4269_v5 = vpack.c.bf16 %v601_v61, %v599_v60  ;;  %v502_v52 = vld [vmem:[%s5051_s15 + $0xb8] sm:$0xff]  ;;  %v501_v53 = vld [vmem:[%s5051_s15 + $0xb0] sm:$0xff] }
  0x61   : > { %v506_v56 = vld [vmem:[%s5051_s15 + $0xd8] sm:$0xff]  ;;  %v509_v61 = vld [vmem:[%s5051_s15 + $0xf0] sm:$0xff] }
  0x62   : > { %4210 = vmatpush1.bf16.msra.mxu0 %v4209_v13  ;;  %v587_v13 = vld [vmem:[%s7436_s3 + $0x40] sm:$0xff]  ;;  %v510_v60 = vld [vmem:[%s5051_s15 + $0xf8] sm:$0xff] }
  0x63   : > { %4211 = vmatprep.subr.bf16.mxu0 %v4881_v1 }
  0x66   : > { %4213 = vmatpush1.bf16.msra.mxu0 %v4212_v16  ;;  %v589_v16 = vld [vmem:[%s7436_s3 + $0x50] sm:$0xff] }
  0x67   : > { %4214 = vmatprep.subr.bf16.mxu0 %v4881_v1 }
  0x6a   : > { %4216 = vmatpush1.bf16.msra.mxu0 %v4215_v19  ;;  %v484_v19 = vld [vmem:[%s5051_s15 + $0x28] sm:$0xff] }
  0x6b   : > { %4217 = vmatprep.subr.bf16.mxu0 %v4881_v1 }
  0x6e   : > { %4219 = vmatpush1.bf16.msra.mxu0 %v4218_v22  ;;  %v592_v22 = vld [vmem:[%s7436_s3 + $0x68] sm:$0xff] }
  0x6f   : > { %4220 = vmatprep.subr.bf16.mxu0 %v4881_v1 }
  0x72   : > { %4222 = vmatpush1.bf16.msra.mxu0 %v4221_v25  ;;  %v594_v25 = vld [vmem:[%s7436_s3 + $0x78] sm:$0xff] }
  0x73   : > { %4223 = vmatprep.subr.bf16.mxu0 %v4881_v1 }
  0x76   : > { %4225 = vmatpush1.bf16.msra.mxu0 %v4224_v28  ;;  %v4257_v28 = vpack.c.bf16 %v589_v16, %v587_v13  ;;  %v603_v13 = vld [vmem:[%s7436_s3 + $0xc0] sm:$0xff]  ;;  %v605_v16 = vld [vmem:[%s7436_s3 + $0xd0] sm:$0xff] }
  0x77   : > { %4226 = vmatprep.subr.bf16.mxu0 %v4881_v1 }
  0x7a   : > { %4228 = vmatpush1.bf16.msra.mxu0 %v4227_v31  ;;  %v483_v31 = vld [vmem:[%s5051_s15 + $0x20] sm:$0xff] }
  0x7b   : > { %4229 = vmatprep.subr.bf16.mxu0 %v4881_v1 }
  0x7e   : > { %4231 = vmatpush1.bf16.msra.mxu0 %v4230_v34  ;;  %v4259_v34 = vpack.c.bf16 %v594_v25, %v592_v22  ;;  %v608_v22 = vld [vmem:[%s7436_s3 + $0xe8] sm:$0xff]  ;;  %v610_v25 = vld [vmem:[%s7436_s3 + $0xf8] sm:$0xff] }
  0x7f   : > { %4232 = vmatprep.subr.bf16.mxu0 %v4881_v1 }
  0x82   : > { %4234 = vmatpush1.bf16.msra.mxu0 %v4233_v37  ;;  %v591_v37 = vld [vmem:[%s7436_s3 + $0x60] sm:$0xff] }
  0x83   : > { %4235 = vmatprep.subr.bf16.mxu0 %v4881_v1 }
  0x86   : > { %4237 = vmatpush1.bf16.msra.mxu0 %v4236_v40  ;;  %v593_v40 = vld [vmem:[%s7436_s3 + $0x70] sm:$0xff] }
  0x87   : > { %4238 = vmatprep.subr.bf16.mxu0 %v4881_v1 }
  0x8a   : > { %4240 = vmatpush1.bf16.msra.mxu0 %v4239_v43  ;;  %v486_v43 = vld [vmem:[%s5051_s15 + $0x38] sm:$0xff] }
  0x8b   : > { %4241 = vmatprep.subr.bf16.mxu0 %v4881_v1 }
  0x8e   : > { %4243 = vmatpush1.bf16.msra.mxu0 %v4242_v46  ;;  %v596_v46 = vld [vmem:[%s7436_s3 + $0x88] sm:$0xff] }
  0x8f   : > { %4244 = vmatprep.subr.bf16.mxu0 %v4881_v1  ;;  %v590_v1 = vld [vmem:[%s7436_s3 + $0x58] sm:$0xff] }
  0x90   : > { %v4255_v10 = vpack.c.bf16 %v590_v1, %v588_v63  ;;  %v604_v63 = vld [vmem:[%s7436_s3 + $0xc8] sm:$0xff]  ;;  %v606_v1 = vld [vmem:[%s7436_s3 + $0xd8] sm:$0xff] }
  0x92   : > { %4246 = vmatpush1.bf16.msra.mxu0 %v4245_v49  ;;  %4256 = vmatprep.subr.bf16.mxu1 %v4255_v10  ;;  %v4261_v49 = vpack.c.bf16 %v593_v40, %v591_v37  ;;  %v4271_v10 = vpack.c.bf16 %v606_v1, %v604_v63  ;;  %v494_v37 = vld [vmem:[%s5051_s15 + $0x78] sm:$0xff]  ;;  %v493_v40 = vld [vmem:[%s5051_s15 + $0x70] sm:$0xff]  ;;  %v511_v63 = vld [vmem:[%s5051_s15 + $0x100] sm:$0xff] }
  0x93   : > { %4258 = vmatpush1.bf16.msra.mxu1 %v4257_v28  ;;  %v4273_v28 = vpack.c.bf16 %v605_v16, %v603_v13  ;;  %v514_v1 = vld [vmem:[%s5051_s15 + $0x118] sm:$0xff]  ;;  %v517_v16 = vld [vmem:[%s5051_s15 + $0x130] sm:$0xff] }
  0x94   : > { %4260 = vmatprep.subr.bf16.mxu1 %v4259_v34  ;;  %v4275_v34 = vpack.c.bf16 %v610_v25, %v608_v22  ;;  %v518_v13 = vld [vmem:[%s5051_s15 + $0x138] sm:$0xff]  ;;  %v519_v22 = vld [vmem:[%s5051_s15 + $0x140] sm:$0xff] }
  0x95   : > { %740 = vmatmul.mubr.f32.vlgmr.msra.gmra.mrb[0].mxu0 %v479_v50  ;;  %v485_v50 = vld [vmem:[%s5051_s15 + $0x30] sm:$0xff]  ;;  %v522_v25 = vld [vmem:[%s5051_s15 + $0x158] sm:$0xff] }
  0x96   : > { %744 = vmatprep.mubr.f32.mxu0 %v482_v51  ;;  %v4263_v51 = vpack.c.bf16 %v598_v48, %v596_v46  ;;  %v495_v46 = vld [vmem:[%s5051_s15 + $0x80] sm:$0xff]  ;;  %v498_v48 = vld [vmem:[%s5051_s15 + $0x98] sm:$0xff] }
  0x97   : > { %4262 = vmatpush1.bf16.msra.mxu1 %v4261_v49  ;;  %v497_v49 = vld [vmem:[%s5051_s15 + $0x90] sm:$0xff] }
  0x98   : > { %4264 = vmatprep.subr.bf16.mxu1 %v4263_v51  ;;  %v499_v51 = vld [vmem:[%s5051_s15 + $0xa0] sm:$0xff] }
  0x99   : > { %745 = vmatmul.mubr.f32.gmra.mrb[2].mxu0 %v481_v7  ;;  %v489_v7 = vld [vmem:[%s5051_s15 + $0x50] sm:$0xff] }
  0x9a   : > { %749 = vmatprep.mubr.f32.mxu0 %v484_v19  ;;  %v492_v19 = vld [vmem:[%s5051_s15 + $0x68] sm:$0xff] }
  0x9b   : > { %4266 = vmatpush1.bf16.msra.mxu1 %v4265_v57  ;;  %v505_v57 = vld [vmem:[%s5051_s15 + $0xd0] sm:$0xff] }
  0x9c   : > { %4268 = vmatprep.subr.bf16.mxu1 %v4267_v59  ;;  %v507_v59 = vld [vmem:[%s5051_s15 + $0xe0] sm:$0xff] }
  0x9d   : > { %750 = vmatmul.mubr.f32.gmra.mrb[4].mxu0 %v483_v31  ;;  %v491_v31 = vld [vmem:[%s5051_s15 + $0x60] sm:$0xff] }
  0x9e   : > { %754 = vmatprep.mubr.f32.mxu0 %v486_v43  ;;  %v496_v43 = vld [vmem:[%s5051_s15 + $0x88] sm:$0xff] }
  0x9f   : > { %4270 = vmatpush1.bf16.msra.mxu1 %v4269_v5  ;;  %v513_v5 = vld [vmem:[%s5051_s15 + $0x110] sm:$0xff] }
  0xa0   : > { %4272 = vmatprep.subr.bf16.mxu1 %v4271_v10  ;;  %v515_v10 = vld [vmem:[%s5051_s15 + $0x120] sm:$0xff] }
  0xa1   : > { %755 = vmatmul.mubr.f32.gmra.mrb[6].mxu0 %v485_v50  ;;  %v500_v50 = vld [vmem:[%s5051_s15 + $0xa8] sm:$0xff] }
  0xa2   : > { %759 = vmatprep.mubr.f32.mxu0 %v488_v54  ;;  %v504_v54 = vld [vmem:[%s5051_s15 + $0xc8] sm:$0xff] }
  0xa3   : > { %4274 = vmatpush1.bf16.msra.mxu1 %v4273_v28  ;;  %v607_v28 = vld [vmem:[%s7436_s3 + $0xe0] sm:$0xff] }
  0xa4   : > { %4276 = vmatprep.subr.bf16.mxu1 %v4275_v34  ;;  %v521_v34 = vld [vmem:[%s5051_s15 + $0x150] sm:$0xff] }
  0xa5   : > { %760 = vmatmul.mubr.f32.gmra.mrb[8].mxu0 %v487_v58  ;;  %v508_v58 = vld [vmem:[%s5051_s15 + $0xe8] sm:$0xff] }
  0xa6   : > { %764 = vmatprep.mubr.f32.mxu0 %v490_v62  ;;  %v512_v62 = vld [vmem:[%s5051_s15 + $0x108] sm:$0xff] }
  0xa9   : > { %765 = vmatmul.mubr.f32.gmra.mrb[10].mxu0 %v489_v7  ;;  %v516_v7 = vld [vmem:[%s5051_s15 + $0x128] sm:$0xff] }
  0xaa   : > { %769 = vmatprep.mubr.f32.mxu0 %v492_v19  ;;  %v520_v19 = vld [vmem:[%s5051_s15 + $0x148] sm:$0xff] }
  0xad   : > { %770 = vmatmul.mubr.f32.gmra.mrb[12].mxu0 %v491_v31  ;;  %v609_v31 = vld [vmem:[%s7436_s3 + $0xf0] sm:$0xff] }
  0xae   : > { %774 = vmatprep.mubr.f32.mxu0 %v494_v37  ;;  %v4277_v37 = vpack.c.bf16 %v609_v31, %v607_v28  ;;  %v618_v28 = vld [vmem:[%s7437_s4 + $0x38] sm:$0xff] }
  0xb0   : > { %4278 = vmatpush1.bf16.msra.mxu1 %v4277_v37 }
  0xb1   : > { %775 = vmatmul.mubr.f32.gmra.mrb[14].mxu0 %v493_v40  ;;  %v524_v40 = vld [vmem:[%s5051_s15 + $0x168] sm:$0xff] }
  0xb2   : > { %779 = vmatprep.mubr.f32.mxu0 %v496_v43  ;;  %v523_v43 = vld [vmem:[%s5051_s15 + $0x160] sm:$0xff] }
  0xb5   : > { %780 = vmatmul.mubr.f32.gmra.mrb[16].mxu0 %v495_v46  ;;  %v4882_v46 = vmov 0.0  }
  0xb6   : > { %784 = vmatprep.mubr.f32.mxu0 %v498_v48  ;;  %1037 = vmatprep.mubr.f32.mxu1 %v4882_v46  ;;  %v526_v48 = vld [vmem:[%s5051_s15 + $0x178] sm:$0xff] }
  0xb9   : > { %785 = vmatmul.mubr.f32.gmra.mrb[18].mxu0 %v497_v49  ;;  %v525_v49 = vld [vmem:[%s5051_s15 + $0x170] sm:$0xff] }
  0xba   : > { %789 = vmatprep.mubr.f32.mxu0 %v500_v50  ;;  %v528_v50 = vld [vmem:[%s5051_s15 + $0x188] sm:$0xff] }
  0xbd   : > { %790 = vmatmul.mubr.f32.gmra.mrb[20].mxu0 %v499_v51  ;;  %v527_v51 = vld [vmem:[%s5051_s15 + $0x180] sm:$0xff] }
  0xbe   : > { %794 = vmatprep.mubr.f32.mxu0 %v502_v52  ;;  %v530_v52 = vld [vmem:[%s5051_s15 + $0x198] sm:$0xff] }
  0xc1   : > { %795 = vmatmul.mubr.f32.gmra.mrb[22].mxu0 %v501_v53  ;;  %v529_v53 = vld [vmem:[%s5051_s15 + $0x190] sm:$0xff] }
  0xc2   : > { %799 = vmatprep.mubr.f32.mxu0 %v504_v54  ;;  %v532_v54 = vld [vmem:[%s5051_s15 + $0x1a8] sm:$0xff] }
  0xc5   : > { %800 = vmatmul.mubr.f32.gmra.mrb[24].mxu0 %v503_v55  ;;  %v531_v55 = vld [vmem:[%s5051_s15 + $0x1a0] sm:$0xff] }
  0xc6   : > { %804 = vmatprep.mubr.f32.mxu0 %v506_v56  ;;  %v534_v56 = vld [vmem:[%s5051_s15 + $0x1b8] sm:$0xff] }
  0xc9   : > { %805 = vmatmul.mubr.f32.gmra.mrb[26].mxu0 %v505_v57  ;;  %v533_v57 = vld [vmem:[%s5051_s15 + $0x1b0] sm:$0xff] }
  0xca   : > { %809 = vmatprep.mubr.f32.mxu0 %v508_v58  ;;  %v536_v58 = vld [vmem:[%s5051_s15 + $0x1c8] sm:$0xff] }
  0xcd   : > { %810 = vmatmul.mubr.f32.gmra.mrb[28].mxu0 %v507_v59  ;;  %v535_v59 = vld [vmem:[%s5051_s15 + $0x1c0] sm:$0xff] }
  0xce   : > { %814 = vmatprep.mubr.f32.mxu0 %v510_v60  ;;  %v538_v60 = vld [vmem:[%s5051_s15 + $0x1d8] sm:$0xff] }
  0xd1   : > { %815 = vmatmul.mubr.f32.gmra.mrb[30].mxu0 %v509_v61  ;;  %v537_v61 = vld [vmem:[%s5051_s15 + $0x1d0] sm:$0xff] }
  0xd2   : > { %819 = vmatprep.mubr.f32.mxu0 %v512_v62  ;;  %v540_v62 = vld [vmem:[%s5051_s15 + $0x1e8] sm:$0xff] }
  0xd5   : > { %820 = vmatmul.mubr.f32.gmra.mrb[32].mxu0 %v511_v63  ;;  %v539_v63 = vld [vmem:[%s5051_s15 + $0x1e0] sm:$0xff] }
  0xd6   : > { %824 = vmatprep.mubr.f32.mxu0 %v514_v1  ;;  %v542_v1 = vld [vmem:[%s5051_s15 + $0x1f8] sm:$0xff] }
  0xd9   : > { %825 = vmatmul.mubr.f32.gmra.mrb[34].mxu0 %v513_v5  ;;  %v541_v5 = vld [vmem:[%s5051_s15 + $0x1f0] sm:$0xff] }
  0xda   : > { %829 = vmatprep.mubr.f32.mxu0 %v516_v7  ;;  %v612_v7 = vld [vmem:[%s7437_s4 + $0x8] sm:$0xff] }
  0xdd   : > { %830 = vmatmul.mubr.f32.gmra.mrb[36].mxu0 %v515_v10  ;;  %v614_v10 = vld [vmem:[%s7437_s4 + $0x18] sm:$0xff] }
  0xde   : > { %834 = vmatprep.mubr.f32.mxu0 %v518_v13  ;;  %v4279_v13 = vpack.c.bf16 %v614_v10, %v612_v7  ;;  %v623_v7 = vld [vmem:[%s7437_s4 + $0x60] sm:$0xff]  ;;  %v625_v10 = vld [vmem:[%s7437_s4 + $0x70] sm:$0xff] }
  0xe0   : > { %4280 = vmatprep.subr.bf16.mxu1 %v4279_v13  ;;  %v628_v13 = vld [vmem:[%s7437_s4 + $0x88] sm:$0xff] }
  0xe1   : > { %835 = vmatmul.mubr.f32.gmra.mrb[38].mxu0 %v517_v16  ;;  %v5380_v16 = vstv %s545_s20 }
  0xe2   : > { %839 = vmatprep.mubr.f32.mxu0 %v520_v19  ;;  %v901_v19 = vmul.f32 %v5380_v16, %v5074_v2 }
  0xe5   : > { %840 = vmatmul.mubr.f32.gmra.mrb[40].mxu0 %v519_v22  ;;  %v613_v22 = vld [vmem:[%s7437_s4 + $0x10] sm:$0xff] }
  0xe6   : > { %844 = vmatprep.mubr.f32.mxu0 %v522_v25  ;;  %v616_v25 = vld [vmem:[%s7437_s4 + $0x28] sm:$0xff] }
  0xe9   : > { %845 = vmatmul.mubr.f32.gmra.mrb[42].mxu0 %v521_v34 }
  0xea   : > { %849 = vmatprep.mubr.f32.mxu0 %v524_v40  ;;  %v902_v40 = vmul.f32 %v5380_v16, %v5077_v3 }
  0xed   : > { %850 = vmatmul.mubr.f32.gmra.mrb[44].mxu0 %v523_v43  ;;  %v4283_v43 = vpack.c.bf16 %v618_v28, %v616_v25  ;;  %v905_v28 = vmul.f32 %v5380_v16, %v5091_v8 }
  0xee   : > { %854 = vmatprep.mubr.f32.mxu0 %v526_v48  ;;  %v615_v48 = vld [vmem:[%s7437_s4 + $0x20] sm:$0xff] }
  0xf1   : > { %855 = vmatmul.mubr.f32.gmra.mrb[46].mxu0 %v525_v49  ;;  %v617_v49 = vld [vmem:[%s7437_s4 + $0x30] sm:$0xff] }
  0xf2   : > { %859 = vmatprep.mubr.f32.mxu0 %v528_v50  ;;  %v620_v50 = vld [vmem:[%s7437_s4 + $0x48] sm:$0xff]  ;;  %v4285_v3 = vpack.c.bf16 %v617_v49, %v615_v48 }
  0xf5   : > { %860 = vmatmul.mubr.f32.gmra.mrb[48].mxu0 %v527_v51  ;;  %v622_v51 = vld [vmem:[%s7437_s4 + $0x58] sm:$0xff] }
  0xf6   : > { %864 = vmatprep.mubr.f32.mxu0 %v530_v52 }
  0xf9   : > { %865 = vmatmul.mubr.f32.gmra.mrb[50].mxu0 %v529_v53 }
  0xfa   : > { %869 = vmatprep.mubr.f32.mxu0 %v532_v54 }
  0xfd   : > { %870 = vmatmul.mubr.f32.gmra.mrb[52].mxu0 %v531_v55  ;;  %v903_v55 = vmul.f32 %v5380_v16, %v5080_v4 }
  0xfe   : > { %874 = vmatprep.mubr.f32.mxu0 %v534_v56  ;;  %v4287_v56 = vpack.c.bf16 %v622_v51, %v620_v50  ;;  %v906_v50 = vmul.f32 %v5380_v16, %v5094_v9 }
 0x101   : > { %875 = vmatmul.mubr.f32.gmra.mrb[54].mxu0 %v533_v57  ;;  %v619_v57 = vld [vmem:[%s7437_s4 + $0x40] sm:$0xff] }
 0x102   : > { %879 = vmatprep.mubr.f32.mxu0 %v536_v58  ;;  %v621_v58 = vld [vmem:[%s7437_s4 + $0x50] sm:$0xff] }
 0x105   : > { %880 = vmatmul.mubr.f32.gmra.mrb[56].mxu0 %v535_v59  ;;  %v624_v59 = vld [vmem:[%s7437_s4 + $0x68] sm:$0xff] }
 0x106   : > { %884 = vmatprep.mubr.f32.mxu0 %v538_v60  ;;  %v626_v60 = vld [vmem:[%s7437_s4 + $0x78] sm:$0xff] }
 0x109   : > { %885 = vmatmul.mubr.f32.gmra.mrb[58].mxu0 %v537_v61  ;;  %v4289_v61 = vpack.c.bf16 %v621_v58, %v619_v57  ;;  %v907_v58 = vmul.f32 %v5380_v16, %v5100_v11 }
 0x10a   : > { %889 = vmatprep.mubr.f32.mxu0 %v540_v62 }
 0x10d   : > { %890 = vmatmul.mubr.f32.gmra.mrb[60].mxu0 %v539_v63 }
 0x10e   : > { %894 = vmatprep.mubr.f32.mxu0 %v542_v1  ;;  %v904_v1 = vmul.f32 %v5380_v16, %v5085_v6 }
 0x111   : > { %895 = vmatmul.mubr.f32.gmra.mrb[62].mxu0 %v541_v5  ;;  %v4291_v5 = vpack.c.bf16 %v626_v60, %v624_v59  ;;  %v635_v60 = vld [vmem:[%s7437_s4 + $0xc0] sm:$0xff] }
 0x112   : > { %1961 = vmatprep.mubr.f32.mxu0 %v5059_v0  ;;  %v611_v0 = vld [vmem:[%s7437_s4] sm:$0xff] }
 0x113   : > { %v4281_v34 = vpack.c.bf16 %v613_v22, %v611_v0  ;;  %v4293_v0 = vpack.c.bf16 %v625_v10, %v623_v7  ;;  %v908_v7 = vmul.f32 %v5380_v16, %v5103_v12 }
 0x168   : > { %v741_v31 = vpop.f32.mrb[0].mxu0 }
 0x169   : > { %v933_v37 = vadd.f32 %v901_v19, %v741_v31  ;;  %v743_v2 = vpop.f32.mrb[1].mxu0  ;;  %v630_v19 = vld [vmem:[%s7437_s4 + $0x98] sm:$0xff] }
 0x16a   : > { %v4295_v31 = vpack.c.bf16 %v630_v19, %v628_v13  ;;  %v632_v2 = vld [vmem:[%s7437_s4 + $0xa8] sm:$0xff]  ;;  %v639_v13 = vld [vmem:[%s7437_s4 + $0xe0] sm:$0xff]  ;;  %v641_v19 = vld [vmem:[%s7437_s4 + $0xf0] sm:$0xff] }
 0x16b   : > { %1038 = vmatmul.mubr.f32.vlgmr.msra.gmra.mrb[0].mxu1 %v933_v37  ;;  %v629_v37 = vld [vmem:[%s7437_s4 + $0x90] sm:$0xff] }
 0x16c   : > { %v746_v52 = vpop.f32.mrb[2].mxu0  ;;  %1043 = vmatprep.mubr.f32.mxu1 %v4882_v46  ;;  %4282 = vmatpush1.bf16.msra.mxu1 %v4281_v34  ;;  %v627_v34 = vld [vmem:[%s7437_s4 + $0x80] sm:$0xff] }
 0x16d   : > { %v934_v53 = vadd.f32 %v902_v40, %v746_v52  ;;  %v748_v54 = vpop.f32.mrb[3].mxu0  ;;  %4284 = vmatprep.subr.bf16.mxu1 %v4283_v43  ;;  %v634_v40 = vld [vmem:[%s7437_s4 + $0xb8] sm:$0xff]  ;;  %v4297_v43 = vpack.c.bf16 %v629_v37, %v627_v34  ;;  %v631_v52 = vld [vmem:[%s7437_s4 + $0xa0] sm:$0xff] }
 0x16e   : > { %v4299_v51 = vpack.c.bf16 %v634_v40, %v632_v2  ;;  %v638_v54 = vld [vmem:[%s7437_s4 + $0xd8] sm:$0xff]  ;;  %v643_v37 = vld [vmem:[%s7437_s4 + $0x100] sm:$0xff]  ;;  %v645_v2 = vld [vmem:[%s7437_s4 + $0x110] sm:$0xff] }
 0x16f   : > { %1044 = vmatmul.mubr.f32.gmra.mrb[2].mxu1 %v934_v53  ;;  %v636_v53 = vld [vmem:[%s7437_s4 + $0xc8] sm:$0xff] }
 0x170   : > { %v751_v4 = vpop.f32.mrb[4].mxu0  ;;  %1049 = vmatprep.mubr.f32.mxu1 %v4882_v46  ;;  %4286 = vmatpush1.bf16.msra.mxu1 %v4285_v3  ;;  %v633_v3 = vld [vmem:[%s7437_s4 + $0xb0] sm:$0xff]  ;;  %v4303_v59 = vpack.c.bf16 %v638_v54, %v636_v53  ;;  %v648_v40 = vld [vmem:[%s7437_s4 + $0x128] sm:$0xff]  ;;  %v654_v54 = vld [vmem:[%s7437_s4 + $0x158] sm:$0xff] }
 0x171   : > { %v935_v62 = vadd.f32 %v903_v55, %v751_v4  ;;  %v753_v63 = vpop.f32.mrb[5].mxu0  ;;  %4288 = vmatprep.subr.bf16.mxu1 %v4287_v56  ;;  %v4301_v55 = vpack.c.bf16 %v633_v3, %v631_v52  ;;  %v637_v4 = vld [vmem:[%s7437_s4 + $0xd0] sm:$0xff]  ;;  %v647_v52 = vld [vmem:[%s7437_s4 + $0x120] sm:$0xff]  ;;  %v652_v53 = vld [vmem:[%s7437_s4 + $0x148] sm:$0xff] }
 0x172   : > { %v4305_v63 = vpack.c.bf16 %v637_v4, %v635_v60  ;;  %v649_v3 = vld [vmem:[%s7437_s4 + $0x130] sm:$0xff]  ;;  %v656_v4 = vld [vmem:[%s7437_s4 + $0x168] sm:$0xff] }
 0x173   : > { %1050 = vmatmul.mubr.f32.gmra.mrb[4].mxu1 %v935_v62  ;;  %v642_v62 = vld [vmem:[%s7437_s4 + $0xf8] sm:$0xff]  ;;  %v653_v60 = vld [vmem:[%s7437_s4 + $0x150] sm:$0xff] }
 0x174   : > { %v756_v6 = vpop.f32.mrb[6].mxu0  ;;  %1055 = vmatprep.mubr.f32.mxu1 %v4882_v46  ;;  %4290 = vmatpush1.bf16.msra.mxu1 %v4289_v61  ;;  %v640_v61 = vld [vmem:[%s7437_s4 + $0xe8] sm:$0xff] }
 0x175   : > { %v936_v22 = vadd.f32 %v904_v1, %v756_v6  ;;  %v758_v25 = vpop.f32.mrb[7].mxu0  ;;  %4292 = vmatprep.subr.bf16.mxu1 %v4291_v5  ;;  %v4307_v10 = vpack.c.bf16 %v642_v62, %v640_v61  ;;  %v644_v6 = vld [vmem:[%s7437_s4 + $0x108] sm:$0xff]  ;;  %v658_v61 = vld [vmem:[%s7437_s4 + $0x178] sm:$0xff] }
 0x177   : > { %1056 = vmatmul.mubr.f32.gmra.mrb[6].mxu1 %v936_v22  ;;  %v4309_v22 = vpack.c.bf16 %v641_v19, %v639_v13  ;;  %v660_v13 = vld [vmem:[%s7437_s4 + $0x188] sm:$0xff]  ;;  %v662_v19 = vld [vmem:[%s7437_s4 + $0x198] sm:$0xff] }
 0x178   : > { %v761_v8 = vpop.f32.mrb[8].mxu0  ;;  %1061 = vmatprep.mubr.f32.mxu1 %v4882_v46  ;;  %4294 = vmatpush1.bf16.msra.mxu1 %v4293_v0  ;;  %v646_v0 = vld [vmem:[%s7437_s4 + $0x118] sm:$0xff] }
 0x179   : > { %v937_v48 = vadd.f32 %v905_v28, %v761_v8  ;;  %v763_v49 = vpop.f32.mrb[9].mxu0  ;;  %4296 = vmatprep.subr.bf16.mxu1 %v4295_v31  ;;  %v909_v31 = vmul.f32 %v5380_v16, %v5109_v14  ;;  %v4311_v34 = vpack.c.bf16 %v646_v0, %v644_v6  ;;  %v650_v8 = vld [vmem:[%s7437_s4 + $0x138] sm:$0xff] }
 0x17b   : > { %1062 = vmatmul.mubr.f32.gmra.mrb[8].mxu1 %v937_v48 }
 0x17c   : > { %v766_v9 = vpop.f32.mrb[10].mxu0  ;;  %1067 = vmatprep.mubr.f32.mxu1 %v4882_v46  ;;  %4298 = vmatpush1.bf16.msra.mxu1 %v4297_v43  ;;  %v4313_v43 = vpack.c.bf16 %v645_v2, %v643_v37  ;;  %v666_v37 = vld [vmem:[%s7437_s4 + $0x1b8] sm:$0xff] }
 0x17d   : > { %v938_v56 = vadd.f32 %v906_v50, %v766_v9  ;;  %v768_v57 = vpop.f32.mrb[11].mxu0  ;;  %4300 = vmatprep.subr.bf16.mxu1 %v4299_v51  ;;  %v910_v50 = vmul.f32 %v5380_v16, %v5112_v15  ;;  %v4315_v51 = vpack.c.bf16 %v650_v8, %v648_v40  ;;  %v4317_v9 = vpack.c.bf16 %v649_v3, %v647_v52 }
 0x17e   : > { %v911_v57 = vmul.f32 %v5380_v16, %v5118_v17 }
 0x17f   : > { %1068 = vmatmul.mubr.f32.gmra.mrb[10].mxu1 %v938_v56 }
 0x180   : > { %v771_v11 = vpop.f32.mrb[12].mxu0  ;;  %1073 = vmatprep.mubr.f32.mxu1 %v4882_v46  ;;  %4302 = vmatpush1.bf16.msra.mxu1 %v4301_v55 }
 0x181   : > { %v939_v1 = vadd.f32 %v907_v58, %v771_v11  ;;  %v773_v5 = vpop.f32.mrb[13].mxu0  ;;  %4304 = vmatprep.subr.bf16.mxu1 %v4303_v59  ;;  %v4319_v58 = vpack.c.bf16 %v654_v54, %v652_v53  ;;  %v651_v59 = vld [vmem:[%s7437_s4 + $0x140] sm:$0xff]  ;;  %v915_v54 = vmul.f32 %v5380_v16, %v5136_v23  ;;  %v916_v23 = vmul.f32 %v5380_v16, %v5139_v24 }
 0x182   : > { %v4321_v62 = vpack.c.bf16 %v653_v60, %v651_v59  ;;  %v4323_v5 = vpack.c.bf16 %v658_v61, %v656_v4  ;;  %v918_v24 = vmul.f32 %v5380_v16, %v5148_v27 }
 0x183   : > { %1074 = vmatmul.mubr.f32.gmra.mrb[12].mxu1 %v939_v1  ;;  %v912_v1 = vmul.f32 %v5380_v16, %v5121_v18 }
 0x184   : > { %v776_v12 = vpop.f32.mrb[14].mxu0  ;;  %1079 = vmatprep.mubr.f32.mxu1 %v4882_v46  ;;  %4306 = vmatpush1.bf16.msra.mxu1 %v4305_v63 }
 0x185   : > { %v940_v25 = vadd.f32 %v908_v7, %v776_v12  ;;  %v778_v28 = vpop.f32.mrb[15].mxu0  ;;  %4308 = vmatprep.subr.bf16.mxu1 %v4307_v10  ;;  %v655_v7 = vld [vmem:[%s7437_s4 + $0x160] sm:$0xff]  ;;  %v657_v10 = vld [vmem:[%s7437_s4 + $0x170] sm:$0xff] }
 0x186   : > { %v4325_v6 = vpack.c.bf16 %v657_v10, %v655_v7  ;;  %v659_v28 = vld [vmem:[%s7437_s4 + $0x180] sm:$0xff]  ;;  %v919_v10 = vmul.f32 %v5380_v16, %v5154_v29 }
 0x187   : > { %1080 = vmatmul.mubr.f32.gmra.mrb[14].mxu1 %v940_v25  ;;  %v4327_v25 = vpack.c.bf16 %v662_v19, %v660_v13 }
 0x188   : > { %v781_v14 = vpop.f32.mrb[16].mxu0  ;;  %1085 = vmatprep.mubr.f32.mxu1 %v4882_v46  ;;  %4310 = vmatpush1.bf16.msra.mxu1 %v4309_v22  ;;  %v913_v22 = vmul.f32 %v5380_v16, %v5127_v20 }
 0x189   : > { %v941_v48 = vadd.f32 %v909_v31, %v781_v14  ;;  %v783_v49 = vpop.f32.mrb[17].mxu0  ;;  %4312 = vmatprep.subr.bf16.mxu1 %v4311_v34  ;;  %v661_v31 = vld [vmem:[%s7437_s4 + $0x190] sm:$0xff]  ;;  %v664_v34 = vld [vmem:[%s7437_s4 + $0x1a8] sm:$0xff]  ;;  %v914_v14 = vmul.f32 %v5380_v16, %v5130_v21 }
 0x18a   : > { %v4329_v2 = vpack.c.bf16 %v661_v31, %v659_v28  ;;  %v665_v49 = vld [vmem:[%s7437_s4 + $0x1b0] sm:$0xff]  ;;  %v922_v28 = vmul.f32 %v5380_v16, %v5166_v33  ;;  %v671_v33 = vld [vmem:[%s7437_s4 + $0x1e0] sm:$0xff] }
 0x18b   : > { %1086 = vmatmul.mubr.f32.gmra.mrb[16].mxu1 %v941_v48  ;;  %v663_v48 = vld [vmem:[%s7437_s4 + $0x1a0] sm:$0xff] }
 0x18c   : > { %v786_v15 = vpop.f32.mrb[18].mxu0  ;;  %1091 = vmatprep.mubr.f32.mxu1 %v4882_v46  ;;  %4314 = vmatpush1.bf16.msra.mxu1 %v4313_v43  ;;  %v4331_v43 = vpack.c.bf16 %v666_v37, %v664_v34  ;;  %v4333_v52 = vpack.c.bf16 %v665_v49, %v663_v48  ;;  %v923_v37 = vmul.f32 %v5380_v16, %v5172_v35 }
 0x18d   : > { %v942_v55 = vadd.f32 %v910_v50, %v786_v15  ;;  %v788_v56 = vpop.f32.mrb[19].mxu0  ;;  %4316 = vmatprep.subr.bf16.mxu1 %v4315_v51  ;;  %v668_v50 = vld [vmem:[%s7437_s4 + $0x1c8] sm:$0xff]  ;;  %v670_v51 = vld [vmem:[%s7437_s4 + $0x1d8] sm:$0xff]  ;;  %v924_v48 = vmul.f32 %v5380_v16, %v5175_v36  ;;  %v926_v36 = vmul.f32 %v5380_v16, %v5184_v39 }
 0x18e   : > { %v4335_v15 = vpack.c.bf16 %v670_v51, %v668_v50 }
 0x18f   : > { %1092 = vmatmul.mubr.f32.gmra.mrb[18].mxu1 %v942_v55  ;;  %v669_v55 = vld [vmem:[%s7437_s4 + $0x1d0] sm:$0xff] }
 0x190   : > { %v791_v17 = vpop.f32.mrb[20].mxu0  ;;  %1097 = vmatprep.mubr.f32.mxu1 %v4882_v46  ;;  %4318 = vmatpush1.bf16.msra.mxu1 %v4317_v9  ;;  %v667_v9 = vld [vmem:[%s7437_s4 + $0x1c0] sm:$0xff] }
 0x191   : > { %v943_v11 = vadd.f32 %v911_v57, %v791_v17  ;;  %v793_v63 = vpop.f32.mrb[21].mxu0  ;;  %4320 = vmatprep.subr.bf16.mxu1 %v4319_v58  ;;  %v4337_v57 = vpack.c.bf16 %v669_v55, %v667_v9  ;;  %v917_v17 = vmul.f32 %v5380_v16, %v5145_v26  ;;  %v927_v55 = vmul.f32 %v5380_v16, %v5190_v41 }
 0x193   : > { %1098 = vmatmul.mubr.f32.gmra.mrb[20].mxu1 %v943_v11 }
 0x194   : > { %v796_v18 = vpop.f32.mrb[22].mxu0  ;;  %1103 = vmatprep.mubr.f32.mxu1 %v4882_v46  ;;  %4322 = vmatpush1.bf16.msra.mxu1 %v4321_v62 }
 0x195   : > { %v944_v0 = vadd.f32 %v912_v1, %v796_v18  ;;  %v798_v12 = vpop.f32.mrb[23].mxu0  ;;  %4324 = vmatprep.subr.bf16.mxu1 %v4323_v5  ;;  %v920_v18 = vmul.f32 %v5380_v16, %v5157_v30 }
 0x196   : > { %v921_v12 = vmul.f32 %v5380_v16, %v5163_v32  ;;  %v672_v32 = vld [vmem:[%s7437_s4 + $0x1e8] sm:$0xff] }
 0x197   : > { %1104 = vmatmul.mubr.f32.gmra.mrb[22].mxu1 %v944_v0 }
 0x198   : > { %v801_v20 = vpop.f32.mrb[24].mxu0  ;;  %1109 = vmatprep.mubr.f32.mxu1 %v4882_v46  ;;  %4326 = vmatpush1.bf16.msra.mxu1 %v4325_v6 }
 0x199   : > { %v945_v40 = vadd.f32 %v913_v22, %v801_v20  ;;  %v803_v8 = vpop.f32.mrb[25].mxu0  ;;  %4328 = vmatprep.subr.bf16.mxu1 %v4327_v25  ;;  %v674_v20 = vld [vmem:[%s7437_s4 + $0x1f8] sm:$0xff] }
 0x19b   : > { %1110 = vmatmul.mubr.f32.gmra.mrb[24].mxu1 %v945_v40  ;;  %v673_v40 = vld [vmem:[%s7437_s4 + $0x1f0] sm:$0xff] }
 0x19c   : > { %v806_v21 = vpop.f32.mrb[26].mxu0  ;;  %1115 = vmatprep.mubr.f32.mxu1 %v4882_v46  ;;  %4330 = vmatpush1.bf16.msra.mxu1 %v4329_v2  ;;  %v4339_v2 = vpack.c.bf16 %v674_v20, %v672_v32  ;;  %v4341_v35 = vpack.c.bf16 %v673_v40, %v671_v33 }
 0x19d   : > { %v946_v3 = vadd.f32 %v914_v14, %v806_v21  ;;  %v808_v53 = vpop.f32.mrb[27].mxu0  ;;  %4332 = vmatprep.subr.bf16.mxu1 %v4331_v43  ;;  %v925_v21 = vmul.f32 %v5380_v16, %v5181_v38 }
 0x19f   : > { %1116 = vmatmul.mubr.f32.gmra.mrb[26].mxu1 %v946_v3 }
 0x1a0   : > { %v811_v56 = vpop.f32.mrb[28].mxu0  ;;  %1121 = vmatprep.mubr.f32.mxu1 %v4882_v46  ;;  %4334 = vmatpush1.bf16.msra.mxu1 %v4333_v52 }
 0x1a1   : > { %v947_v58 = vadd.f32 %v915_v54, %v811_v56  ;;  %v813_v59 = vpop.f32.mrb[29].mxu0  ;;  %4336 = vmatprep.subr.bf16.mxu1 %v4335_v15 }
 0x1a3   : > { %1122 = vmatmul.mubr.f32.gmra.mrb[28].mxu1 %v947_v58  ;;  %v928_v58 = vmul.f32 %v5380_v16, %v5193_v42 }
 0x1a4   : > { %v816_v60 = vpop.f32.mrb[30].mxu0  ;;  %1127 = vmatprep.mubr.f32.mxu1 %v4882_v46  ;;  %4338 = vmatpush1.bf16.msra.mxu1 %v4337_v57 }
 0x1a5   : > { %v948_v4 = vadd.f32 %v916_v23, %v816_v60  ;;  %v818_v61 = vpop.f32.mrb[31].mxu0  ;;  %4340 = vmatprep.subr.bf16.mxu1 %v4339_v2  ;;  %v929_v60 = vmul.f32 %v5380_v16, %v5199_v44 }
 0x1a7   : > { %1128 = vmatmul.mubr.f32.gmra.mrb[30].mxu1 %v948_v4 }
 0x1a8   : > { %v821_v62 = vpop.f32.mrb[32].mxu0  ;;  %1133 = vmatprep.mubr.f32.mxu1 %v4882_v46  ;;  %4342 = vmatpush1.bf16.msra.mxu1 %v4341_v35 }
 0x1a9   : > { %v949_v11 = vadd.f32 %v917_v17, %v821_v62  ;;  %v823_v63 = vpop.f32.mrb[33].mxu0  ;;  %v930_v17 = vmul.f32 %v5380_v16, %v5202_v45 }
 0x1aa   : > { %v931_v63 = vmul.f32 %v5380_v16, %v5208_v47 }
 0x1ab   : > { %1134 = vmatmul.mubr.f32.gmra.mrb[32].mxu1 %v949_v11 }
 0x1ac   : > { %v826_v1 = vpop.f32.mrb[34].mxu0  ;;  %1139 = vmatprep.mubr.f32.mxu1 %v4882_v46 }
 0x1ad   : > { %v950_v5 = vadd.f32 %v918_v24, %v826_v1  ;;  %v828_v7 = vpop.f32.mrb[35].mxu0 }
 0x1af   : > { %1140 = vmatmul.mubr.f32.gmra.mrb[34].mxu1 %v950_v5  ;;  %v4725_v5 = vld [vmem:[%s5071_s13 + $0xf8] sm:$0xff] }
 0x1b0   : > { %v831_v26 = vpop.f32.mrb[36].mxu0  ;;  %1145 = vmatprep.mubr.f32.mxu1 %v4882_v46  ;;  %v932_v7 = vmul.f32 %v4725_v5, %v5380_v16  ;;  %v5674_v16 = vld [vmem:[%s7438_s5 + $0x8] sm:$0xff] }
 0x1b1   : > { %v951_v13 = vadd.f32 %v919_v10, %v831_v26  ;;  %v833_v19 = vpop.f32.mrb[37].mxu0 }
 0x1b3   : > { %1146 = vmatmul.mubr.f32.gmra.mrb[36].mxu1 %v951_v13  ;;  %v965_v13 = vlaneseq }
 0x1b4   : > { %v836_v27 = vpop.f32.mrb[38].mxu0  ;;  %1151 = vmatprep.mubr.f32.mxu1 %v4882_v46 }
 0x1b5   : > { %v952_v6 = vadd.f32 %v920_v18, %v836_v27  ;;  %v838_v0 = vpop.f32.mrb[39].mxu0  ;;  %v5663_v19 = vshrl.u32 %v965_v13, 7  ;;  %v5669_v18 = vld [vmem:[%s7438_s5] sm:$0xff] }
 0x1b7   : > { %1152 = vmatmul.mubr.f32.gmra.mrb[38].mxu1 %v952_v6  ;;  %7479 = vst [vmem:[#allocation11_spill] sm:$0xff] %v5663_v19  ;;  %v967_v47 = vsub.s32 0, %v5663_v19 }
 0x1b8   : > { %v841_v29 = vpop.f32.mrb[40].mxu0  ;;  %1157 = vmatprep.mubr.f32.mxu1 %v4882_v46 }
 0x1b9   : > { %v953_v22 = vadd.f32 %v921_v12, %v841_v29  ;;  %v843_v25 = vpop.f32.mrb[41].mxu0  ;;  %v5680_v27 = vrot.slane %v5674_v16, %v967_v47 }
 0x1bb   : > { %1158 = vmatmul.mubr.f32.gmra.mrb[40].mxu1 %v953_v22 }
 0x1bc   : > { %v846_v30 = vpop.f32.mrb[42].mxu0  ;;  %1163 = vmatprep.mubr.f32.mxu1 %v4882_v46 }
 0x1bd   : > { %v954_v31 = vadd.f32 %v922_v28, %v846_v30  ;;  %v848_v34 = vpop.f32.mrb[43].mxu0 }
 0x1bf   : > { %1164 = vmatmul.mubr.f32.gmra.mrb[42].mxu1 %v954_v31 }
 0x1c0   : > { %v851_v8 = vpop.f32.mrb[44].mxu0  ;;  %1169 = vmatprep.mubr.f32.mxu1 %v4882_v46 }
 0x1c1   : > { %v955_v14 = vadd.f32 %v923_v37, %v851_v8  ;;  %v853_v43 = vpop.f32.mrb[45].mxu0 }
 0x1c3   : > { %1170 = vmatmul.mubr.f32.gmra.mrb[44].mxu1 %v955_v14 }
 0x1c4   : > { %v856_v49 = vpop.f32.mrb[46].mxu0  ;;  %1175 = vmatprep.mubr.f32.mxu1 %v4882_v46 }
 0x1c5   : > { %v956_v50 = vadd.f32 %v924_v48, %v856_v49  ;;  %v858_v51 = vpop.f32.mrb[47].mxu0 }
 0x1c7   : > { %1176 = vmatmul.mubr.f32.gmra.mrb[46].mxu1 %v956_v50 }
 0x1c8   : > { %v861_v52 = vpop.f32.mrb[48].mxu0  ;;  %1181 = vmatprep.mubr.f32.mxu1 %v4882_v46 }
 0x1c9   : > { %v957_v3 = vadd.f32 %v925_v21, %v861_v52  ;;  %v863_v53 = vpop.f32.mrb[49].mxu0 }
 0x1cb   : > { %1182 = vmatmul.mubr.f32.gmra.mrb[48].mxu1 %v957_v3 }
 0x1cc   : > { %v866_v54 = vpop.f32.mrb[50].mxu0  ;;  %1187 = vmatprep.mubr.f32.mxu1 %v4882_v46 }
 0x1cd   : > { %v958_v15 = vadd.f32 %v926_v36, %v866_v54  ;;  %v868_v9 = vpop.f32.mrb[51].mxu0 }
 0x1cf   : > { %1188 = vmatmul.mubr.f32.gmra.mrb[50].mxu1 %v958_v15 }
 0x1d0   : > { %v871_v38 = vpop.f32.mrb[52].mxu0  ;;  %1193 = vmatprep.mubr.f32.mxu1 %v4882_v46 }
 0x1d1   : > { %v959_v56 = vadd.f32 %v927_v55, %v871_v38  ;;  %v873_v57 = vpop.f32.mrb[53].mxu0 }
 0x1d3   : > { %1194 = vmatmul.mubr.f32.gmra.mrb[52].mxu1 %v959_v56 }
 0x1d4   : > { %v876_v39 = vpop.f32.mrb[54].mxu0  ;;  %1199 = vmatprep.mubr.f32.mxu1 %v4882_v46 }
 0x1d5   : > { %v960_v59 = vadd.f32 %v928_v58, %v876_v39  ;;  %v878_v23 = vpop.f32.mrb[55].mxu0 }
 0x1d7   : > { %1200 = vmatmul.mubr.f32.gmra.mrb[54].mxu1 %v960_v59 }
 0x1d8   : > { %v881_v41 = vpop.f32.mrb[56].mxu0  ;;  %1205 = vmatprep.mubr.f32.mxu1 %v4882_v46 }
 0x1d9   : > { %v961_v4 = vadd.f32 %v929_v60, %v881_v41  ;;  %v883_v61 = vpop.f32.mrb[57].mxu0 }
 0x1db   : > { %1206 = vmatmul.mubr.f32.gmra.mrb[56].mxu1 %v961_v4 }
 0x1dc   : > { %v886_v42 = vpop.f32.mrb[58].mxu0  ;;  %1211 = vmatprep.mubr.f32.mxu1 %v4882_v46 }
 0x1dd   : > { %v962_v62 = vadd.f32 %v930_v17, %v886_v42  ;;  %v888_v11 = vpop.f32.mrb[59].mxu0 }
 0x1df   : > { %1212 = vmatmul.mubr.f32.gmra.mrb[58].mxu1 %v962_v62 }
 0x1e0   : > { %v891_v44 = vpop.f32.mrb[60].mxu0  ;;  %1217 = vmatprep.mubr.f32.mxu1 %v4882_v46 }
 0x1e1   : > { %v963_v24 = vadd.f32 %v931_v63, %v891_v44  ;;  %v893_v1 = vpop.f32.mrb[61].mxu0 }
 0x1e3   : > { %1218 = vmatmul.mubr.f32.gmra.mrb[60].mxu1 %v963_v24 }
 0x1e4   : > { %v896_v45 = vpop.f32.mrb[62].mxu0  ;;  %1223 = vmatprep.mubr.f32.mxu1 %v4882_v46  ;;  %v5677_v46 = vrot.slane %v5669_v18, %v967_v47 }
 0x1e5   : > { %v964_v10 = vadd.f32 %v932_v7, %v896_v45  ;;  %v898_v26 = vpop.f32.mrb[63].mxu0 }
 0x1e7   : > { %1224 = vmatmul.mubr.f32.gmra.mrb[62].mxu1 %v964_v10 }
 0x23e   : > { %v1039_v6 = vpop.f32.mrb[0].mxu1 }
 0x23f   : > { %v1040_v0 = vadd.f32 %v1039_v6, %v5677_v46  ;;  %v1041_v12 = vpop.f32.mrb[1].mxu1 }
 0x240   : > { %v1042_v29 = vadd.f32 %v1041_v12, %v5680_v27 }
 0x241   : > { %v1230_v28 = vmax.f32 %v1040_v0, 0.0 }
 0x242   : > { %v1231_v22 = vmax.f32 %v1042_v29, 0.0  ;;  %v1045_v25 = vpop.f32.mrb[2].mxu1 }
 0x243   : > { %v1046_v30 = vadd.f32 %v1045_v25, %v5677_v46  ;;  %v1047_v31 = vpop.f32.mrb[3].mxu1 }
 0x244   : > { %v1048_v34 = vadd.f32 %v1047_v31, %v5680_v27  ;;  %1366 = vmatprep.mubr.f32.mxu1 %v1231_v22 }
 0x245   : > { %1367 = vmatmul.mubr.f32.vlgmr.msra.gmra.mrb[64].mxu1 %v1230_v28  ;;  %v1232_v20 = vmax.f32 %v1046_v30, 0.0 }
 0x246   : > { %v1233_v37 = vmax.f32 %v1048_v34, 0.0  ;;  %v1051_v32 = vpop.f32.mrb[4].mxu1 }
 0x247   : > { %v1052_v2 = vadd.f32 %v1051_v32, %v5677_v46  ;;  %v1053_v33 = vpop.f32.mrb[5].mxu1 }
 0x248   : > { %v1054_v40 = vadd.f32 %v1053_v33, %v5680_v27  ;;  %1372 = vmatprep.mubr.f32.mxu1 %v1233_v37 }
 0x249   : > { %1373 = vmatmul.mubr.f32.gmra.mrb[66].mxu1 %v1232_v20  ;;  %v1234_v14 = vmax.f32 %v1052_v2, 0.0 }
 0x24a   : > { %v1235_v8 = vmax.f32 %v1054_v40, 0.0  ;;  %v1057_v35 = vpop.f32.mrb[6].mxu1 }
 0x24b   : > { %v1058_v43 = vadd.f32 %v1057_v35, %v5677_v46  ;;  %v1059_v48 = vpop.f32.mrb[7].mxu1 }
 0x24c   : > { %v1060_v49 = vadd.f32 %v1059_v48, %v5680_v27  ;;  %1378 = vmatprep.mubr.f32.mxu1 %v1235_v8 }
 0x24d   : > { %1379 = vmatmul.mubr.f32.gmra.mrb[68].mxu1 %v1234_v14  ;;  %v1236_v21 = vmax.f32 %v1058_v43, 0.0 }
 0x24e   : > { %v1237_v50 = vmax.f32 %v1060_v49, 0.0  ;;  %v1063_v51 = vpop.f32.mrb[8].mxu1 }
 0x24f   : > { %v1064_v52 = vadd.f32 %v1063_v51, %v5677_v46  ;;  %v1065_v3 = vpop.f32.mrb[9].mxu1 }
 0x250   : > { %v1066_v53 = vadd.f32 %v1065_v3, %v5680_v27  ;;  %1384 = vmatprep.mubr.f32.mxu1 %v1237_v50 }
 0x251   : > { %1385 = vmatmul.mubr.f32.gmra.mrb[70].mxu1 %v1236_v21  ;;  %v1238_v15 = vmax.f32 %v1064_v52, 0.0 }
 0x252   : > { %v1239_v36 = vmax.f32 %v1066_v53, 0.0  ;;  %v1069_v54 = vpop.f32.mrb[10].mxu1 }
 0x253   : > { %v1070_v9 = vadd.f32 %v1069_v54, %v5677_v46  ;;  %v1071_v55 = vpop.f32.mrb[11].mxu1 }
 0x254   : > { %v1072_v38 = vadd.f32 %v1071_v55, %v5680_v27  ;;  %1390 = vmatprep.mubr.f32.mxu1 %v1239_v36 }
 0x255   : > { %1391 = vmatmul.mubr.f32.gmra.mrb[72].mxu1 %v1238_v15  ;;  %v1240_v58 = vmax.f32 %v1070_v9, 0.0 }
 0x256   : > { %v1241_v56 = vmax.f32 %v1072_v38, 0.0  ;;  %v1075_v57 = vpop.f32.mrb[12].mxu1 }
 0x257   : > { %v1076_v39 = vadd.f32 %v1075_v57, %v5677_v46  ;;  %v1077_v59 = vpop.f32.mrb[13].mxu1 }
 0x258   : > { %v1078_v23 = vadd.f32 %v1077_v59, %v5680_v27  ;;  %1396 = vmatprep.mubr.f32.mxu1 %v1241_v56 }
 0x259   : > { %1397 = vmatmul.mubr.f32.gmra.mrb[74].mxu1 %v1240_v58  ;;  %v1242_v4 = vmax.f32 %v1076_v39, 0.0 }
 0x25a   : > { %v1243_v60 = vmax.f32 %v1078_v23, 0.0  ;;  %v1081_v41 = vpop.f32.mrb[14].mxu1 }
 0x25b   : > { %v1082_v61 = vadd.f32 %v1081_v41, %v5677_v46  ;;  %v1083_v17 = vpop.f32.mrb[15].mxu1 }
 0x25c   : > { %v1084_v42 = vadd.f32 %v1083_v17, %v5680_v27  ;;  %1402 = vmatprep.mubr.f32.mxu1 %v1243_v60 }
 0x25d   : > { %1403 = vmatmul.mubr.f32.gmra.mrb[76].mxu1 %v1242_v4  ;;  %v1244_v63 = vmax.f32 %v1082_v61, 0.0 }
 0x25e   : > { %v1245_v62 = vmax.f32 %v1084_v42, 0.0  ;;  %v1087_v11 = vpop.f32.mrb[16].mxu1 }
 0x25f   : > { %v1088_v44 = vadd.f32 %v1087_v11, %v5677_v46  ;;  %v1089_v24 = vpop.f32.mrb[17].mxu1 }
 0x260   : > { %v1090_v1 = vadd.f32 %v1089_v24, %v5680_v27  ;;  %1408 = vmatprep.mubr.f32.mxu1 %v1245_v62 }
 0x261   : > { %1409 = vmatmul.mubr.f32.gmra.mrb[78].mxu1 %v1244_v63  ;;  %v1246_v45 = vmax.f32 %v1088_v44, 0.0 }
 0x262   : > { %v1247_v5 = vmax.f32 %v1090_v1, 0.0  ;;  %v1093_v7 = vpop.f32.mrb[18].mxu1 }
 0x263   : > { %v1094_v10 = vadd.f32 %v1093_v7, %v5677_v46  ;;  %v1095_v26 = vpop.f32.mrb[19].mxu1 }
 0x264   : > { %v1096_v13 = vadd.f32 %v1095_v26, %v5680_v27  ;;  %1414 = vmatprep.mubr.f32.mxu1 %v1247_v5 }
 0x265   : > { %1415 = vmatmul.mubr.f32.gmra.mrb[80].mxu1 %v1246_v45  ;;  %v1248_v0 = vmax.f32 %v1094_v10, 0.0 }
 0x266   : > { %v1249_v47 = vmax.f32 %v1096_v13, 0.0  ;;  %v1099_v6 = vpop.f32.mrb[20].mxu1 }
 0x267   : > { %v1100_v12 = vadd.f32 %v1099_v6, %v5677_v46  ;;  %v1101_v29 = vpop.f32.mrb[21].mxu1 }
 0x268   : > { %v1102_v22 = vadd.f32 %v1101_v29, %v5680_v27  ;;  %1420 = vmatprep.mubr.f32.mxu1 %v1249_v47 }
 0x269   : > { %1421 = vmatmul.mubr.f32.gmra.mrb[82].mxu1 %v1248_v0  ;;  %v1250_v30 = vmax.f32 %v1100_v12, 0.0 }
 0x26a   : > { %v1251_v25 = vmax.f32 %v1102_v22, 0.0  ;;  %v1105_v28 = vpop.f32.mrb[22].mxu1 }
 0x26b   : > { %v1106_v31 = vadd.f32 %v1105_v28, %v5677_v46  ;;  %v1107_v34 = vpop.f32.mrb[23].mxu1 }
 0x26c   : > { %v1108_v37 = vadd.f32 %v1107_v34, %v5680_v27  ;;  %1426 = vmatprep.mubr.f32.mxu1 %v1251_v25 }
 0x26d   : > { %1427 = vmatmul.mubr.f32.gmra.mrb[84].mxu1 %v1250_v30  ;;  %v1252_v2 = vmax.f32 %v1106_v31, 0.0 }
 0x26e   : > { %v1253_v32 = vmax.f32 %v1108_v37, 0.0  ;;  %v1111_v20 = vpop.f32.mrb[24].mxu1 }
 0x26f   : > { %v1112_v33 = vadd.f32 %v1111_v20, %v5677_v46  ;;  %v1113_v40 = vpop.f32.mrb[25].mxu1 }
 0x270   : > { %v1114_v8 = vadd.f32 %v1113_v40, %v5680_v27  ;;  %1432 = vmatprep.mubr.f32.mxu1 %v1253_v32 }
 0x271   : > { %1433 = vmatmul.mubr.f32.gmra.mrb[86].mxu1 %v1252_v2  ;;  %v1254_v43 = vmax.f32 %v1112_v33, 0.0 }
 0x272   : > { %v1255_v35 = vmax.f32 %v1114_v8, 0.0  ;;  %v1117_v14 = vpop.f32.mrb[26].mxu1 }
 0x273   : > { %v1118_v48 = vadd.f32 %v1117_v14, %v5677_v46  ;;  %v1119_v49 = vpop.f32.mrb[27].mxu1 }
 0x274   : > { %v1120_v50 = vadd.f32 %v1119_v49, %v5680_v27  ;;  %1438 = vmatprep.mubr.f32.mxu1 %v1255_v35 }
 0x275   : > { %1439 = vmatmul.mubr.f32.gmra.mrb[88].mxu1 %v1254_v43  ;;  %v1256_v52 = vmax.f32 %v1118_v48, 0.0 }
 0x276   : > { %v1257_v51 = vmax.f32 %v1120_v50, 0.0  ;;  %v1123_v21 = vpop.f32.mrb[28].mxu1 }
 0x277   : > { %v1124_v3 = vadd.f32 %v1123_v21, %v5677_v46  ;;  %v1125_v53 = vpop.f32.mrb[29].mxu1 }
 0x278   : > { %v1126_v36 = vadd.f32 %v1125_v53, %v5680_v27  ;;  %1444 = vmatprep.mubr.f32.mxu1 %v1257_v51 }
 0x279   : > { %1445 = vmatmul.mubr.f32.gmra.mrb[90].mxu1 %v1256_v52  ;;  %v1258_v9 = vmax.f32 %v1124_v3, 0.0 }
 0x27a   : > { %v1259_v54 = vmax.f32 %v1126_v36, 0.0  ;;  %v1129_v15 = vpop.f32.mrb[30].mxu1 }
 0x27b   : > { %v1130_v55 = vadd.f32 %v1129_v15, %v5677_v46  ;;  %v1131_v38 = vpop.f32.mrb[31].mxu1 }
 0x27c   : > { %v1132_v56 = vadd.f32 %v1131_v38, %v5680_v27  ;;  %1450 = vmatprep.mubr.f32.mxu1 %v1259_v54 }
 0x27d   : > { %1451 = vmatmul.mubr.f32.gmra.mrb[92].mxu1 %v1258_v9  ;;  %v1260_v39 = vmax.f32 %v1130_v55, 0.0 }
 0x27e   : > { %v1261_v57 = vmax.f32 %v1132_v56, 0.0  ;;  %v1135_v58 = vpop.f32.mrb[32].mxu1 }
 0x27f   : > { %v1136_v59 = vadd.f32 %v1135_v58, %v5677_v46  ;;  %v1137_v23 = vpop.f32.mrb[33].mxu1 }
 0x280   : > { %v1138_v60 = vadd.f32 %v1137_v23, %v5680_v27  ;;  %1456 = vmatprep.mubr.f32.mxu1 %v1261_v57 }
 0x281   : > { %1457 = vmatmul.mubr.f32.gmra.mrb[94].mxu1 %v1260_v39  ;;  %v1262_v61 = vmax.f32 %v1136_v59, 0.0 }
 0x282   : > { %v1263_v41 = vmax.f32 %v1138_v60, 0.0  ;;  %v1141_v4 = vpop.f32.mrb[34].mxu1 }
 0x283   : > { %v1142_v17 = vadd.f32 %v1141_v4, %v5677_v46  ;;  %v1143_v42 = vpop.f32.mrb[35].mxu1 }
 0x284   : > { %v1144_v62 = vadd.f32 %v1143_v42, %v5680_v27  ;;  %1462 = vmatprep.mubr.f32.mxu1 %v1263_v41 }
 0x285   : > { %1463 = vmatmul.mubr.f32.gmra.mrb[96].mxu1 %v1262_v61  ;;  %v1264_v44 = vmax.f32 %v1142_v17, 0.0 }
 0x286   : > { %v1265_v11 = vmax.f32 %v1144_v62, 0.0  ;;  %v1147_v63 = vpop.f32.mrb[36].mxu1 }
 0x287   : > { %v1148_v24 = vadd.f32 %v1147_v63, %v5677_v46  ;;  %v1149_v1 = vpop.f32.mrb[37].mxu1 }
 0x288   : > { %v1150_v5 = vadd.f32 %v1149_v1, %v5680_v27  ;;  %1468 = vmatprep.mubr.f32.mxu1 %v1265_v11 }
 0x289   : > { %1469 = vmatmul.mubr.f32.gmra.mrb[98].mxu1 %v1264_v44  ;;  %v1266_v10 = vmax.f32 %v1148_v24, 0.0 }
 0x28a   : > { %v1267_v7 = vmax.f32 %v1150_v5, 0.0  ;;  %v1153_v45 = vpop.f32.mrb[38].mxu1 }
 0x28b   : > { %v1154_v26 = vadd.f32 %v1153_v45, %v5677_v46  ;;  %v1155_v13 = vpop.f32.mrb[39].mxu1 }
 0x28c   : > { %v1156_v47 = vadd.f32 %v1155_v13, %v5680_v27  ;;  %1474 = vmatprep.mubr.f32.mxu1 %v1267_v7 }
 0x28d   : > { %1475 = vmatmul.mubr.f32.gmra.mrb[100].mxu1 %v1266_v10  ;;  %v1268_v12 = vmax.f32 %v1154_v26, 0.0 }
 0x28e   : > { %v1269_v6 = vmax.f32 %v1156_v47, 0.0  ;;  %v1159_v0 = vpop.f32.mrb[40].mxu1 }
 0x28f   : > { %v1160_v29 = vadd.f32 %v1159_v0, %v5677_v46  ;;  %v1161_v22 = vpop.f32.mrb[41].mxu1 }
 0x290   : > { %v1162_v25 = vadd.f32 %v1161_v22, %v5680_v27  ;;  %1480 = vmatprep.mubr.f32.mxu1 %v1269_v6 }
 0x291   : > { %1481 = vmatmul.mubr.f32.gmra.mrb[102].mxu1 %v1268_v12  ;;  %v1270_v31 = vmax.f32 %v1160_v29, 0.0 }
 0x292   : > { %v1271_v28 = vmax.f32 %v1162_v25, 0.0  ;;  %v1165_v30 = vpop.f32.mrb[42].mxu1 }
 0x293   : > { %v1166_v34 = vadd.f32 %v1165_v30, %v5677_v46  ;;  %v1167_v37 = vpop.f32.mrb[43].mxu1 }
 0x294   : > { %v1168_v32 = vadd.f32 %v1167_v37, %v5680_v27  ;;  %1486 = vmatprep.mubr.f32.mxu1 %v1271_v28 }
 0x295   : > { %1487 = vmatmul.mubr.f32.gmra.mrb[104].mxu1 %v1270_v31  ;;  %v1272_v33 = vmax.f32 %v1166_v34, 0.0 }
 0x296   : > { %v1273_v20 = vmax.f32 %v1168_v32, 0.0  ;;  %v1171_v2 = vpop.f32.mrb[44].mxu1 }
 0x297   : > { %v1172_v40 = vadd.f32 %v1171_v2, %v5677_v46  ;;  %v1173_v8 = vpop.f32.mrb[45].mxu1 }
 0x298   : > { %v1174_v35 = vadd.f32 %v1173_v8, %v5680_v27  ;;  %1492 = vmatprep.mubr.f32.mxu1 %v1273_v20 }
 0x299   : > { %1493 = vmatmul.mubr.f32.gmra.mrb[106].mxu1 %v1272_v33  ;;  %v1274_v48 = vmax.f32 %v1172_v40, 0.0  ;;  %v1296_v40 = vsub.s32 1, %v5663_v19 }
 0x29a   : > { %v1275_v14 = vmax.f32 %v1174_v35, 0.0  ;;  %v1177_v43 = vpop.f32.mrb[46].mxu1 }
 0x29b   : > { %v1178_v49 = vadd.f32 %v1177_v43, %v5677_v46  ;;  %v1179_v50 = vpop.f32.mrb[47].mxu1  ;;  %v5748_v8 = vrot.slane %v5669_v18, %v1296_v40  ;;  %v5751_v35 = vrot.slane %v5674_v16, %v1296_v40 }
 0x29c   : > { %v1180_v51 = vadd.f32 %v1179_v50, %v5680_v27  ;;  %1498 = vmatprep.mubr.f32.mxu1 %v1275_v14  ;;  %v1625_v14 = vsub.s32 4, %v5663_v19 }
 0x29d   : > { %1499 = vmatmul.mubr.f32.gmra.mrb[108].mxu1 %v1274_v48  ;;  %v1276_v3 = vmax.f32 %v1178_v49, 0.0 }
 0x29e   : > { %v1277_v21 = vmax.f32 %v1180_v51, 0.0  ;;  %v1183_v52 = vpop.f32.mrb[48].mxu1  ;;  %v5757_v50 = vrot.slane %v5669_v18, %v1625_v14  ;;  %v1697_v51 = vsub.s32 5, %v5663_v19 }
 0x29f   : > { %v1184_v53 = vadd.f32 %v1183_v52, %v5677_v46  ;;  %v1185_v36 = vpop.f32.mrb[49].mxu1  ;;  %v5761_v52 = vrot.slane %v5674_v16, %v1625_v14 }
 0x2a0   : > { %v1186_v54 = vadd.f32 %v1185_v36, %v5680_v27  ;;  %1504 = vmatprep.mubr.f32.mxu1 %v1277_v21 }
 0x2a1   : > { %1505 = vmatmul.mubr.f32.gmra.mrb[110].mxu1 %v1276_v3  ;;  %v1278_v55 = vmax.f32 %v1184_v53, 0.0 }
 0x2a2   : > { %v1279_v15 = vmax.f32 %v1186_v54, 0.0  ;;  %v1189_v9 = vpop.f32.mrb[50].mxu1 }
 0x2a3   : > { %v1190_v38 = vadd.f32 %v1189_v9, %v5677_v46  ;;  %v1191_v56 = vpop.f32.mrb[51].mxu1  ;;  %v5767_v9 = vrot.slane %v5669_v18, %v1697_v51 }
 0x2a4   : > { %v1192_v57 = vadd.f32 %v1191_v56, %v5680_v27  ;;  %1510 = vmatprep.mubr.f32.mxu1 %v1279_v15  ;;  %v5771_v56 = vrot.slane %v5674_v16, %v1697_v51 }
 0x2a5   : > { %1511 = vmatmul.mubr.f32.gmra.mrb[112].mxu1 %v1278_v55  ;;  %v1280_v59 = vmax.f32 %v1190_v38, 0.0 }
 0x2a6   : > { %v1281_v58 = vmax.f32 %v1192_v57, 0.0  ;;  %v1195_v39 = vpop.f32.mrb[52].mxu1 }
 0x2a7   : > { %v1196_v23 = vadd.f32 %v1195_v39, %v5677_v46  ;;  %v1197_v60 = vpop.f32.mrb[53].mxu1 }
 0x2a8   : > { %v1198_v41 = vadd.f32 %v1197_v60, %v5680_v27  ;;  %1516 = vmatprep.mubr.f32.mxu1 %v1281_v58 }
 0x2a9   : > { %1517 = vmatmul.mubr.f32.gmra.mrb[114].mxu1 %v1280_v59  ;;  %v1282_v17 = vmax.f32 %v1196_v23, 0.0 }
 0x2aa   : > { %v1283_v4 = vmax.f32 %v1198_v41, 0.0  ;;  %v1201_v61 = vpop.f32.mrb[54].mxu1 }
 0x2ab   : > { %v1202_v42 = vadd.f32 %v1201_v61, %v5677_v46  ;;  %v1203_v62 = vpop.f32.mrb[55].mxu1 }
 0x2ac   : > { %v1204_v11 = vadd.f32 %v1203_v62, %v5680_v27  ;;  %1522 = vmatprep.mubr.f32.mxu1 %v1283_v4 }
 0x2ad   : > { %1523 = vmatmul.mubr.f32.gmra.mrb[116].mxu1 %v1282_v17  ;;  %v1284_v24 = vmax.f32 %v1202_v42, 0.0 }
 0x2ae   : > { %v1285_v63 = vmax.f32 %v1204_v11, 0.0  ;;  %v1207_v44 = vpop.f32.mrb[56].mxu1 }
 0x2af   : > { %v1208_v1 = vadd.f32 %v1207_v44, %v5677_v46  ;;  %v1209_v5 = vpop.f32.mrb[57].mxu1 }
 0x2b0   : > { %v1210_v7 = vadd.f32 %v1209_v5, %v5680_v27  ;;  %1528 = vmatprep.mubr.f32.mxu1 %v1285_v63 }
 0x2b1   : > { %1529 = vmatmul.mubr.f32.gmra.mrb[118].mxu1 %v1284_v24  ;;  %v1286_v26 = vmax.f32 %v1208_v1, 0.0 }
 0x2b2   : > { %v1287_v45 = vmax.f32 %v1210_v7, 0.0  ;;  %v1213_v10 = vpop.f32.mrb[58].mxu1 }
 0x2b3   : > { %v1214_v13 = vadd.f32 %v1213_v10, %v5677_v46  ;;  %v1215_v47 = vpop.f32.mrb[59].mxu1 }
 0x2b4   : > { %v1216_v6 = vadd.f32 %v1215_v47, %v5680_v27  ;;  %1534 = vmatprep.mubr.f32.mxu1 %v1287_v45 }
 0x2b5   : > { %1535 = vmatmul.mubr.f32.gmra.mrb[120].mxu1 %v1286_v26  ;;  %v1288_v29 = vmax.f32 %v1214_v13, 0.0 }
 0x2b6   : > { %v1289_v0 = vmax.f32 %v1216_v6, 0.0  ;;  %v1219_v12 = vpop.f32.mrb[60].mxu1 }
 0x2b7   : > { %v1220_v22 = vadd.f32 %v1219_v12, %v5677_v46  ;;  %v1221_v25 = vpop.f32.mrb[61].mxu1 }
 0x2b8   : > { %v1222_v28 = vadd.f32 %v1221_v25, %v5680_v27  ;;  %1540 = vmatprep.mubr.f32.mxu1 %v1289_v0 }
 0x2b9   : > { %1541 = vmatmul.mubr.f32.gmra.mrb[122].mxu1 %v1288_v29  ;;  %v1290_v34 = vmax.f32 %v1220_v22, 0.0 }
 0x2ba   : > { %v1291_v30 = vmax.f32 %v1222_v28, 0.0  ;;  %v1225_v31 = vpop.f32.mrb[62].mxu1 }
 0x2bb   : > { %v1226_v37 = vadd.f32 %v1225_v31, %v5677_v46  ;;  %v1227_v32 = vpop.f32.mrb[63].mxu1 }
 0x2bc   : > { %v1228_v20 = vadd.f32 %v1227_v32, %v5680_v27  ;;  %1546 = vmatprep.mubr.f32.mxu1 %v1291_v30 }
 0x2bd   : > { %1547 = vmatmul.mubr.f32.gmra.mrb[124].mxu1 %v1290_v34  ;;  %v1292_v33 = vmax.f32 %v1226_v37, 0.0 }
 0x2be   : > { %v1293_v2 = vmax.f32 %v1228_v20, 0.0 }
 0x2c0   : > { %1552 = vmatprep.mubr.f32.mxu1 %v1293_v2 }
 0x2c1   : > { %1553 = vmatmul.mubr.f32.gmra.mrb[126].mxu1 %v1292_v33 }
 0x318   : > { %v1368_v46 = vpop.f32.mrb[64].mxu1 }
 0x319   : > { %v1369_v43 = vadd.f32 %v1368_v46, %v5748_v8  ;;  %v1370_v27 = vpop.f32.mrb[65].mxu1 }
 0x31a   : > { %v1371_v48 = vadd.f32 %v1370_v27, %v5751_v35 }
 0x31b   : > { %v1559_v49 = vmax.f32 %v1369_v43, 0.0 }
 0x31c   : > { %v1560_v21 = vmax.f32 %v1371_v48, 0.0  ;;  %v1374_v3 = vpop.f32.mrb[66].mxu1 }
 0x31d   : > { %v1375_v53 = vadd.f32 %v1374_v3, %v5748_v8  ;;  %v1376_v36 = vpop.f32.mrb[67].mxu1  ;;  %v1631_v15 = vmul.f32 %v5757_v50, %v1559_v49 }
 0x31e   : > { %v1377_v54 = vadd.f32 %v1376_v36, %v5751_v35  ;;  %v1632_v38 = vmul.f32 %v5761_v52, %v1560_v21 }
 0x31f   : > { %v1561_v55 = vmax.f32 %v1375_v53, 0.0  ;;  %v5778_v18 = vadd.f32 %v5767_v9, %v1631_v15 }
 0x320   : > { %v1562_v57 = vmax.f32 %v1377_v54, 0.0  ;;  %v1380_v58 = vpop.f32.mrb[68].mxu1  ;;  %v5784_v16 = vadd.f32 %v5771_v56, %v1632_v38 }
 0x321   : > { %v1633_v39 = vmul.f32 %v5757_v50, %v1561_v55  ;;  %v1381_v59 = vadd.f32 %v1380_v58, %v5748_v8  ;;  %v1382_v23 = vpop.f32.mrb[69].mxu1 }
 0x322   : > { %v1634_v60 = vmul.f32 %v5761_v52, %v1562_v57  ;;  %v1383_v41 = vadd.f32 %v1382_v23, %v5751_v35 }
 0x323   : > { %v5781_v4 = vadd.f32 %v5767_v9, %v1633_v39  ;;  %v1563_v61 = vmax.f32 %v1381_v59, 0.0 }
 0x324   : > { %v5787_v17 = vadd.f32 %v5771_v56, %v1634_v60  ;;  %v1564_v42 = vmax.f32 %v1383_v41, 0.0  ;;  %v1386_v62 = vpop.f32.mrb[70].mxu1 }
 0x325   : > { %v4345_v11 = vpack.c.bf16 %v5781_v4, %v5778_v18  ;;  %v1387_v63 = vadd.f32 %v1386_v62, %v5748_v8  ;;  %v1388_v44 = vpop.f32.mrb[71].mxu1  ;;  %v1635_v5 = vmul.f32 %v5757_v50, %v1563_v61 }
 0x326   : > { %v1389_v24 = vadd.f32 %v1388_v44, %v5751_v35  ;;  %v4343_v1 = vpack.c.bf16 %v5787_v17, %v5784_v16  ;;  %v1636_v45 = vmul.f32 %v5761_v52, %v1564_v42 }
 0x327   : > { %v1565_v7 = vmax.f32 %v1387_v63, 0.0  ;;  %v5802_v29 = vadd.f32 %v5767_v9, %v1635_v5 }
 0x328   : > { %v1566_v10 = vmax.f32 %v1389_v24, 0.0  ;;  %v1392_v26 = vpop.f32.mrb[72].mxu1  ;;  %4344 = vmatprep.subr.bf16.mxu0 %v4343_v1  ;;  %v5808_v28 = vadd.f32 %v5771_v56, %v1636_v45 }
 0x329   : > { %v1637_v13 = vmul.f32 %v5757_v50, %v1565_v7  ;;  %v1393_v47 = vadd.f32 %v1392_v26, %v5748_v8  ;;  %v1394_v6 = vpop.f32.mrb[73].mxu1  ;;  %4346 = vmatpush1.bf16.msra.mxu0 %v4345_v11 }
 0x32a   : > { %v1638_v0 = vmul.f32 %v5761_v52, %v1566_v10  ;;  %v1395_v12 = vadd.f32 %v1394_v6, %v5751_v35 }
 0x32b   : > { %v5805_v22 = vadd.f32 %v5767_v9, %v1637_v13  ;;  %v1567_v25 = vmax.f32 %v1393_v47, 0.0 }
 0x32c   : > { %v5811_v30 = vadd.f32 %v5771_v56, %v1638_v0  ;;  %v1568_v31 = vmax.f32 %v1395_v12, 0.0  ;;  %v1398_v34 = vpop.f32.mrb[74].mxu1 }
 0x32d   : > { %v4349_v37 = vpack.c.bf16 %v5805_v22, %v5802_v29  ;;  %v1399_v32 = vadd.f32 %v1398_v34, %v5748_v8  ;;  %v1400_v20 = vpop.f32.mrb[75].mxu1  ;;  %v1639_v40 = vmul.f32 %v5757_v50, %v1567_v25 }
 0x32e   : > { %v1401_v2 = vadd.f32 %v1400_v20, %v5751_v35  ;;  %v4347_v33 = vpack.c.bf16 %v5811_v30, %v5808_v28  ;;  %v1640_v46 = vmul.f32 %v5761_v52, %v1568_v31 }
 0x32f   : > { %v1569_v14 = vmax.f32 %v1399_v32, 0.0  ;;  %v5826_v53 = vadd.f32 %v5767_v9, %v1639_v40 }
 0x330   : > { %v1570_v43 = vmax.f32 %v1401_v2, 0.0  ;;  %v1404_v27 = vpop.f32.mrb[76].mxu1  ;;  %4348 = vmatprep.subr.bf16.mxu0 %v4347_v33  ;;  %v5832_v15 = vadd.f32 %v5771_v56, %v1640_v46 }
 0x331   : > { %v1641_v48 = vmul.f32 %v5757_v50, %v1569_v14  ;;  %v1405_v49 = vadd.f32 %v1404_v27, %v5748_v8  ;;  %v1406_v51 = vpop.f32.mrb[77].mxu1  ;;  %4350 = vmatpush1.bf16.msra.mxu0 %v4349_v37 }
 0x332   : > { %v1642_v21 = vmul.f32 %v5761_v52, %v1570_v43  ;;  %v1407_v3 = vadd.f32 %v1406_v51, %v5751_v35 }
 0x333   : > { %v5829_v36 = vadd.f32 %v5767_v9, %v1641_v48  ;;  %v1571_v54 = vmax.f32 %v1405_v49, 0.0 }
 0x334   : > { %v5835_v55 = vadd.f32 %v5771_v56, %v1642_v21  ;;  %v1572_v38 = vmax.f32 %v1407_v3, 0.0  ;;  %v1410_v57 = vpop.f32.mrb[78].mxu1 }
 0x335   : > { %v4353_v58 = vpack.c.bf16 %v5829_v36, %v5826_v53  ;;  %v1411_v39 = vadd.f32 %v1410_v57, %v5748_v8  ;;  %v1412_v59 = vpop.f32.mrb[79].mxu1  ;;  %v1643_v41 = vmul.f32 %v5757_v50, %v1571_v54 }
 0x336   : > { %v1413_v23 = vadd.f32 %v1412_v59, %v5751_v35  ;;  %v4351_v60 = vpack.c.bf16 %v5835_v55, %v5832_v15  ;;  %v1644_v42 = vmul.f32 %v5761_v52, %v1572_v38 }
 0x337   : > { %v1573_v61 = vmax.f32 %v1411_v39, 0.0  ;;  %v5850_v7 = vadd.f32 %v5767_v9, %v1643_v41 }
 0x338   : > { %v1574_v62 = vmax.f32 %v1413_v23, 0.0  ;;  %v1416_v11 = vpop.f32.mrb[80].mxu1  ;;  %4352 = vmatprep.subr.bf16.mxu0 %v4351_v60  ;;  %v5856_v26 = vadd.f32 %v5771_v56, %v1644_v42 }
 0x339   : > { %v1645_v63 = vmul.f32 %v5757_v50, %v1573_v61  ;;  %v1417_v44 = vadd.f32 %v1416_v11, %v5748_v8  ;;  %v1418_v24 = vpop.f32.mrb[81].mxu1  ;;  %4354 = vmatpush1.bf16.msra.mxu0 %v4353_v58 }
 0x33a   : > { %v1646_v1 = vmul.f32 %v5761_v52, %v1574_v62  ;;  %v1419_v5 = vadd.f32 %v1418_v24, %v5751_v35 }
 0x33b   : > { %v5853_v45 = vadd.f32 %v5767_v9, %v1645_v63  ;;  %v1575_v10 = vmax.f32 %v1417_v44, 0.0 }
 0x33c   : > { %v5859_v13 = vadd.f32 %v5771_v56, %v1646_v1  ;;  %v1576_v47 = vmax.f32 %v1419_v5, 0.0  ;;  %v1422_v6 = vpop.f32.mrb[82].mxu1 }
 0x33d   : > { %v4357_v0 = vpack.c.bf16 %v5853_v45, %v5850_v7  ;;  %v1423_v12 = vadd.f32 %v1422_v6, %v5748_v8  ;;  %v1424_v25 = vpop.f32.mrb[83].mxu1  ;;  %v1647_v37 = vmul.f32 %v5757_v50, %v1575_v10 }
 0x33e   : > { %v1425_v31 = vadd.f32 %v1424_v25, %v5751_v35  ;;  %v4355_v34 = vpack.c.bf16 %v5859_v13, %v5856_v26  ;;  %v1648_v20 = vmul.f32 %v5761_v52, %v1576_v47 }
 0x33f   : > { %v1577_v32 = vmax.f32 %v1423_v12, 0.0  ;;  %v5874_v48 = vadd.f32 %v5767_v9, %v1647_v37 }
 0x340   : > { %v1578_v2 = vmax.f32 %v1425_v31, 0.0  ;;  %v1428_v33 = vpop.f32.mrb[84].mxu1  ;;  %4356 = vmatprep.subr.bf16.mxu0 %v4355_v34  ;;  %v5880_v21 = vadd.f32 %v5771_v56, %v1648_v20 }
 0x341   : > { %v1649_v40 = vmul.f32 %v5757_v50, %v1577_v32  ;;  %v1429_v14 = vadd.f32 %v1428_v33, %v5748_v8  ;;  %v1430_v46 = vpop.f32.mrb[85].mxu1  ;;  %4358 = vmatpush1.bf16.msra.mxu0 %v4357_v0 }
 0x342   : > { %v1650_v43 = vmul.f32 %v5761_v52, %v1578_v2  ;;  %v1431_v27 = vadd.f32 %v1430_v46, %v5751_v35 }
 0x343   : > { %v5877_v49 = vadd.f32 %v5767_v9, %v1649_v40  ;;  %v1579_v51 = vmax.f32 %v1429_v14, 0.0 }
 0x344   : > { %v5883_v3 = vadd.f32 %v5771_v56, %v1650_v43  ;;  %v1580_v54 = vmax.f32 %v1431_v27, 0.0  ;;  %v1434_v38 = vpop.f32.mrb[86].mxu1 }
 0x345   : > { %v4361_v57 = vpack.c.bf16 %v5877_v49, %v5874_v48  ;;  %v1435_v58 = vadd.f32 %v1434_v38, %v5748_v8  ;;  %v1436_v39 = vpop.f32.mrb[87].mxu1  ;;  %v1651_v60 = vmul.f32 %v5757_v50, %v1579_v51 }
 0x346   : > { %v1437_v59 = vadd.f32 %v1436_v39, %v5751_v35  ;;  %v4359_v23 = vpack.c.bf16 %v5883_v3, %v5880_v21  ;;  %v1652_v61 = vmul.f32 %v5761_v52, %v1580_v54 }
 0x347   : > { %v1581_v41 = vmax.f32 %v1435_v58, 0.0  ;;  %v5898_v5 = vadd.f32 %v5767_v9, %v1651_v60 }
 0x348   : > { %v1582_v42 = vmax.f32 %v1437_v59, 0.0  ;;  %v1440_v62 = vpop.f32.mrb[88].mxu1  ;;  %4360 = vmatprep.subr.bf16.mxu0 %v4359_v23  ;;  %v5904_v6 = vadd.f32 %v5771_v56, %v1652_v61 }
 0x349   : > { %v1653_v11 = vmul.f32 %v5757_v50, %v1581_v41  ;;  %v1441_v63 = vadd.f32 %v1440_v62, %v5748_v8  ;;  %v1442_v44 = vpop.f32.mrb[89].mxu1  ;;  %4362 = vmatpush1.bf16.msra.mxu0 %v4361_v57 }
 0x34a   : > { %v1654_v24 = vmul.f32 %v5761_v52, %v1582_v42  ;;  %v1443_v1 = vadd.f32 %v1442_v44, %v5751_v35 }
 0x34b   : > { %v5901_v10 = vadd.f32 %v5767_v9, %v1653_v11  ;;  %v1583_v47 = vmax.f32 %v1441_v63, 0.0 }
 0x34c   : > { %v5907_v0 = vadd.f32 %v5771_v56, %v1654_v24  ;;  %v1584_v12 = vmax.f32 %v1443_v1, 0.0  ;;  %v1446_v25 = vpop.f32.mrb[90].mxu1 }
 0x34d   : > { %v4365_v31 = vpack.c.bf16 %v5901_v10, %v5898_v5  ;;  %v1447_v34 = vadd.f32 %v1446_v25, %v5748_v8  ;;  %v1448_v37 = vpop.f32.mrb[91].mxu1  ;;  %v1655_v2 = vmul.f32 %v5757_v50, %v1583_v47 }
 0x34e   : > { %v1449_v32 = vadd.f32 %v1448_v37, %v5751_v35  ;;  %v4363_v20 = vpack.c.bf16 %v5907_v0, %v5904_v6  ;;  %v1656_v40 = vmul.f32 %v5761_v52, %v1584_v12 }
 0x34f   : > { %v1585_v33 = vmax.f32 %v1447_v34, 0.0  ;;  %v5922_v57 = vadd.f32 %v5767_v9, %v1655_v2 }
 0x350   : > { %v1586_v14 = vmax.f32 %v1449_v32, 0.0  ;;  %v1452_v46 = vpop.f32.mrb[92].mxu1  ;;  %4364 = vmatprep.subr.bf16.mxu0 %v4363_v20  ;;  %v5928_v59 = vadd.f32 %v5771_v56, %v1656_v40 }
 0x351   : > { %v1657_v43 = vmul.f32 %v5757_v50, %v1585_v33  ;;  %v1453_v27 = vadd.f32 %v1452_v46, %v5748_v8  ;;  %v1454_v51 = vpop.f32.mrb[93].mxu1  ;;  %4366 = vmatpush1.bf16.msra.mxu0 %v4365_v31 }
 0x352   : > { %v1658_v54 = vmul.f32 %v5761_v52, %v1586_v14  ;;  %v1455_v38 = vadd.f32 %v1454_v51, %v5751_v35 }
 0x353   : > { %v5925_v58 = vadd.f32 %v5767_v9, %v1657_v43  ;;  %v1587_v39 = vmax.f32 %v1453_v27, 0.0 }
 0x354   : > { %v5931_v23 = vadd.f32 %v5771_v56, %v1658_v54  ;;  %v1588_v60 = vmax.f32 %v1455_v38, 0.0  ;;  %v1458_v41 = vpop.f32.mrb[94].mxu1 }
 0x355   : > { %v4369_v61 = vpack.c.bf16 %v5925_v58, %v5922_v57  ;;  %v1459_v42 = vadd.f32 %v1458_v41, %v5748_v8  ;;  %v1460_v62 = vpop.f32.mrb[95].mxu1  ;;  %v1659_v44 = vmul.f32 %v5757_v50, %v1587_v39 }
 0x356   : > { %v1461_v11 = vadd.f32 %v1460_v62, %v5751_v35  ;;  %v4367_v63 = vpack.c.bf16 %v5931_v23, %v5928_v59  ;;  %v1660_v1 = vmul.f32 %v5761_v52, %v1588_v60 }
 0x357   : > { %v1589_v24 = vmax.f32 %v1459_v42, 0.0  ;;  %v5946_v20 = vadd.f32 %v5767_v9, %v1659_v44 }
 0x358   : > { %v1590_v47 = vmax.f32 %v1461_v11, 0.0  ;;  %v1464_v12 = vpop.f32.mrb[96].mxu1  ;;  %4368 = vmatprep.subr.bf16.mxu0 %v4367_v63  ;;  %v5952_v40 = vadd.f32 %v5771_v56, %v1660_v1 }
 0x359   : > { %v1661_v25 = vmul.f32 %v5757_v50, %v1589_v24  ;;  %v1465_v31 = vadd.f32 %v1464_v12, %v5748_v8  ;;  %v1466_v34 = vpop.f32.mrb[97].mxu1  ;;  %4370 = vmatpush1.bf16.msra.mxu0 %v4369_v61 }
 0x35a   : > { %v1662_v37 = vmul.f32 %v5761_v52, %v1590_v47  ;;  %v1467_v32 = vadd.f32 %v1466_v34, %v5751_v35 }
 0x35b   : > { %v5949_v2 = vadd.f32 %v5767_v9, %v1661_v25  ;;  %v1591_v33 = vmax.f32 %v1465_v31, 0.0 }
 0x35c   : > { %v5955_v14 = vadd.f32 %v5771_v56, %v1662_v37  ;;  %v1592_v46 = vmax.f32 %v1467_v32, 0.0  ;;  %v1470_v43 = vpop.f32.mrb[98].mxu1 }
 0x35d   : > { %v4373_v27 = vpack.c.bf16 %v5949_v2, %v5946_v20  ;;  %v1471_v51 = vadd.f32 %v1470_v43, %v5748_v8  ;;  %v1472_v54 = vpop.f32.mrb[99].mxu1  ;;  %v1663_v60 = vmul.f32 %v5757_v50, %v1591_v33 }
 0x35e   : > { %v1473_v38 = vadd.f32 %v1472_v54, %v5751_v35  ;;  %v4371_v39 = vpack.c.bf16 %v5955_v14, %v5952_v40  ;;  %v1664_v61 = vmul.f32 %v5761_v52, %v1592_v46 }
 0x35f   : > { %v1593_v41 = vmax.f32 %v1471_v51, 0.0  ;;  %v5970_v47 = vadd.f32 %v5767_v9, %v1663_v60 }
 0x360   : > { %v1594_v42 = vmax.f32 %v1473_v38, 0.0  ;;  %v1476_v62 = vpop.f32.mrb[100].mxu1  ;;  %4372 = vmatprep.subr.bf16.mxu0 %v4371_v39  ;;  %v5976_v31 = vadd.f32 %v5771_v56, %v1664_v61 }
 0x361   : > { %v1665_v11 = vmul.f32 %v5757_v50, %v1593_v41  ;;  %v1477_v63 = vadd.f32 %v1476_v62, %v5748_v8  ;;  %v1478_v44 = vpop.f32.mrb[101].mxu1  ;;  %4374 = vmatpush1.bf16.msra.mxu0 %v4373_v27 }
 0x362   : > { %v1666_v24 = vmul.f32 %v5761_v52, %v1594_v42  ;;  %v1479_v1 = vadd.f32 %v1478_v44, %v5751_v35 }
 0x363   : > { %v5973_v12 = vadd.f32 %v5767_v9, %v1665_v11  ;;  %v1595_v25 = vmax.f32 %v1477_v63, 0.0 }
 0x364   : > { %v5979_v34 = vadd.f32 %v5771_v56, %v1666_v24  ;;  %v1596_v37 = vmax.f32 %v1479_v1, 0.0  ;;  %v1482_v32 = vpop.f32.mrb[102].mxu1 }
 0x365   : > { %v4377_v33 = vpack.c.bf16 %v5973_v12, %v5970_v47  ;;  %v1483_v46 = vadd.f32 %v1482_v32, %v5748_v8  ;;  %v1484_v43 = vpop.f32.mrb[103].mxu1  ;;  %v1667_v54 = vmul.f32 %v5757_v50, %v1595_v25 }
 0x366   : > { %v1485_v27 = vadd.f32 %v1484_v43, %v5751_v35  ;;  %v4375_v51 = vpack.c.bf16 %v5979_v34, %v5976_v31  ;;  %v1668_v39 = vmul.f32 %v5761_v52, %v1596_v37 }
 0x367   : > { %v1597_v38 = vmax.f32 %v1483_v46, 0.0  ;;  %v5994_v44 = vadd.f32 %v5767_v9, %v1667_v54 }
 0x368   : > { %v1598_v60 = vmax.f32 %v1485_v27, 0.0  ;;  %v1488_v41 = vpop.f32.mrb[104].mxu1  ;;  %4376 = vmatprep.subr.bf16.mxu0 %v4375_v51  ;;  %v6000_v25 = vadd.f32 %v5771_v56, %v1668_v39 }
 0x369   : > { %v1669_v61 = vmul.f32 %v5757_v50, %v1597_v38  ;;  %v1489_v42 = vadd.f32 %v1488_v41, %v5748_v8  ;;  %v1490_v62 = vpop.f32.mrb[105].mxu1  ;;  %4378 = vmatpush1.bf16.msra.mxu0 %v4377_v33 }
 0x36a   : > { %v1670_v11 = vmul.f32 %v5761_v52, %v1598_v60  ;;  %v1491_v63 = vadd.f32 %v1490_v62, %v5751_v35 }
 0x36b   : > { %v5997_v24 = vadd.f32 %v5767_v9, %v1669_v61  ;;  %v1599_v1 = vmax.f32 %v1489_v42, 0.0 }
 0x36c   : > { %v6003_v37 = vadd.f32 %v5771_v56, %v1670_v11  ;;  %v1600_v32 = vmax.f32 %v1491_v63, 0.0  ;;  %v1494_v46 = vpop.f32.mrb[106].mxu1 }
 0x36d   : > { %v4381_v33 = vpack.c.bf16 %v5997_v24, %v5994_v44  ;;  %v1495_v43 = vadd.f32 %v1494_v46, %v5748_v8  ;;  %v1496_v27 = vpop.f32.mrb[107].mxu1  ;;  %v1671_v38 = vmul.f32 %v5757_v50, %v1599_v1 }
 0x36e   : > { %7480 = vst [vmem:[#allocation12_spill] sm:$0xff] %v6003_v37  ;;  %v1497_v51 = vadd.f32 %v1496_v27, %v5751_v35  ;;  %v4379_v54 = vpack.c.bf16 %v6003_v37, %v6000_v25  ;;  %v1672_v60 = vmul.f32 %v5761_v52, %v1600_v32 }
 0x36f   : > { %v1601_v39 = vmax.f32 %v1495_v43, 0.0  ;;  %v6018_v27 = vadd.f32 %v5767_v9, %v1671_v38 }
 0x370   : > { %v1602_v41 = vmax.f32 %v1497_v51, 0.0  ;;  %v1500_v61 = vpop.f32.mrb[108].mxu1  ;;  %4380 = vmatprep.subr.bf16.mxu0 %v4379_v54  ;;  %v6024_v43 = vadd.f32 %v5771_v56, %v1672_v60 }
 0x371   : > { %v1673_v42 = vmul.f32 %v5757_v50, %v1601_v39  ;;  %v1501_v62 = vadd.f32 %v1500_v61, %v5748_v8  ;;  %v1502_v11 = vpop.f32.mrb[109].mxu1  ;;  %4382 = vmatpush1.bf16.msra.mxu0 %v4381_v33  ;;  %7481 = vst [vmem:[#allocation13_spill] sm:$0xff] %v6018_v27 }
 0x372   : > { %v1674_v63 = vmul.f32 %v5761_v52, %v1602_v41  ;;  %v1503_v46 = vadd.f32 %v1502_v11, %v5751_v35  ;;  %7483 = vst [vmem:[#allocation15_spill] sm:$0xff] %v6024_v43 }
 0x373   : > { %v6021_v1 = vadd.f32 %v5767_v9, %v1673_v42  ;;  %v1603_v32 = vmax.f32 %v1501_v62, 0.0 }
 0x374   : > { %v6027_v51 = vadd.f32 %v5771_v56, %v1674_v63  ;;  %v1604_v54 = vmax.f32 %v1503_v46, 0.0  ;;  %v1506_v39 = vpop.f32.mrb[110].mxu1 }
 0x375   : > { %7482 = vst [vmem:[#allocation14_spill] sm:$0xff] %v6021_v1  ;;  %v4385_v33 = vpack.c.bf16 %v6021_v1, %v6018_v27  ;;  %v1507_v41 = vadd.f32 %v1506_v39, %v5748_v8  ;;  %v1508_v61 = vpop.f32.mrb[111].mxu1  ;;  %v1675_v62 = vmul.f32 %v5757_v50, %v1603_v32 }
 0x376   : > { %7484 = vst [vmem:[#allocation16_spill] sm:$0xff] %v6027_v51  ;;  %v1509_v38 = vadd.f32 %v1508_v61, %v5751_v35  ;;  %v4383_v42 = vpack.c.bf16 %v6027_v51, %v6024_v43  ;;  %v1676_v11 = vmul.f32 %v5761_v52, %v1604_v54 }
 0x377   : > { %v1605_v60 = vmax.f32 %v1507_v41, 0.0  ;;  %v6042_v51 = vadd.f32 %v5767_v9, %v1675_v62 }
 0x378   : > { %v1606_v63 = vmax.f32 %v1509_v38, 0.0  ;;  %v1512_v19 = vpop.f32.mrb[112].mxu1  ;;  %4384 = vmatprep.subr.bf16.mxu0 %v4383_v42  ;;  %v6048_v41 = vadd.f32 %v5771_v56, %v1676_v11 }
 0x379   : > { %v1677_v46 = vmul.f32 %v5757_v50, %v1605_v60  ;;  %v1513_v1 = vadd.f32 %v1512_v19, %v5748_v8  ;;  %v1514_v27 = vpop.f32.mrb[113].mxu1  ;;  %4386 = vmatpush1.bf16.msra.mxu0 %v4385_v33  ;;  %7485 = vst [vmem:[#allocation17_spill] sm:$0xff] %v6042_v51 }
 0x37a   : > { %v1678_v39 = vmul.f32 %v5761_v52, %v1606_v63  ;;  %v1515_v61 = vadd.f32 %v1514_v27, %v5751_v35  ;;  %7487 = vst [vmem:[#allocation19_spill] sm:$0xff] %v6048_v41 }
 0x37b   : > { %v6045_v32 = vadd.f32 %v5767_v9, %v1677_v46  ;;  %v1607_v54 = vmax.f32 %v1513_v1, 0.0 }
 0x37c   : > { %v6051_v38 = vadd.f32 %v5771_v56, %v1678_v39  ;;  %v1608_v19 = vmax.f32 %v1515_v61, 0.0  ;;  %v1518_v42 = vpop.f32.mrb[114].mxu1  ;;  %v3966_v61 = vld [vmem:[%s7437_s4 + $0x208] sm:$0xff] }
 0x37d   : > { %7486 = vst [vmem:[#allocation18_spill] sm:$0xff] %v6045_v32  ;;  %v4389_v33 = vpack.c.bf16 %v6045_v32, %v6042_v51  ;;  %v1519_v27 = vadd.f32 %v1518_v42, %v5748_v8  ;;  %v1520_v60 = vpop.f32.mrb[115].mxu1  ;;  %v1679_v1 = vmul.f32 %v5757_v50, %v1607_v54  ;;  %v3968_v42 = vld [vmem:[%s7437_s4 + $0x218] sm:$0xff] }
 0x37e   : > { %7488 = vst [vmem:[#allocation20_spill] sm:$0xff] %v6051_v38  ;;  %v1521_v62 = vadd.f32 %v1520_v60, %v5751_v35  ;;  %v4387_v63 = vpack.c.bf16 %v6051_v38, %v6048_v41  ;;  %v1680_v46 = vmul.f32 %v5761_v52, %v1608_v19  ;;  %v3965_v60 = vld [vmem:[%s7437_s4 + $0x200] sm:$0xff] }
 0x37f   : > { %v1609_v11 = vmax.f32 %v1519_v27, 0.0  ;;  %v6078_v51 = vadd.f32 %v5767_v9, %v1679_v1 }
 0x380   : > { %v1610_v39 = vmax.f32 %v1521_v62, 0.0  ;;  %v1524_v43 = vpop.f32.mrb[116].mxu1  ;;  %4388 = vmatprep.subr.bf16.mxu0 %v4387_v63  ;;  %v4407_v62 = vpack.c.bf16 %v3968_v42, %v3966_v61  ;;  %v3967_v63 = vld [vmem:[%s7437_s4 + $0x210] sm:$0xff] }
 0x381   : > { %v1681_v54 = vmul.f32 %v5757_v50, %v1609_v11  ;;  %v1525_v27 = vadd.f32 %v1524_v43, %v5748_v8  ;;  %v1526_v19 = vpop.f32.mrb[117].mxu1  ;;  %4390 = vmatpush1.bf16.msra.mxu0 %v4389_v33  ;;  %v4409_v41 = vpack.c.bf16 %v3967_v63, %v3965_v60  ;;  %7489 = vst [vmem:[#allocation21_spill] sm:$0xff] %v6078_v51  ;;  %v3972_v63 = vld [vmem:[%s7437_s4 + $0x238] sm:$0xff] }
 0x382   : > { %v1682_v38 = vmul.f32 %v5761_v52, %v1610_v39  ;;  %v1527_v32 = vadd.f32 %v1526_v19, %v5751_v35  ;;  %4408 = vmatprep.subr.bf16.mxu1 %v4407_v62  ;;  %v6084_v43 = vadd.f32 %v5771_v56, %v1680_v46 }
 0x383   : > { %v6081_v37 = vadd.f32 %v5767_v9, %v1681_v54  ;;  %v1611_v11 = vmax.f32 %v1525_v27, 0.0  ;;  %4410 = vmatpush1.bf16.msra.mxu1 %v4409_v41  ;;  %v3970_v41 = vld [vmem:[%s7437_s4 + $0x228] sm:$0xff] }
 0x384   : > { %7491 = vst [vmem:[#allocation23_spill] sm:$0xff] %v6084_v43  ;;  %v6087_v33 = vadd.f32 %v5771_v56, %v1682_v38  ;;  %v1612_v61 = vmax.f32 %v1527_v32, 0.0  ;;  %v1530_v42 = vpop.f32.mrb[118].mxu1 }
 0x385   : > { %7490 = vst [vmem:[#allocation22_spill] sm:$0xff] %v6081_v37  ;;  %v4393_v39 = vpack.c.bf16 %v6081_v37, %v6078_v51  ;;  %v1531_v1 = vadd.f32 %v1530_v42, %v5748_v8  ;;  %v1532_v60 = vpop.f32.mrb[119].mxu1  ;;  %v1683_v46 = vmul.f32 %v5757_v50, %v1611_v11  ;;  %v3969_v42 = vld [vmem:[%s7437_s4 + $0x220] sm:$0xff] }
 0x386   : > { %7492 = vst [vmem:[#allocation24_spill] sm:$0xff] %v6087_v33  ;;  %v1533_v54 = vadd.f32 %v1532_v60, %v5751_v35  ;;  %v4391_v27 = vpack.c.bf16 %v6087_v33, %v6084_v43  ;;  %v1684_v38 = vmul.f32 %v5761_v52, %v1612_v61  ;;  %v4411_v60 = vpack.c.bf16 %v3972_v63, %v3970_v41 }
 0x387   : > { %v1613_v19 = vmax.f32 %v1531_v1, 0.0  ;;  %v6114_v43 = vadd.f32 %v5767_v9, %v1683_v46 }
 0x388   : > { %v1614_v62 = vmax.f32 %v1533_v54, 0.0  ;;  %v1536_v32 = vpop.f32.mrb[120].mxu1  ;;  %4392 = vmatprep.subr.bf16.mxu0 %v4391_v27  ;;  %v3971_v54 = vld [vmem:[%s7437_s4 + $0x230] sm:$0xff]  ;;  %4412 = vmatprep.subr.bf16.mxu1 %v4411_v60 }
 0x389   : > { %v1685_v11 = vmul.f32 %v5757_v50, %v1613_v19  ;;  %v1537_v1 = vadd.f32 %v1536_v32, %v5748_v8  ;;  %v1538_v61 = vpop.f32.mrb[121].mxu1  ;;  %4394 = vmatpush1.bf16.msra.mxu0 %v4393_v39  ;;  %v4413_v37 = vpack.c.bf16 %v3971_v54, %v3969_v42  ;;  %7493 = vst [vmem:[#allocation25_spill] sm:$0xff] %v6114_v43 }
 0x38a   : > { %v1686_v27 = vmul.f32 %v5761_v52, %v1614_v62  ;;  %v1539_v33 = vadd.f32 %v1538_v61, %v5751_v35  ;;  %v6120_v39 = vadd.f32 %v5771_v56, %v1684_v38 }
 0x38b   : > { %v6117_v51 = vadd.f32 %v5767_v9, %v1685_v11  ;;  %v1615_v19 = vmax.f32 %v1537_v1, 0.0  ;;  %4414 = vmatpush1.bf16.msra.mxu1 %v4413_v37  ;;  %v3974_v37 = vld [vmem:[%s7437_s4 + $0x248] sm:$0xff] }
 0x38c   : > { %7495 = vst [vmem:[#allocation27_spill] sm:$0xff] %v6120_v39  ;;  %v6123_v32 = vadd.f32 %v5771_v56, %v1686_v27  ;;  %v1616_v41 = vmax.f32 %v1539_v33, 0.0  ;;  %v1542_v63 = vpop.f32.mrb[122].mxu1  ;;  %v3976_v27 = vld [vmem:[%s7437_s4 + $0x258] sm:$0xff] }
 0x38d   : > { %7494 = vst [vmem:[#allocation26_spill] sm:$0xff] %v6117_v51  ;;  %v4397_v62 = vpack.c.bf16 %v6117_v51, %v6114_v43  ;;  %v1543_v46 = vadd.f32 %v1542_v63, %v5748_v8  ;;  %v1544_v42 = vpop.f32.mrb[123].mxu1  ;;  %v1687_v38 = vmul.f32 %v5757_v50, %v1615_v19  ;;  %v3973_v63 = vld [vmem:[%s7437_s4 + $0x240] sm:$0xff] }
 0x38e   : > { %7496 = vst [vmem:[#allocation28_spill] sm:$0xff] %v6123_v32  ;;  %v1545_v11 = vadd.f32 %v1544_v42, %v5751_v35  ;;  %v4395_v1 = vpack.c.bf16 %v6123_v32, %v6120_v39  ;;  %v1688_v60 = vmul.f32 %v5761_v52, %v1616_v41  ;;  %v4415_v42 = vpack.c.bf16 %v3976_v27, %v3974_v37 }
 0x38f   : > { %v1617_v61 = vmax.f32 %v1543_v46, 0.0  ;;  %v6150_v39 = vadd.f32 %v5767_v9, %v1687_v38 }
 0x390   : > { %v1618_v54 = vmax.f32 %v1545_v11, 0.0  ;;  %v1548_v33 = vpop.f32.mrb[124].mxu1  ;;  %4396 = vmatprep.subr.bf16.mxu0 %v4395_v1  ;;  %v3975_v11 = vld [vmem:[%s7437_s4 + $0x250] sm:$0xff]  ;;  %4416 = vmatprep.subr.bf16.mxu1 %v4415_v42 }
 0x391   : > { %v1689_v19 = vmul.f32 %v5757_v50, %v1617_v61  ;;  %v1549_v46 = vadd.f32 %v1548_v33, %v5748_v8  ;;  %v1550_v41 = vpop.f32.mrb[125].mxu1  ;;  %4398 = vmatpush1.bf16.msra.mxu0 %v4397_v62  ;;  %v4417_v51 = vpack.c.bf16 %v3975_v11, %v3973_v63  ;;  %v6156_v62 = vadd.f32 %v5771_v56, %v1688_v60 }
 0x392   : > { %v1690_v1 = vmul.f32 %v5761_v52, %v1618_v54  ;;  %v1551_v32 = vadd.f32 %v1550_v41, %v5751_v35 }
 0x393   : > { %v6153_v43 = vadd.f32 %v5767_v9, %v1689_v19  ;;  %v1619_v61 = vmax.f32 %v1549_v46, 0.0  ;;  %4418 = vmatpush1.bf16.msra.mxu1 %v4417_v51  ;;  %v3978_v51 = vld [vmem:[%s7437_s4 + $0x268] sm:$0xff] }
 0x394   : > { %v6159_v33 = vadd.f32 %v5771_v56, %v1690_v1  ;;  %v1620_v37 = vmax.f32 %v1551_v32, 0.0  ;;  %v1554_v27 = vpop.f32.mrb[126].mxu1 }
 0x395   : > { %v4401_v54 = vpack.c.bf16 %v6153_v43, %v6150_v39  ;;  %v1555_v38 = vadd.f32 %v1554_v27, %v5748_v8  ;;  %v1556_v63 = vpop.f32.mrb[127].mxu1  ;;  %v1691_v60 = vmul.f32 %v5757_v50, %v1619_v61  ;;  %v3980_v8 = vld [vmem:[%s7437_s4 + $0x278] sm:$0xff]  ;;  %v3979_v61 = vld [vmem:[%s7437_s4 + $0x270] sm:$0xff] }
 0x396   : > { %v1557_v19 = vadd.f32 %v1556_v63, %v5751_v35  ;;  %v4399_v46 = vpack.c.bf16 %v6159_v33, %v6156_v62  ;;  %v1692_v42 = vmul.f32 %v5761_v52, %v1620_v37  ;;  %v3977_v35 = vld [vmem:[%s7437_s4 + $0x260] sm:$0xff]  ;;  %v4419_v1 = vpack.c.bf16 %v3980_v8, %v3978_v51 }
 0x397   : > { %v1621_v41 = vmax.f32 %v1555_v38, 0.0  ;;  %v4421_v27 = vpack.c.bf16 %v3979_v61, %v3977_v35  ;;  %v6184_v38 = vadd.f32 %v5767_v9, %v1691_v60  ;;  %v3985_v35 = vld [vmem:[%s7437_s4 + $0x2a0] sm:$0xff]  ;;  %v3992_v61 = vld [vmem:[%s7437_s4 + $0x2d8] sm:$0xff] }
 0x398   : > { %v1622_v11 = vmax.f32 %v1557_v19, 0.0  ;;  %4400 = vmatprep.subr.bf16.mxu0 %v4399_v46  ;;  %4420 = vmatprep.subr.bf16.mxu1 %v4419_v1  ;;  %v6190_v19 = vadd.f32 %v5771_v56, %v1692_v42  ;;  %v3984_v46 = vld [vmem:[%s7437_s4 + $0x298] sm:$0xff]  ;;  %v3986_v42 = vld [vmem:[%s7437_s4 + $0x2a8] sm:$0xff] }
 0x399   : > { %v1693_v32 = vmul.f32 %v5757_v50, %v1621_v41  ;;  %4402 = vmatpush1.bf16.msra.mxu0 %v4401_v54  ;;  %4422 = vmatpush1.bf16.msra.mxu1 %v4421_v27  ;;  %v3983_v41 = vld [vmem:[%s7437_s4 + $0x290] sm:$0xff]  ;;  %v3990_v1 = vld [vmem:[%s7437_s4 + $0x2c8] sm:$0xff] }
 0x39a   : > { %v1694_v37 = vmul.f32 %v5761_v52, %v1622_v11  ;;  %v3988_v11 = vld [vmem:[%s7437_s4 + $0x2b8] sm:$0xff] }
 0x39b   : > { %v6187_v63 = vadd.f32 %v5767_v9, %v1693_v32  ;;  %v3982_v9 = vld [vmem:[%s7437_s4 + $0x288] sm:$0xff]  ;;  %v4427_v8 = vpack.c.bf16 %v3988_v11, %v3986_v42  ;;  %v3987_v32 = vld [vmem:[%s7437_s4 + $0x2b0] sm:$0xff] }
 0x39c   : > { %v6193_v50 = vadd.f32 %v5771_v56, %v1694_v37  ;;  %v3981_v56 = vld [vmem:[%s7437_s4 + $0x280] sm:$0xff]  ;;  %v4423_v60 = vpack.c.bf16 %v3984_v46, %v3982_v9  ;;  %v4429_v27 = vpack.c.bf16 %v3987_v32, %v3985_v35  ;;  %v3991_v46 = vld [vmem:[%s7437_s4 + $0x2d0] sm:$0xff]  ;;  %v4729_v11 = vld [vmem:[%s5051_s15 + $0x28] sm:$0xff] }
 0x39d   : > { %v4405_v54 = vpack.c.bf16 %v6187_v63, %v6184_v38  ;;  %v4425_v51 = vpack.c.bf16 %v3983_v41, %v3981_v56  ;;  %v4726_v37 = vld [vmem:[%s5051_s15] sm:$0xff]  ;;  %v3994_v56 = vld [vmem:[%s7437_s4 + $0x2e8] sm:$0xff]  ;;  %v4728_v41 = vld [vmem:[%s5051_s15 + $0x10] sm:$0xff] }
 0x39e   : > { %v4403_v52 = vpack.c.bf16 %v6193_v50, %v6190_v19  ;;  %4424 = vmatprep.subr.bf16.mxu1 %v4423_v60  ;;  %v3989_v9 = vld [vmem:[%s7437_s4 + $0x2c0] sm:$0xff]  ;;  %v3996_v60 = vld [vmem:[%s7437_s4 + $0x2f8] sm:$0xff]  ;;  %v3995_v35 = vld [vmem:[%s7437_s4 + $0x2f0] sm:$0xff] }
 0x39f   : > { %4426 = vmatpush1.bf16.msra.mxu1 %v4425_v51  ;;  %v4433_v42 = vpack.c.bf16 %v3991_v46, %v3989_v9  ;;  %v4435_v51 = vpack.c.bf16 %v3996_v60, %v3994_v56  ;;  %v3998_v32 = vld [vmem:[%s7437_s4 + $0x308] sm:$0xff]  ;;  %v3999_v9 = vld [vmem:[%s7437_s4 + $0x310] sm:$0xff]  ;;  %v4004_v56 = vld [vmem:[%s7437_s4 + $0x338] sm:$0xff] }
 0x3a0   : > { %4404 = vmatprep.subr.bf16.mxu0 %v4403_v52  ;;  %4428 = vmatprep.subr.bf16.mxu1 %v4427_v8  ;;  %v4431_v52 = vpack.c.bf16 %v3992_v61, %v3990_v1  ;;  %v3993_v8 = vld [vmem:[%s7437_s4 + $0x2e0] sm:$0xff]  ;;  %v4000_v1 = vld [vmem:[%s7437_s4 + $0x318] sm:$0xff]  ;;  %v4002_v46 = vld [vmem:[%s7437_s4 + $0x328] sm:$0xff] }
 0x3a1   : > { %4406 = vmatpush1.bf16.msra.mxu0 %v4405_v54  ;;  %v4727_v54 = vld [vmem:[%s5051_s15 + $0x18] sm:$0xff]  ;;  %v4730_v61 = vld [vmem:[%s5051_s15 + $0x20] sm:$0xff]  ;;  %v4732_v60 = vld [vmem:[%s5051_s15 + $0x30] sm:$0xff] }
 0x3a3   : > { %4430 = vmatpush1.bf16.msra.mxu1 %v4429_v27  ;;  %v4731_v27 = vld [vmem:[%s5051_s15 + $0x38] sm:$0xff] }
 0x3a4   : > { %1962 = vmatmul.mubr.f32.vlgmr.msra.gmra.mrb[64].mxu0 %v4726_v37  ;;  %4432 = vmatprep.subr.bf16.mxu1 %v4431_v52  ;;  %v4437_v37 = vpack.c.bf16 %v3995_v35, %v3993_v8  ;;  %v3997_v52 = vld [vmem:[%s7437_s4 + $0x300] sm:$0xff]  ;;  %v4003_v8 = vld [vmem:[%s7437_s4 + $0x330] sm:$0xff]  ;;  %v4006_v35 = vld [vmem:[%s7437_s4 + $0x348] sm:$0xff] }
 0x3a5   : > { %1967 = vmatprep.mubr.f32.mxu0 %v4727_v54  ;;  %v4439_v54 = vpack.c.bf16 %v4000_v1, %v3998_v32  ;;  %v4008_v32 = vld [vmem:[%s7437_s4 + $0x358] sm:$0xff]  ;;  %v4734_v1 = vld [vmem:[%s5051_s15 + $0x40] sm:$0xff] }
 0x3a7   : > { %4434 = vmatpush1.bf16.msra.mxu1 %v4433_v42  ;;  %v4733_v42 = vld [vmem:[%s5051_s15 + $0x48] sm:$0xff] }
 0x3a8   : > { %1968 = vmatmul.mubr.f32.gmra.mrb[66].mxu0 %v4728_v41  ;;  %4436 = vmatprep.subr.bf16.mxu1 %v4435_v51  ;;  %v4441_v41 = vpack.c.bf16 %v3999_v9, %v3997_v52  ;;  %v4001_v51 = vld [vmem:[%s7437_s4 + $0x320] sm:$0xff]  ;;  %v4007_v52 = vld [vmem:[%s7437_s4 + $0x350] sm:$0xff]  ;;  %v4010_v9 = vld [vmem:[%s7437_s4 + $0x368] sm:$0xff] }
 0x3a9   : > { %1973 = vmatprep.mubr.f32.mxu0 %v4729_v11  ;;  %v4443_v11 = vpack.c.bf16 %v4004_v56, %v4002_v46  ;;  %v4012_v46 = vld [vmem:[%s7437_s4 + $0x378] sm:$0xff]  ;;  %v4736_v56 = vld [vmem:[%s5051_s15 + $0x50] sm:$0xff] }
 0x3ab   : > { %4438 = vmatpush1.bf16.msra.mxu1 %v4437_v37  ;;  %v4735_v37 = vld [vmem:[%s5051_s15 + $0x58] sm:$0xff] }
 0x3ac   : > { %1974 = vmatmul.mubr.f32.gmra.mrb[68].mxu0 %v4730_v61  ;;  %4440 = vmatprep.subr.bf16.mxu1 %v4439_v54  ;;  %v4445_v61 = vpack.c.bf16 %v4003_v8, %v4001_v51  ;;  %v4005_v54 = vld [vmem:[%s7437_s4 + $0x340] sm:$0xff]  ;;  %v4011_v51 = vld [vmem:[%s7437_s4 + $0x370] sm:$0xff]  ;;  %v4014_v8 = vld [vmem:[%s7437_s4 + $0x388] sm:$0xff] }
 0x3ad   : > { %1979 = vmatprep.mubr.f32.mxu0 %v4731_v27  ;;  %v4447_v27 = vpack.c.bf16 %v4008_v32, %v4006_v35  ;;  %v4016_v35 = vld [vmem:[%s7437_s4 + $0x398] sm:$0xff]  ;;  %v4738_v32 = vld [vmem:[%s5051_s15 + $0x60] sm:$0xff] }
 0x3af   : > { %4442 = vmatpush1.bf16.msra.mxu1 %v4441_v41  ;;  %v4737_v41 = vld [vmem:[%s5051_s15 + $0x68] sm:$0xff] }
 0x3b0   : > { %1980 = vmatmul.mubr.f32.gmra.mrb[70].mxu0 %v4732_v60  ;;  %4444 = vmatprep.subr.bf16.mxu1 %v4443_v11  ;;  %v4449_v60 = vpack.c.bf16 %v4007_v52, %v4005_v54  ;;  %v4009_v11 = vld [vmem:[%s7437_s4 + $0x360] sm:$0xff]  ;;  %v4015_v54 = vld [vmem:[%s7437_s4 + $0x390] sm:$0xff]  ;;  %v4018_v52 = vld [vmem:[%s7437_s4 + $0x3a8] sm:$0xff] }
 0x3b1   : > { %1985 = vmatprep.mubr.f32.mxu0 %v4733_v42  ;;  %v4451_v42 = vpack.c.bf16 %v4012_v46, %v4010_v9  ;;  %v4020_v9 = vld [vmem:[%s7437_s4 + $0x3b8] sm:$0xff]  ;;  %v4740_v46 = vld [vmem:[%s5051_s15 + $0x70] sm:$0xff] }
 0x3b3   : > { %4446 = vmatpush1.bf16.msra.mxu1 %v4445_v61  ;;  %v4739_v61 = vld [vmem:[%s5051_s15 + $0x78] sm:$0xff] }
 0x3b4   : > { %1986 = vmatmul.mubr.f32.gmra.mrb[72].mxu0 %v4734_v1  ;;  %4448 = vmatprep.subr.bf16.mxu1 %v4447_v27  ;;  %v4453_v1 = vpack.c.bf16 %v4011_v51, %v4009_v11  ;;  %v4013_v27 = vld [vmem:[%s7437_s4 + $0x380] sm:$0xff]  ;;  %v4019_v11 = vld [vmem:[%s7437_s4 + $0x3b0] sm:$0xff]  ;;  %v4022_v51 = vld [vmem:[%s7437_s4 + $0x3c8] sm:$0xff] }
 0x3b5   : > { %1991 = vmatprep.mubr.f32.mxu0 %v4735_v37  ;;  %v4455_v37 = vpack.c.bf16 %v4016_v35, %v4014_v8  ;;  %v4024_v8 = vld [vmem:[%s7437_s4 + $0x3d8] sm:$0xff]  ;;  %v4742_v35 = vld [vmem:[%s5051_s15 + $0x80] sm:$0xff] }
 0x3b7   : > { %4450 = vmatpush1.bf16.msra.mxu1 %v4449_v60  ;;  %v4741_v60 = vld [vmem:[%s5051_s15 + $0x88] sm:$0xff] }
 0x3b8   : > { %1992 = vmatmul.mubr.f32.gmra.mrb[74].mxu0 %v4736_v56  ;;  %4452 = vmatprep.subr.bf16.mxu1 %v4451_v42  ;;  %v4457_v56 = vpack.c.bf16 %v4015_v54, %v4013_v27  ;;  %v4017_v42 = vld [vmem:[%s7437_s4 + $0x3a0] sm:$0xff]  ;;  %v4023_v27 = vld [vmem:[%s7437_s4 + $0x3d0] sm:$0xff] }
 0x3b9   : > { %1997 = vmatprep.mubr.f32.mxu0 %v4737_v41  ;;  %v4459_v41 = vpack.c.bf16 %v4020_v9, %v4018_v52  ;;  %v4744_v54 = vld [vmem:[%s5051_s15 + $0x90] sm:$0xff]  ;;  %v4745_v9 = vld [vmem:[%s5051_s15 + $0xa8] sm:$0xff] }
 0x3bb   : > { %4454 = vmatpush1.bf16.msra.mxu1 %v4453_v1  ;;  %v4743_v1 = vld [vmem:[%s5051_s15 + $0x98] sm:$0xff] }
 0x3bc   : > { %1998 = vmatmul.mubr.f32.gmra.mrb[76].mxu0 %v4738_v32  ;;  %4456 = vmatprep.subr.bf16.mxu1 %v4455_v37  ;;  %v4461_v32 = vpack.c.bf16 %v4019_v11, %v4017_v42  ;;  %v4021_v37 = vld [vmem:[%s7437_s4 + $0x3c0] sm:$0xff]  ;;  %v4751_v11 = vld [vmem:[%s5051_s15 + $0xd8] sm:$0xff] }
 0x3bd   : > { %2003 = vmatprep.mubr.f32.mxu0 %v4739_v61  ;;  %v4463_v61 = vpack.c.bf16 %v4024_v8, %v4022_v51  ;;  %v4465_v52 = vpack.c.bf16 %v4023_v27, %v4021_v37  ;;  %v4750_v42 = vld [vmem:[%s5051_s15 + $0xc0] sm:$0xff]  ;;  %v4752_v51 = vld [vmem:[%s5051_s15 + $0xd0] sm:$0xff]  ;;  %v4753_v8 = vld [vmem:[%s5051_s15 + $0xe8] sm:$0xff] }
 0x3be   : > { %v4758_v37 = vld [vmem:[%s5051_s15 + $0x100] sm:$0xff]  ;;  %v4759_v27 = vld [vmem:[%s5051_s15 + $0x118] sm:$0xff] }
 0x3bf   : > { %4458 = vmatpush1.bf16.msra.mxu1 %v4457_v56  ;;  %v4747_v56 = vld [vmem:[%s5051_s15 + $0xb8] sm:$0xff] }
 0x3c0   : > { %2004 = vmatmul.mubr.f32.gmra.mrb[78].mxu0 %v4740_v46  ;;  %4460 = vmatprep.subr.bf16.mxu1 %v4459_v41  ;;  %v4746_v46 = vld [vmem:[%s5051_s15 + $0xa0] sm:$0xff]  ;;  %v4749_v41 = vld [vmem:[%s5051_s15 + $0xc8] sm:$0xff] }
 0x3c1   : > { %2009 = vmatprep.mubr.f32.mxu0 %v4741_v60  ;;  %v4748_v60 = vld [vmem:[%s5051_s15 + $0xb0] sm:$0xff] }
 0x3c3   : > { %4462 = vmatpush1.bf16.msra.mxu1 %v4461_v32  ;;  %v4755_v32 = vld [vmem:[%s5051_s15 + $0xf8] sm:$0xff] }
 0x3c4   : > { %2010 = vmatmul.mubr.f32.gmra.mrb[80].mxu0 %v4742_v35  ;;  %4464 = vmatprep.subr.bf16.mxu1 %v4463_v61  ;;  %v4754_v35 = vld [vmem:[%s5051_s15 + $0xe0] sm:$0xff]  ;;  %v4757_v61 = vld [vmem:[%s5051_s15 + $0x108] sm:$0xff] }
 0x3c5   : > { %2015 = vmatprep.mubr.f32.mxu0 %v4743_v1  ;;  %v4756_v1 = vld [vmem:[%s5051_s15 + $0xf0] sm:$0xff] }
 0x3c7   : > { %4466 = vmatpush1.bf16.msra.mxu1 %v4465_v52  ;;  %v4761_v52 = vld [vmem:[%s5051_s15 + $0x128] sm:$0xff] }
 0x3c8   : > { %2016 = vmatmul.mubr.f32.gmra.mrb[82].mxu0 %v4744_v54  ;;  %v4760_v54 = vld [vmem:[%s5051_s15 + $0x110] sm:$0xff] }
 0x3c9   : > { %2021 = vmatprep.mubr.f32.mxu0 %v4745_v9  ;;  %v4762_v9 = vld [vmem:[%s5051_s15 + $0x120] sm:$0xff] }
 0x3cc   : > { %2022 = vmatmul.mubr.f32.gmra.mrb[84].mxu0 %v4746_v46  ;;  %v4763_v46 = vld [vmem:[%s5051_s15 + $0x138] sm:$0xff] }
 0x3cd   : > { %2027 = vmatprep.mubr.f32.mxu0 %v4747_v56  ;;  %v4764_v56 = vld [vmem:[%s5051_s15 + $0x130] sm:$0xff] }
 0x3d0   : > { %2028 = vmatmul.mubr.f32.gmra.mrb[86].mxu0 %v4748_v60  ;;  %v4765_v60 = vld [vmem:[%s5051_s15 + $0x148] sm:$0xff] }
 0x3d1   : > { %2033 = vmatprep.mubr.f32.mxu0 %v4749_v41  ;;  %v4766_v41 = vld [vmem:[%s5051_s15 + $0x140] sm:$0xff] }
 0x3d4   : > { %2034 = vmatmul.mubr.f32.gmra.mrb[88].mxu0 %v4750_v42  ;;  %v4767_v42 = vld [vmem:[%s5051_s15 + $0x158] sm:$0xff] }
 0x3d5   : > { %2039 = vmatprep.mubr.f32.mxu0 %v4751_v11  ;;  %v4026_v11 = vld [vmem:[%s7437_s4 + $0x3e8] sm:$0xff] }
 0x3d8   : > { %2040 = vmatmul.mubr.f32.gmra.mrb[90].mxu0 %v4752_v51  ;;  %v4028_v51 = vld [vmem:[%s7437_s4 + $0x3f8] sm:$0xff] }
 0x3d9   : > { %2045 = vmatprep.mubr.f32.mxu0 %v4753_v8  ;;  %v4467_v8 = vpack.c.bf16 %v4028_v51, %v4026_v11  ;;  %v4779_v11 = vld [vmem:[%s5051_s15 + $0x1b8] sm:$0xff]  ;;  %v4780_v51 = vld [vmem:[%s5051_s15 + $0x1b0] sm:$0xff] }
 0x3db   : > { %4468 = vmatprep.subr.bf16.mxu1 %v4467_v8  ;;  %v4781_v8 = vld [vmem:[%s5051_s15 + $0x1c8] sm:$0xff] }
 0x3dc   : > { %2046 = vmatmul.mubr.f32.gmra.mrb[92].mxu0 %v4754_v35  ;;  %v4025_v35 = vld [vmem:[%s7437_s4 + $0x3e0] sm:$0xff] }
 0x3dd   : > { %2051 = vmatprep.mubr.f32.mxu0 %v4755_v32  ;;  %v4027_v32 = vld [vmem:[%s7437_s4 + $0x3f0] sm:$0xff] }
 0x3e0   : > { %2052 = vmatmul.mubr.f32.gmra.mrb[94].mxu0 %v4756_v1  ;;  %v4469_v1 = vpack.c.bf16 %v4027_v32, %v4025_v35  ;;  %v4782_v35 = vld [vmem:[%s5051_s15 + $0x1c0] sm:$0xff]  ;;  %v4783_v32 = vld [vmem:[%s5051_s15 + $0x1d8] sm:$0xff] }
 0x3e1   : > { %2057 = vmatprep.mubr.f32.mxu0 %v4757_v61  ;;  %v4768_v61 = vld [vmem:[%s5051_s15 + $0x150] sm:$0xff] }
 0x3e2   : > { %4470 = vmatpush1.bf16.msra.mxu1 %v4469_v1  ;;  %v4784_v1 = vld [vmem:[%s5051_s15 + $0x1d0] sm:$0xff] }
 0x3e4   : > { %2058 = vmatmul.mubr.f32.gmra.mrb[96].mxu0 %v4758_v37  ;;  %v4769_v37 = vld [vmem:[%s5051_s15 + $0x168] sm:$0xff] }
 0x3e5   : > { %2063 = vmatprep.mubr.f32.mxu0 %v4759_v27  ;;  %v4770_v27 = vld [vmem:[%s5051_s15 + $0x160] sm:$0xff] }
 0x3e8   : > { %2064 = vmatmul.mubr.f32.gmra.mrb[98].mxu0 %v4760_v54  ;;  %v4771_v54 = vld [vmem:[%s5051_s15 + $0x178] sm:$0xff] }
 0x3e9   : > { %2069 = vmatprep.mubr.f32.mxu0 %v4761_v52  ;;  %v4772_v52 = vld [vmem:[%s5051_s15 + $0x170] sm:$0xff] }
 0x3ec   : > { %2070 = vmatmul.mubr.f32.gmra.mrb[100].mxu0 %v4762_v9  ;;  %v4773_v9 = vld [vmem:[%s5051_s15 + $0x188] sm:$0xff] }
 0x3ed   : > { %2075 = vmatprep.mubr.f32.mxu0 %v4763_v46  ;;  %v4774_v46 = vld [vmem:[%s5051_s15 + $0x180] sm:$0xff] }
 0x3f0   : > { %2076 = vmatmul.mubr.f32.gmra.mrb[102].mxu0 %v4764_v56  ;;  %v4775_v56 = vld [vmem:[%s5051_s15 + $0x198] sm:$0xff] }
 0x3f1   : > { %2081 = vmatprep.mubr.f32.mxu0 %v4765_v60  ;;  %v4776_v60 = vld [vmem:[%s5051_s15 + $0x190] sm:$0xff] }
 0x3f4   : > { %2082 = vmatmul.mubr.f32.gmra.mrb[104].mxu0 %v4766_v41  ;;  %v4777_v41 = vld [vmem:[%s5051_s15 + $0x1a8] sm:$0xff] }
 0x3f5   : > { %2087 = vmatprep.mubr.f32.mxu0 %v4767_v42  ;;  %v4778_v42 = vld [vmem:[%s5051_s15 + $0x1a0] sm:$0xff] }
 0x3f8   : > { %2088 = vmatmul.mubr.f32.gmra.mrb[106].mxu0 %v4768_v61  ;;  %v4785_v61 = vld [vmem:[%s5051_s15 + $0x1e8] sm:$0xff] }
 0x3f9   : > { %2093 = vmatprep.mubr.f32.mxu0 %v4769_v37  ;;  %v4786_v37 = vld [vmem:[%s5051_s15 + $0x1e0] sm:$0xff] }
 0x3fc   : > { %2094 = vmatmul.mubr.f32.gmra.mrb[108].mxu0 %v4770_v27  ;;  %v4787_v27 = vld [vmem:[%s5051_s15 + $0x1f8] sm:$0xff] }
 0x3fd   : > { %2099 = vmatprep.mubr.f32.mxu0 %v4771_v54  ;;  %v4788_v54 = vld [vmem:[%s5051_s15 + $0x1f0] sm:$0xff] }
 0x400   : > { %2100 = vmatmul.mubr.f32.gmra.mrb[110].mxu0 %v4772_v52  ;;  %v4030_v52 = vld [vmem:[%s7437_s4 + $0x408] sm:$0xff] }
 0x401   : > { %2105 = vmatprep.mubr.f32.mxu0 %v4773_v9  ;;  %v4032_v9 = vld [vmem:[%s7437_s4 + $0x418] sm:$0xff] }
 0x404   : > { %2106 = vmatmul.mubr.f32.gmra.mrb[112].mxu0 %v4774_v46  ;;  %v4471_v46 = vpack.c.bf16 %v4032_v9, %v4030_v52  ;;  %v4042_v9 = vld [vmem:[%s7437_s4 + $0x468] sm:$0xff] }
 0x405   : > { %2111 = vmatprep.mubr.f32.mxu0 %v4775_v56  ;;  %v4029_v56 = vld [vmem:[%s7437_s4 + $0x400] sm:$0xff] }
 0x406   : > { %4472 = vmatprep.subr.bf16.mxu0 %v4471_v46  ;;  %v4044_v46 = vld [vmem:[%s7437_s4 + $0x478] sm:$0xff] }
 0x408   : > { %2112 = vmatmul.mubr.f32.gmra.mrb[114].mxu0 %v4776_v60  ;;  %v4031_v60 = vld [vmem:[%s7437_s4 + $0x410] sm:$0xff] }
 0x409   : > { %2117 = vmatprep.mubr.f32.mxu0 %v4777_v41  ;;  %v4473_v41 = vpack.c.bf16 %v4031_v60, %v4029_v56  ;;  %v4483_v56 = vpack.c.bf16 %v4044_v46, %v4042_v9  ;;  %v6448_v60 = vstv %s3964_s29  ;;  %v4052_v9 = vld [vmem:[%s7437_s4 + $0x4b8] sm:$0xff]  ;;  %s3960_s29 = sshll.u32 %s465_s28, 3 }
 0x40a   : > { %v2157_v46 = vmul.f32 %v6448_v60, %v5781_v4  ;;  %v4056_v4 = vld [vmem:[%s7437_s4 + $0x4d8] sm:$0xff]  ;;  %s6985_s18 = scalar_lea.vmem %s7441_s8, %s3960_s29  ;;  %s3963_s29 = sshll.u32 %s7524_s17, 3 }
 0x40b   : > { %4474 = vmatpush1.bf16.msra.mxu0 %v4473_v41  ;;  %v4041_v41 = vld [vmem:[%s7437_s4 + $0x460] sm:$0xff]  ;;  %s478_s20 = scalar_lea.vmem %s7443_s10, %s3963_s29 }
 0x40c   : > { %2118 = vmatmul.mubr.f32.gmra.mrb[116].mxu0 %v4778_v42  ;;  %v4034_v42 = vld [vmem:[%s7437_s4 + $0x428] sm:$0xff] }
 0x40d   : > { %2123 = vmatprep.mubr.f32.mxu0 %v4779_v11  ;;  %v4036_v11 = vld [vmem:[%s7437_s4 + $0x438] sm:$0xff] }
 0x410   : > { %2124 = vmatmul.mubr.f32.gmra.mrb[118].mxu0 %v4780_v51  ;;  %v4475_v51 = vpack.c.bf16 %v4036_v11, %v4034_v42  ;;  %v4043_v42 = vld [vmem:[%s7437_s4 + $0x470] sm:$0xff] }
 0x411   : > { %2129 = vmatprep.mubr.f32.mxu0 %v4781_v8  ;;  %v4033_v8 = vld [vmem:[%s7437_s4 + $0x420] sm:$0xff]  ;;  %v4485_v11 = vpack.c.bf16 %v4043_v42, %v4041_v41 }
 0x412   : > { %4476 = vmatprep.subr.bf16.mxu0 %v4475_v51  ;;  %v2155_v51 = vmul.f32 %v6448_v60, %v5778_v18  ;;  %v4049_v42 = vld [vmem:[%s7437_s4 + $0x4a0] sm:$0xff] }
 0x414   : > { %2130 = vmatmul.mubr.f32.gmra.mrb[120].mxu0 %v4782_v35  ;;  %v4035_v35 = vld [vmem:[%s7437_s4 + $0x430] sm:$0xff] }
 0x415   : > { %2135 = vmatprep.mubr.f32.mxu0 %v4783_v32  ;;  %v4477_v32 = vpack.c.bf16 %v4035_v35, %v4033_v8  ;;  %v2156_v35 = vmul.f32 %v6448_v60, %v5784_v16  ;;  %v4047_v16 = vld [vmem:[%s7437_s4 + $0x490] sm:$0xff] }
 0x417   : > { %4478 = vmatpush1.bf16.msra.mxu0 %v4477_v32 }
 0x418   : > { %2136 = vmatmul.mubr.f32.gmra.mrb[122].mxu0 %v4784_v1  ;;  %v4038_v1 = vld [vmem:[%s7437_s4 + $0x448] sm:$0xff] }
 0x419   : > { %2141 = vmatprep.mubr.f32.mxu0 %v4785_v61  ;;  %v4040_v61 = vld [vmem:[%s7437_s4 + $0x458] sm:$0xff] }
 0x41c   : > { %2142 = vmatmul.mubr.f32.gmra.mrb[124].mxu0 %v4786_v37  ;;  %v4479_v37 = vpack.c.bf16 %v4040_v61, %v4038_v1  ;;  %v4046_v61 = vld [vmem:[%s7437_s4 + $0x488] sm:$0xff] }
 0x41d   : > { %2147 = vmatprep.mubr.f32.mxu0 %v4787_v27  ;;  %v4037_v27 = vld [vmem:[%s7437_s4 + $0x440] sm:$0xff] }
 0x41e   : > { %4480 = vmatprep.subr.bf16.mxu0 %v4479_v37  ;;  %v4048_v37 = vld [vmem:[%s7437_s4 + $0x498] sm:$0xff] }
 0x420   : > { %2148 = vmatmul.mubr.f32.gmra.mrb[126].mxu0 %v4788_v54  ;;  %v4039_v54 = vld [vmem:[%s7437_s4 + $0x450] sm:$0xff] }
 0x421   : > { %v4481_v52 = vpack.c.bf16 %v4039_v54, %v4037_v27  ;;  %v4045_v27 = vld [vmem:[%s7437_s4 + $0x480] sm:$0xff]  ;;  %v4487_v54 = vpack.c.bf16 %v4048_v37, %v4046_v61 }
 0x423   : > { %4482 = vmatpush1.bf16.msra.mxu0 %v4481_v52  ;;  %v4050_v52 = vld [vmem:[%s7437_s4 + $0x4a8] sm:$0xff] }
 0x424   : > { %4484 = vmatprep.subr.bf16.mxu0 %v4483_v56  ;;  %v4489_v56 = vpack.c.bf16 %v4047_v16, %v4045_v27  ;;  %v4491_v41 = vpack.c.bf16 %v4052_v9, %v4050_v52  ;;  %v4060_v52 = vld [vmem:[%s7437_s4 + $0x4f8] sm:$0xff] }
 0x427   : > { %4486 = vmatpush1.bf16.msra.mxu0 %v4485_v11  ;;  %v4051_v11 = vld [vmem:[%s7437_s4 + $0x4b0] sm:$0xff] }
 0x428   : > { %4488 = vmatprep.subr.bf16.mxu0 %v4487_v54  ;;  %v4493_v37 = vpack.c.bf16 %v4051_v11, %v4049_v42  ;;  %v2159_v54 = vmul.f32 %v6448_v60, %v5802_v29 }
 0x42b   : > { %4490 = vmatpush1.bf16.msra.mxu0 %v4489_v56 }
 0x42c   : > { %4492 = vmatprep.subr.bf16.mxu0 %v4491_v41 }
 0x42f   : > { %4494 = vmatpush1.bf16.msra.mxu0 %v4493_v37 }
 0x477   : > { %v1963_v8 = vpop.f32.mrb[64].mxu0 }
 0x478   : > { %v2219_v32 = vadd.f32 %v2155_v51, %v1963_v8  ;;  %v1965_v1 = vpop.f32.mrb[65].mxu0  ;;  %v4054_v51 = vld [vmem:[%s7437_s4 + $0x4c8] sm:$0xff] }
 0x479   : > { %v2220_v18 = vadd.f32 %v2156_v35, %v1965_v1  ;;  %v2158_v35 = vmul.f32 %v6448_v60, %v5787_v17  ;;  %v4495_v16 = vpack.c.bf16 %v4056_v4, %v4054_v51  ;;  %v4055_v17 = vld [vmem:[%s7437_s4 + $0x4d0] sm:$0xff]  ;;  %v4057_v51 = vld [vmem:[%s7437_s4 + $0x4e0] sm:$0xff]  ;;  %v4064_v4 = vld [vmem:[%s7437_s4 + $0x518] sm:$0xff] }
 0x47b   : > { %v1969_v8 = vpop.f32.mrb[66].mxu0  ;;  %2355 = vmatprep.mubr.f32.mxu1 %v2220_v18  ;;  %v4053_v18 = vld [vmem:[%s7437_s4 + $0x4c0] sm:$0xff]  ;;  %4496 = vmatprep.subr.bf16.mxu0 %v4495_v16 }
 0x47c   : > { %v2221_v1 = vadd.f32 %v2157_v46, %v1969_v8  ;;  %v1971_v61 = vpop.f32.mrb[67].mxu0  ;;  %2356 = vmatmul.mubr.f32.vlgmr.msra.gmra.mrb[128].mxu1 %v2219_v32  ;;  %v4058_v32 = vld [vmem:[%s7437_s4 + $0x4e8] sm:$0xff]  ;;  %v2160_v46 = vmul.f32 %v6448_v60, %v5808_v28  ;;  %v4497_v42 = vpack.c.bf16 %v4055_v17, %v4053_v18  ;;  %v4059_v8 = vld [vmem:[%s7437_s4 + $0x4f0] sm:$0xff]  ;;  %v4061_v17 = vld [vmem:[%s7437_s4 + $0x500] sm:$0xff] }
 0x47d   : > { %v2222_v27 = vadd.f32 %v2158_v35, %v1971_v61  ;;  %v4499_v29 = vpack.c.bf16 %v4060_v52, %v4058_v32  ;;  %v2161_v35 = vmul.f32 %v6448_v60, %v5805_v22  ;;  %v4062_v28 = vld [vmem:[%s7437_s4 + $0x508] sm:$0xff]  ;;  %v2162_v61 = vmul.f32 %v6448_v60, %v5811_v30  ;;  %v4068_v52 = vld [vmem:[%s7437_s4 + $0x538] sm:$0xff] }
 0x47e   : > { %4498 = vmatpush1.bf16.msra.mxu0 %v4497_v42  ;;  %v4501_v16 = vpack.c.bf16 %v4059_v8, %v4057_v51  ;;  %v4503_v22 = vpack.c.bf16 %v4064_v4, %v4062_v28  ;;  %v2163_v32 = vmul.f32 %v6448_v60, %v5826_v53  ;;  %v4066_v30 = vld [vmem:[%s7437_s4 + $0x528] sm:$0xff]  ;;  %v4067_v51 = vld [vmem:[%s7437_s4 + $0x530] sm:$0xff]  ;;  %v2165_v8 = vmul.f32 %v6448_v60, %v5829_v36 }
 0x47f   : > { %v1975_v9 = vpop.f32.mrb[68].mxu0  ;;  %2361 = vmatprep.mubr.f32.mxu1 %v2222_v27  ;;  %4500 = vmatprep.subr.bf16.mxu0 %v4499_v29  ;;  %v4507_v53 = vpack.c.bf16 %v4068_v52, %v4066_v30  ;;  %v4065_v29 = vld [vmem:[%s7437_s4 + $0x520] sm:$0xff]  ;;  %v2166_v4 = vmul.f32 %v6448_v60, %v5835_v55  ;;  %v4074_v55 = vld [vmem:[%s7437_s4 + $0x568] sm:$0xff] }
 0x480   : > { %v2223_v56 = vadd.f32 %v2159_v54, %v1975_v9  ;;  %v1977_v41 = vpop.f32.mrb[69].mxu0  ;;  %2362 = vmatmul.mubr.f32.gmra.mrb[130].mxu1 %v2221_v1  ;;  %v4063_v54 = vld [vmem:[%s7437_s4 + $0x510] sm:$0xff] }
 0x481   : > { %v2224_v11 = vadd.f32 %v2160_v46, %v1977_v41  ;;  %v2164_v46 = vmul.f32 %v6448_v60, %v5832_v15  ;;  %v4505_v42 = vpack.c.bf16 %v4063_v54, %v4061_v17  ;;  %v4070_v15 = vld [vmem:[%s7437_s4 + $0x548] sm:$0xff]  ;;  %v4076_v17 = vld [vmem:[%s7437_s4 + $0x578] sm:$0xff] }
 0x482   : > { %4502 = vmatpush1.bf16.msra.mxu0 %v4501_v16  ;;  %v4069_v16 = vld [vmem:[%s7437_s4 + $0x540] sm:$0xff] }
 0x483   : > { %v1981_v1 = vpop.f32.mrb[70].mxu0  ;;  %2367 = vmatprep.mubr.f32.mxu1 %v2224_v11  ;;  %4504 = vmatprep.subr.bf16.mxu0 %v4503_v22  ;;  %v2167_v22 = vmul.f32 %v6448_v60, %v5850_v7  ;;  %v4515_v7 = vpack.c.bf16 %v4076_v17, %v4074_v55  ;;  %v4081_v55 = vld [vmem:[%s7437_s4 + $0x5a0] sm:$0xff]  ;;  %v4083_v17 = vld [vmem:[%s7437_s4 + $0x5b0] sm:$0xff] }
 0x484   : > { %v2225_v37 = vadd.f32 %v2161_v35, %v1981_v1  ;;  %v1983_v27 = vpop.f32.mrb[71].mxu0  ;;  %2368 = vmatmul.mubr.f32.gmra.mrb[132].mxu1 %v2223_v56  ;;  %v4072_v35 = vld [vmem:[%s7437_s4 + $0x558] sm:$0xff] }
 0x485   : > { %v2226_v18 = vadd.f32 %v2162_v61, %v1983_v27  ;;  %v4511_v36 = vpack.c.bf16 %v4072_v35, %v4070_v15 }
 0x486   : > { %4506 = vmatpush1.bf16.msra.mxu0 %v4505_v42  ;;  %v2169_v42 = vmul.f32 %v6448_v60, %v5853_v45 }
 0x487   : > { %v1987_v9 = vpop.f32.mrb[72].mxu0  ;;  %2373 = vmatprep.mubr.f32.mxu1 %v2226_v18  ;;  %4508 = vmatprep.subr.bf16.mxu0 %v4507_v53  ;;  %v4071_v18 = vld [vmem:[%s7437_s4 + $0x550] sm:$0xff] }
 0x488   : > { %v2227_v56 = vadd.f32 %v2163_v32, %v1987_v9  ;;  %v1989_v41 = vpop.f32.mrb[73].mxu0  ;;  %2374 = vmatmul.mubr.f32.gmra.mrb[134].mxu1 %v2225_v37  ;;  %v4509_v37 = vpack.c.bf16 %v4067_v51, %v4065_v29  ;;  %v2168_v32 = vmul.f32 %v6448_v60, %v5856_v26  ;;  %v4513_v9 = vpack.c.bf16 %v4071_v18, %v4069_v16  ;;  %v4078_v26 = vld [vmem:[%s7437_s4 + $0x588] sm:$0xff] }
 0x489   : > { %v2228_v11 = vadd.f32 %v2164_v46, %v1989_v41  ;;  %v4075_v41 = vld [vmem:[%s7437_s4 + $0x570] sm:$0xff]  ;;  %v2170_v29 = vmul.f32 %v6448_v60, %v5859_v13  ;;  %v4082_v13 = vld [vmem:[%s7437_s4 + $0x5a8] sm:$0xff] }
 0x48a   : > { %4510 = vmatpush1.bf16.msra.mxu0 %v4509_v37 }
 0x48b   : > { %v1993_v28 = vpop.f32.mrb[74].mxu0  ;;  %2379 = vmatprep.mubr.f32.mxu1 %v2228_v11  ;;  %4512 = vmatprep.subr.bf16.mxu0 %v4511_v36  ;;  %v4080_v11 = vld [vmem:[%s7437_s4 + $0x598] sm:$0xff] }
 0x48c   : > { %v2229_v1 = vadd.f32 %v2165_v8, %v1993_v28  ;;  %v1995_v61 = vpop.f32.mrb[75].mxu0  ;;  %2380 = vmatmul.mubr.f32.gmra.mrb[136].mxu1 %v2227_v56  ;;  %v4073_v56 = vld [vmem:[%s7437_s4 + $0x560] sm:$0xff]  ;;  %v4519_v45 = vpack.c.bf16 %v4080_v11, %v4078_v26  ;;  %v2175_v26 = vmul.f32 %v6448_v60, %v5898_v5  ;;  %v2176_v11 = vmul.f32 %v6448_v60, %v5904_v6 }
 0x48d   : > { %v2230_v27 = vadd.f32 %v2166_v4, %v1995_v61  ;;  %v4517_v15 = vpack.c.bf16 %v4075_v41, %v4073_v56  ;;  %v4077_v28 = vld [vmem:[%s7437_s4 + $0x580] sm:$0xff]  ;;  %v4079_v4 = vld [vmem:[%s7437_s4 + $0x590] sm:$0xff]  ;;  %v4084_v61 = vld [vmem:[%s7437_s4 + $0x5b8] sm:$0xff]  ;;  %v2178_v5 = vmul.f32 %v6448_v60, %v5907_v0  ;;  %v2181_v0 = vmul.f32 %v6448_v60, %v5925_v58 }
 0x48e   : > { %4514 = vmatpush1.bf16.msra.mxu0 %v4513_v9  ;;  %v4521_v18 = vpack.c.bf16 %v4079_v4, %v4077_v28  ;;  %v4085_v41 = vld [vmem:[%s7437_s4 + $0x5c0] sm:$0xff]  ;;  %v2179_v4 = vmul.f32 %v6448_v60, %v5922_v57 }
 0x48f   : > { %v1999_v54 = vpop.f32.mrb[76].mxu0  ;;  %2385 = vmatprep.mubr.f32.mxu1 %v2230_v27  ;;  %4516 = vmatprep.subr.bf16.mxu0 %v4515_v7  ;;  %v2172_v27 = vmul.f32 %v6448_v60, %v5880_v21  ;;  %v4086_v21 = vld [vmem:[%s7437_s4 + $0x5c8] sm:$0xff]  ;;  %v4525_v7 = vpack.c.bf16 %v4083_v17, %v4081_v55 }
 0x490   : > { %v2231_v30 = vadd.f32 %v2167_v22, %v1999_v54  ;;  %v2001_v52 = vpop.f32.mrb[77].mxu0  ;;  %2386 = vmatmul.mubr.f32.gmra.mrb[138].mxu1 %v2229_v1  ;;  %v2171_v1 = vmul.f32 %v6448_v60, %v5874_v48  ;;  %v4523_v48 = vpack.c.bf16 %v4084_v61, %v4082_v13  ;;  %v2173_v54 = vmul.f32 %v6448_v60, %v5877_v49 }
 0x491   : > { %v2232_v46 = vadd.f32 %v2168_v32, %v2001_v52  ;;  %v4088_v32 = vld [vmem:[%s7437_s4 + $0x5d8] sm:$0xff]  ;;  %v2174_v52 = vmul.f32 %v6448_v60, %v5883_v3  ;;  %v2180_v13 = vmul.f32 %v6448_v60, %v5928_v59 }
 0x492   : > { %4518 = vmatpush1.bf16.msra.mxu0 %v4517_v15  ;;  %v4527_v49 = vpack.c.bf16 %v4088_v32, %v4086_v21  ;;  %v2177_v15 = vmul.f32 %v6448_v60, %v5901_v10  ;;  %v2186_v21 = vmul.f32 %v6448_v60, %v5955_v14 }
 0x493   : > { %v2005_v53 = vpop.f32.mrb[78].mxu0  ;;  %2391 = vmatprep.mubr.f32.mxu1 %v2232_v46  ;;  %4520 = vmatprep.subr.bf16.mxu0 %v4519_v45 }
 0x494   : > { %v2233_v51 = vadd.f32 %v2169_v42, %v2005_v53  ;;  %v2007_v8 = vpop.f32.mrb[79].mxu0  ;;  %2392 = vmatmul.mubr.f32.gmra.mrb[140].mxu1 %v2231_v30  ;;  %v4087_v42 = vld [vmem:[%s7437_s4 + $0x5d0] sm:$0xff] }
 0x495   : > { %v2234_v35 = vadd.f32 %v2170_v29, %v2007_v8 }
 0x496   : > { %4522 = vmatpush1.bf16.msra.mxu0 %v4521_v18 }
 0x497   : > { %v2011_v37 = vpop.f32.mrb[80].mxu0  ;;  %2397 = vmatprep.mubr.f32.mxu1 %v2234_v35  ;;  %4524 = vmatprep.subr.bf16.mxu0 %v4523_v48  ;;  %v2184_v48 = vmul.f32 %v6448_v60, %v5952_v40 }
 0x498   : > { %v2235_v36 = vadd.f32 %v2171_v1, %v2011_v37  ;;  %v2013_v16 = vpop.f32.mrb[81].mxu0  ;;  %2398 = vmatmul.mubr.f32.gmra.mrb[142].mxu1 %v2233_v51  ;;  %v4529_v51 = vpack.c.bf16 %v4087_v42, %v4085_v41 }
 0x499   : > { %v2236_v22 = vadd.f32 %v2172_v27, %v2013_v16 }
 0x49a   : > { %4526 = vmatpush1.bf16.msra.mxu0 %v4525_v7 }
 0x49b   : > { %v2017_v30 = vpop.f32.mrb[82].mxu0  ;;  %2403 = vmatprep.mubr.f32.mxu1 %v2236_v22  ;;  %4528 = vmatprep.subr.bf16.mxu0 %v4527_v49  ;;  %v2183_v22 = vmul.f32 %v6448_v60, %v5946_v20  ;;  %v2190_v49 = vmul.f32 %v6448_v60, %v5979_v34 }
 0x49c   : > { %v2237_v9 = vadd.f32 %v2173_v54, %v2017_v30  ;;  %v2019_v46 = vpop.f32.mrb[83].mxu0  ;;  %2404 = vmatmul.mubr.f32.gmra.mrb[144].mxu1 %v2235_v36  ;;  %v2182_v36 = vmul.f32 %v6448_v60, %v5931_v23  ;;  %v2185_v54 = vmul.f32 %v6448_v60, %v5949_v2 }
 0x49d   : > { %v2238_v56 = vadd.f32 %v2174_v52, %v2019_v46  ;;  %v2187_v52 = vmul.f32 %v6448_v60, %v5970_v47 }
 0x49e   : > { %4530 = vmatpush1.bf16.msra.mxu0 %v4529_v51  ;;  %v7497_v51 = vld [vmem:[#allocation12_spill] sm:$0xff] }
 0x49f   : > { %v2023_v3 = vpop.f32.mrb[84].mxu0  ;;  %2409 = vmatprep.mubr.f32.mxu1 %v2238_v56  ;;  %v2189_v56 = vmul.f32 %v6448_v60, %v5973_v12 }
 0x4a0   : > { %v2239_v53 = vadd.f32 %v2175_v26, %v2023_v3  ;;  %v2025_v29 = vpop.f32.mrb[85].mxu0  ;;  %2410 = vmatmul.mubr.f32.gmra.mrb[146].mxu1 %v2237_v9  ;;  %v2188_v9 = vmul.f32 %v6448_v60, %v5976_v31  ;;  %v2191_v26 = vmul.f32 %v6448_v60, %v5994_v44  ;;  %v2192_v3 = vmul.f32 %v6448_v60, %v6000_v25 }
 0x4a1   : > { %v2240_v8 = vadd.f32 %v2176_v11, %v2025_v29  ;;  %v2193_v29 = vmul.f32 %v6448_v60, %v5997_v24 }
 0x4a3   : > { %v2029_v35 = vpop.f32.mrb[86].mxu0  ;;  %2415 = vmatprep.mubr.f32.mxu1 %v2240_v8  ;;  %v2194_v8 = vmul.f32 %v6448_v60, %v7497_v51 }
 0x4a4   : > { %v2241_v45 = vadd.f32 %v2177_v15, %v2029_v35  ;;  %v2031_v28 = vpop.f32.mrb[87].mxu0  ;;  %2416 = vmatmul.mubr.f32.gmra.mrb[148].mxu1 %v2239_v53 }
 0x4a5   : > { %v2242_v6 = vadd.f32 %v2178_v5, %v2031_v28  ;;  %v7498_v5 = vld [vmem:[#allocation13_spill] sm:$0xff]  ;;  %v7499_v28 = vld [vmem:[#allocation15_spill] sm:$0xff] }
 0x4a7   : > { %v2035_v1 = vpop.f32.mrb[88].mxu0  ;;  %2421 = vmatprep.mubr.f32.mxu1 %v2242_v6  ;;  %v2196_v6 = vmul.f32 %v6448_v60, %v7499_v28 }
 0x4a8   : > { %v2243_v61 = vadd.f32 %v2179_v4, %v2035_v1  ;;  %v2037_v10 = vpop.f32.mrb[89].mxu0  ;;  %2422 = vmatmul.mubr.f32.gmra.mrb[150].mxu1 %v2241_v45  ;;  %v2195_v45 = vmul.f32 %v6448_v60, %v7498_v5 }
 0x4a9   : > { %v2244_v37 = vadd.f32 %v2180_v13, %v2037_v10  ;;  %v7500_v13 = vld [vmem:[#allocation14_spill] sm:$0xff] }
 0x4ab   : > { %v2041_v27 = vpop.f32.mrb[90].mxu0  ;;  %2427 = vmatprep.mubr.f32.mxu1 %v2244_v37  ;;  %v7501_v37 = vld [vmem:[#allocation16_spill] sm:$0xff] }
 0x4ac   : > { %v2245_v16 = vadd.f32 %v2181_v0, %v2041_v27  ;;  %v2043_v18 = vpop.f32.mrb[91].mxu0  ;;  %2428 = vmatmul.mubr.f32.gmra.mrb[152].mxu1 %v2243_v61  ;;  %v2197_v61 = vmul.f32 %v6448_v60, %v7500_v13  ;;  %v2198_v0 = vmul.f32 %v6448_v60, %v7501_v37 }
 0x4ad   : > { %v2246_v57 = vadd.f32 %v2182_v36, %v2043_v18  ;;  %v7502_v18 = vld [vmem:[#allocation17_spill] sm:$0xff] }
 0x4af   : > { %v2047_v59 = vpop.f32.mrb[92].mxu0  ;;  %2433 = vmatprep.mubr.f32.mxu1 %v2246_v57  ;;  %v2199_v57 = vmul.f32 %v6448_v60, %v7502_v18 }
 0x4b0   : > { %v2247_v55 = vadd.f32 %v2183_v22, %v2047_v59  ;;  %v2049_v17 = vpop.f32.mrb[93].mxu0  ;;  %2434 = vmatmul.mubr.f32.gmra.mrb[154].mxu1 %v2245_v16  ;;  %v7503_v59 = vld [vmem:[#allocation19_spill] sm:$0xff] }
 0x4b1   : > { %v2248_v58 = vadd.f32 %v2184_v48, %v2049_v17  ;;  %v2200_v48 = vmul.f32 %v6448_v60, %v7503_v59  ;;  %v4092_v17 = vld [vmem:[%s7437_s4 + $0x5f8] sm:$0xff] }
 0x4b3   : > { %v2053_v23 = vpop.f32.mrb[94].mxu0  ;;  %2439 = vmatprep.mubr.f32.mxu1 %v2248_v58 }
 0x4b4   : > { %v2249_v32 = vadd.f32 %v2185_v54, %v2053_v23  ;;  %v2055_v30 = vpop.f32.mrb[95].mxu0  ;;  %2440 = vmatmul.mubr.f32.gmra.mrb[156].mxu1 %v2247_v55  ;;  %v4090_v55 = vld [vmem:[%s7437_s4 + $0x5e8] sm:$0xff] }
 0x4b5   : > { %v2250_v20 = vadd.f32 %v2186_v21, %v2055_v30  ;;  %v4531_v23 = vpack.c.bf16 %v4092_v17, %v4090_v55  ;;  %v4089_v21 = vld [vmem:[%s7437_s4 + $0x5e0] sm:$0xff]  ;;  %v2213_v55 = vmul.f32 %v6448_v60, %v6153_v43 }
 0x4b7   : > { %v2059_v40 = vpop.f32.mrb[96].mxu0  ;;  %2445 = vmatprep.mubr.f32.mxu1 %v2250_v20  ;;  %4532 = vmatprep.subr.bf16.mxu0 %v4531_v23 }
 0x4b8   : > { %v2251_v46 = vadd.f32 %v2187_v52, %v2059_v40  ;;  %v2061_v7 = vpop.f32.mrb[97].mxu0  ;;  %2446 = vmatmul.mubr.f32.gmra.mrb[158].mxu1 %v2249_v32  ;;  %v4091_v32 = vld [vmem:[%s7437_s4 + $0x5f0] sm:$0xff]  ;;  %v7504_v52 = vld [vmem:[#allocation18_spill] sm:$0xff] }
 0x4b9   : > { %v2252_v2 = vadd.f32 %v2188_v9, %v2061_v7  ;;  %v4533_v20 = vpack.c.bf16 %v4091_v32, %v4089_v21  ;;  %v2201_v40 = vmul.f32 %v6448_v60, %v7504_v52  ;;  %v2215_v21 = vmul.f32 %v6448_v60, %v6184_v38 }
 0x4ba   : > { %v2216_v32 = vmul.f32 %v6448_v60, %v6190_v19  ;;  %v3162_v19 = vld [vmem:[%s6733_s26 + $0x20] sm:$0xff] }
 0x4bb   : > { %v2065_v14 = vpop.f32.mrb[98].mxu0  ;;  %2451 = vmatprep.mubr.f32.mxu1 %v2252_v2  ;;  %4534 = vmatpush1.bf16.msra.mxu0 %v4533_v20 }
 0x4bc   : > { %v2253_v41 = vadd.f32 %v2189_v56, %v2065_v14  ;;  %v2067_v42 = vpop.f32.mrb[99].mxu0  ;;  %2452 = vmatmul.mubr.f32.gmra.mrb[160].mxu1 %v2251_v46  ;;  %v7505_v46 = vld [vmem:[#allocation20_spill] sm:$0xff] }
 0x4bd   : > { %v2254_v47 = vadd.f32 %v2190_v49, %v2067_v42  ;;  %v2202_v7 = vmul.f32 %v6448_v60, %v7505_v46  ;;  %v7506_v49 = vld [vmem:[#allocation21_spill] sm:$0xff] }
 0x4bf   : > { %v2071_v31 = vpop.f32.mrb[100].mxu0  ;;  %2457 = vmatprep.mubr.f32.mxu1 %v2254_v47  ;;  %v7507_v47 = vld [vmem:[#allocation23_spill] sm:$0xff] }
 0x4c0   : > { %v2255_v11 = vadd.f32 %v2191_v26, %v2071_v31  ;;  %v2073_v53 = vpop.f32.mrb[101].mxu0  ;;  %2458 = vmatmul.mubr.f32.gmra.mrb[162].mxu1 %v2253_v41  ;;  %v2203_v41 = vmul.f32 %v6448_v60, %v7506_v49  ;;  %v2204_v26 = vmul.f32 %v6448_v60, %v7507_v47  ;;  %v3166_v49 = vld [vmem:[%s6733_s26 + $0x40] sm:$0xff]  ;;  %v3161_v47 = vld [vmem:[%s6733_s26 + $0x18] sm:$0xff] }
 0x4c1   : > { %v2256_v12 = vadd.f32 %v2192_v3, %v2073_v53  ;;  %v7508_v53 = vld [vmem:[#allocation22_spill] sm:$0xff] }
 0x4c3   : > { %v2077_v34 = vpop.f32.mrb[102].mxu0  ;;  %2463 = vmatprep.mubr.f32.mxu1 %v2256_v12  ;;  %v2205_v12 = vmul.f32 %v6448_v60, %v7508_v53  ;;  %v3175_v53 = vld [vmem:[%s6733_s26 + $0x88] sm:$0xff] }
 0x4c4   : > { %v2257_v15 = vadd.f32 %v2193_v29, %v2077_v34  ;;  %v2079_v35 = vpop.f32.mrb[103].mxu0  ;;  %2464 = vmatmul.mubr.f32.gmra.mrb[164].mxu1 %v2255_v11  ;;  %v7509_v34 = vld [vmem:[#allocation24_spill] sm:$0xff] }
 0x4c5   : > { %v2258_v44 = vadd.f32 %v2194_v8, %v2079_v35  ;;  %v2206_v51 = vmul.f32 %v6448_v60, %v7509_v34  ;;  %v6761_v34 = vld [vmem:[%s7438_s5 + $0x8] sm:$0xff] }
 0x4c7   : > { %v2083_v25 = vpop.f32.mrb[104].mxu0  ;;  %2469 = vmatprep.mubr.f32.mxu1 %v2258_v44  ;;  %v7510_v44 = vld [vmem:[#allocation25_spill] sm:$0xff] }
 0x4c8   : > { %v2259_v4 = vadd.f32 %v2195_v45, %v2083_v25  ;;  %v2085_v1 = vpop.f32.mrb[105].mxu0  ;;  %2470 = vmatmul.mubr.f32.gmra.mrb[166].mxu1 %v2257_v15  ;;  %v2207_v5 = vmul.f32 %v6448_v60, %v7510_v44  ;;  %v7511_v25 = vld [vmem:[#allocation27_spill] sm:$0xff] }
 0x4c9   : > { %v2260_v24 = vadd.f32 %v2196_v6, %v2085_v1  ;;  %v2208_v28 = vmul.f32 %v6448_v60, %v7511_v25  ;;  %v3172_v25 = vld [vmem:[%s6733_s26 + $0x70] sm:$0xff] }
 0x4cb   : > { %v2089_v10 = vpop.f32.mrb[106].mxu0  ;;  %2475 = vmatprep.mubr.f32.mxu1 %v2260_v24  ;;  %v7512_v24 = vld [vmem:[#allocation26_spill] sm:$0xff] }
 0x4cc   : > { %v2261_v27 = vadd.f32 %v2197_v61, %v2089_v10  ;;  %v2091_v36 = vpop.f32.mrb[107].mxu0  ;;  %2476 = vmatmul.mubr.f32.gmra.mrb[168].mxu1 %v2259_v4  ;;  %v2209_v13 = vmul.f32 %v6448_v60, %v7512_v24  ;;  %v7513_v10 = vld [vmem:[#allocation28_spill] sm:$0xff] }
 0x4cd   : > { %v2262_v16 = vadd.f32 %v2198_v0, %v2091_v36  ;;  %v2210_v37 = vmul.f32 %v6448_v60, %v7513_v10 }
 0x4cf   : > { %v2095_v22 = vpop.f32.mrb[108].mxu0  ;;  %2481 = vmatprep.mubr.f32.mxu1 %v2262_v16  ;;  %v2211_v16 = vmul.f32 %v6448_v60, %v6150_v39 }
 0x4d0   : > { %v2263_v58 = vadd.f32 %v2199_v57, %v2095_v22  ;;  %v2097_v54 = vpop.f32.mrb[109].mxu0  ;;  %2482 = vmatmul.mubr.f32.gmra.mrb[170].mxu1 %v2261_v27  ;;  %v2212_v57 = vmul.f32 %v6448_v60, %v6156_v62 }
 0x4d1   : > { %v2264_v30 = vadd.f32 %v2200_v48, %v2097_v54 }
 0x4d3   : > { %v2101_v9 = vpop.f32.mrb[110].mxu0  ;;  %2487 = vmatprep.mubr.f32.mxu1 %v2264_v30 }
 0x4d4   : > { %v2265_v2 = vadd.f32 %v2201_v40, %v2101_v9  ;;  %v2103_v56 = vpop.f32.mrb[111].mxu0  ;;  %2488 = vmatmul.mubr.f32.gmra.mrb[172].mxu1 %v2263_v58  ;;  %v2214_v58 = vmul.f32 %v6448_v60, %v6159_v33  ;;  %v2217_v33 = vmul.f32 %v6448_v60, %v6187_v63  ;;  %v2218_v40 = vmul.f32 %v6448_v60, %v6193_v50  ;;  %v3163_v50 = vld [vmem:[%s6733_s26 + $0x28] sm:$0xff] }
 0x4d5   : > { %v2266_v14 = vadd.f32 %v2202_v7, %v2103_v56  ;;  %v4883_v63 = vmov 0   ;;  %v3167_v60 = vld [vmem:[%s6733_s26 + $0x48] sm:$0xff]  ;;  %v3158_v7 = vld [vmem:[%s6733_s26] sm:$0xff] }
 0x4d6   : > { %4720 = vset.pattern.permute.xlu1 %v4883_v63  ;;  %4719 = vset.pattern.permute.xlu0 %v4883_v63  ;;  %v3159_v56 = vld [vmem:[%s6733_s26 + $0x8] sm:$0xff] }
 0x4d7   : > { %v2107_v42 = vpop.f32.mrb[112].mxu0  ;;  %2493 = vmatprep.mubr.f32.mxu1 %v2266_v14  ;;  %3212 = vperm.xlu1 %4720, %v3162_v19   ;;  %v3171_v14 = vld [vmem:[%s6733_s26 + $0x68] sm:$0xff]  ;;  %v3177_v19 = vld [vmem:[%s6733_s26 + $0x98] sm:$0xff] }
 0x4d8   : > { %v2267_v31 = vadd.f32 %v2203_v41, %v2107_v42  ;;  %v2109_v3 = vpop.f32.mrb[113].mxu0  ;;  %2494 = vmatmul.mubr.f32.gmra.mrb[174].mxu1 %v2265_v2  ;;  %3192 = vperm.xlu0 %4719, %v3158_v7   ;;  %v3164_v2 = vld [vmem:[%s6733_s26 + $0x30] sm:$0xff]  ;;  %v3174_v41 = vld [vmem:[%s6733_s26 + $0x80] sm:$0xff] }
 0x4d9   : > { %v2268_v11 = vadd.f32 %v2204_v26, %v2109_v3  ;;  %v3160_v42 = vld [vmem:[%s6733_s26 + $0x10] sm:$0xff]  ;;  %v3170_v26 = vld [vmem:[%s6733_s26 + $0x60] sm:$0xff] }
 0x4da   : > { %v7514_v3 = vld [vmem:[#allocation11_spill] sm:$0xff] }
 0x4db   : > { %v2113_v29 = vpop.f32.mrb[114].mxu0  ;;  %2499 = vmatprep.mubr.f32.mxu1 %v2268_v11  ;;  %3217 = vperm.xlu1 %4720, %v3163_v50   ;;  %v2285_v11 = vsub.s32 2, %v7514_v3  ;;  %v3187_v50 = vld [vmem:[%s6733_s26 + $0xe8] sm:$0xff] }
 0x4dc   : > { %v2269_v8 = vadd.f32 %v2205_v12, %v2113_v29  ;;  %v2115_v15 = vpop.f32.mrb[115].mxu0  ;;  %2500 = vmatmul.mubr.f32.gmra.mrb[176].mxu1 %v2267_v31  ;;  %3197 = vperm.xlu0 %4719, %v3159_v56   ;;  %v3168_v31 = vld [vmem:[%s6733_s26 + $0x50] sm:$0xff]  ;;  %v6753_v12 = vld [vmem:[%s7438_s5] sm:$0xff] }
 0x4dd   : > { %v2270_v35 = vadd.f32 %v2206_v51, %v2115_v15  ;;  %v6756_v29 = vrot.slane %v6753_v12, %v2285_v11  ;;  %v6764_v51 = vrot.slane %v6761_v34, %v2285_v11 }
 0x4df   : > { %v2119_v45 = vpop.f32.mrb[116].mxu0  ;;  %2505 = vmatprep.mubr.f32.mxu1 %v2270_v35  ;;  %3237 = vperm.xlu1 %4720, %v3167_v60  }
 0x4e0   : > { %v2271_v6 = vadd.f32 %v2207_v5, %v2119_v45  ;;  %v2121_v4 = vpop.f32.mrb[117].mxu0  ;;  %2506 = vmatmul.mubr.f32.gmra.mrb[178].mxu1 %v2269_v8  ;;  %3232 = vperm.xlu0 %4719, %v3166_v49   ;;  %v3165_v8 = vld [vmem:[%s6733_s26 + $0x38] sm:$0xff]  ;;  %v3178_v45 = vld [vmem:[%s6733_s26 + $0xa0] sm:$0xff] }
 0x4e1   : > { %v2272_v1 = vadd.f32 %v2208_v28, %v2121_v4 }
 0x4e3   : > { %v2125_v61 = vpop.f32.mrb[118].mxu0  ;;  %2511 = vmatprep.mubr.f32.mxu1 %v2272_v1  ;;  %3222 = vperm.xlu1 %4720, %v3164_v2  }
 0x4e4   : > { %v2273_v0 = vadd.f32 %v2209_v13, %v2125_v61  ;;  %v2127_v27 = vpop.f32.mrb[119].mxu0  ;;  %2512 = vmatmul.mubr.f32.gmra.mrb[180].mxu1 %v2271_v6  ;;  %3202 = vperm.xlu0 %4719, %v3160_v42   ;;  %v3169_v13 = vld [vmem:[%s6733_s26 + $0x58] sm:$0xff]  ;;  %v3179_v61 = vld [vmem:[%s6733_s26 + $0xa8] sm:$0xff]  ;;  %v3184_v42 = vld [vmem:[%s6733_s26 + $0xd0] sm:$0xff] }
 0x4e5   : > { %v2274_v36 = vadd.f32 %v2210_v37, %v2127_v27 }
 0x4e7   : > { %v2131_v18 = vpop.f32.mrb[120].mxu0  ;;  %2517 = vmatprep.mubr.f32.mxu1 %v2274_v36  ;;  %3257 = vperm.xlu1 %4720, %v3171_v14  }
 0x4e8   : > { %v2275_v22 = vadd.f32 %v2211_v16, %v2131_v18  ;;  %v2133_v59 = vpop.f32.mrb[121].mxu0  ;;  %2518 = vmatmul.mubr.f32.gmra.mrb[182].mxu1 %v2273_v0  ;;  %3252 = vperm.xlu0 %4719, %v3170_v26   ;;  %v3182_v18 = vld [vmem:[%s6733_s26 + $0xc0] sm:$0xff] }
 0x4e9   : > { %v2276_v48 = vadd.f32 %v2212_v57, %v2133_v59  ;;  %v3176_v57 = vld [vmem:[%s6733_s26 + $0x90] sm:$0xff] }
 0x4eb   : > { %v2137_v17 = vpop.f32.mrb[122].mxu0  ;;  %2523 = vmatprep.mubr.f32.mxu1 %v2276_v48  ;;  %3272 = vperm.xlu1 %4720, %v3174_v41   ;;  %v3181_v41 = vld [vmem:[%s6733_s26 + $0xb8] sm:$0xff] }
 0x4ec   : > { %v2277_v54 = vadd.f32 %v2213_v55, %v2137_v17  ;;  %v2139_v23 = vpop.f32.mrb[123].mxu0  ;;  %2524 = vmatmul.mubr.f32.gmra.mrb[184].mxu1 %v2275_v22  ;;  %3242 = vperm.xlu0 %4719, %v3168_v31  }
 0x4ed   : > { %v2278_v39 = vadd.f32 %v2214_v58, %v2139_v23  ;;  %v3183_v23 = vld [vmem:[%s6733_s26 + $0xc8] sm:$0xff] }
 0x4ef   : > { %v2143_v62 = vpop.f32.mrb[124].mxu0  ;;  %2529 = vmatprep.mubr.f32.mxu1 %v2278_v39  ;;  %3207 = vperm.xlu1 %4720, %v3161_v47  }
 0x4f0   : > { %v2279_v30 = vadd.f32 %v2215_v21, %v2143_v62  ;;  %v2145_v43 = vpop.f32.mrb[125].mxu0  ;;  %2530 = vmatmul.mubr.f32.gmra.mrb[186].mxu1 %v2277_v54  ;;  %3277 = vperm.xlu0 %4719, %v3175_v53   ;;  %v3173_v54 = vld [vmem:[%s6733_s26 + $0x78] sm:$0xff] }
 0x4f1   : > { %v2280_v20 = vadd.f32 %v2216_v32, %v2145_v43 }
 0x4f3   : > { %v2149_v52 = vpop.f32.mrb[126].mxu0  ;;  %2535 = vmatprep.mubr.f32.mxu1 %v2280_v20  ;;  %3262 = vperm.xlu1 %4720, %v3172_v25   ;;  %v3186_v20 = vld [vmem:[%s6733_s26 + $0xe0] sm:$0xff] }
 0x4f4   : > { %v2281_v9 = vadd.f32 %v2217_v33, %v2149_v52  ;;  %v2151_v38 = vpop.f32.mrb[127].mxu0  ;;  %2536 = vmatmul.mubr.f32.gmra.mrb[188].mxu1 %v2279_v30  ;;  %3227 = vperm.xlu0 %4719, %v3165_v8   ;;  %v3180_v33 = vld [vmem:[%s6733_s26 + $0xb0] sm:$0xff] }
 0x4f5   : > { %v2282_v46 = vadd.f32 %v2218_v40, %v2151_v38 }
 0x4f7   : > { %2541 = vmatprep.mubr.f32.mxu1 %v2282_v46  ;;  %3297 = vperm.xlu1 %4720, %v3179_v61  }
 0x4f8   : > { %2542 = vmatmul.mubr.f32.gmra.mrb[190].mxu1 %v2281_v9  ;;  %3292 = vperm.xlu0 %4719, %v3178_v45  }
 0x4fb   : > { %3282 = vperm.xlu1 %4720, %v3176_v57  }
 0x4fc   : > { %3247 = vperm.xlu0 %4719, %v3169_v13  }
 0x4ff   : > { %3317 = vperm.xlu1 %4720, %v3183_v23  }
 0x500   : > { %3312 = vperm.xlu0 %4719, %v3182_v18  }
 0x503   : > { %3302 = vperm.xlu1 %4720, %v3180_v33  }
 0x504   : > { %3267 = vperm.xlu0 %4719, %v3173_v54  }
 0x507   : > { %3337 = vperm.xlu1 %4720, %v3187_v50  }
 0x508   : > { %3332 = vperm.xlu0 %4719, %v3186_v20  }
 0x50b   : > { %3322 = vperm.xlu1 %4720, %v3184_v42  }
 0x50c   : > { %3287 = vperm.xlu0 %4719, %v3177_v19  }
 0x510   : > { %3307 = vperm.xlu0 %4719, %v3181_v41  }
 0x54f   : > { %v2357_v15 = vpop.f32.mrb[128].mxu1 }
 0x550   : > { %v2358_v35 = vadd.f32 %v2357_v15, %v6756_v29  ;;  %v2359_v44 = vpop.f32.mrb[129].mxu1  ;;  %v3185_v15 = vld [vmem:[%s6733_s26 + $0xd8] sm:$0xff] }
 0x551   : > { %v2360_v5 = vadd.f32 %v2359_v44, %v6764_v51  ;;  %3327 = vperm.xlu0 %4719, %v3185_v15  }
 0x552   : > { %v2548_v4 = vmax.f32 %v2358_v35, 0.0 }
 0x553   : > { %v2549_v28 = vmax.f32 %v2360_v5, 0.0  ;;  %v2363_v6 = vpop.f32.mrb[130].mxu1 }
 0x554   : > { %v2364_v1 = vadd.f32 %v2363_v6, %v6756_v29  ;;  %v2365_v24 = vpop.f32.mrb[131].mxu1 }
 0x555   : > { %v2366_v10 = vadd.f32 %v2365_v24, %v6764_v51  ;;  %2684 = vmatprep.mubr.f32.mxu0 %v2549_v28 }
 0x556   : > { %2685 = vmatmul.mubr.f32.vlgmr.msra.gmra.mrb[128].mxu0 %v2548_v4  ;;  %v2550_v27 = vmax.f32 %v2364_v1, 0.0 }
 0x557   : > { %v2551_v37 = vmax.f32 %v2366_v10, 0.0  ;;  %v2369_v0 = vpop.f32.mrb[132].mxu1 }
 0x558   : > { %v2370_v36 = vadd.f32 %v2369_v0, %v6756_v29  ;;  %v2371_v16 = vpop.f32.mrb[133].mxu1 }
 0x559   : > { %v2372_v22 = vadd.f32 %v2371_v16, %v6764_v51  ;;  %2690 = vmatprep.mubr.f32.mxu0 %v2551_v37 }
 0x55a   : > { %2691 = vmatmul.mubr.f32.gmra.mrb[130].mxu0 %v2550_v27  ;;  %v2552_v55 = vmax.f32 %v2370_v36, 0.0 }
 0x55b   : > { %v2553_v59 = vmax.f32 %v2372_v22, 0.0  ;;  %v2375_v48 = vpop.f32.mrb[134].mxu1 }
 0x55c   : > { %v2376_v17 = vadd.f32 %v2375_v48, %v6756_v29  ;;  %v2377_v58 = vpop.f32.mrb[135].mxu1 }
 0x55d   : > { %v2378_v39 = vadd.f32 %v2377_v58, %v6764_v51  ;;  %2696 = vmatprep.mubr.f32.mxu0 %v2553_v59 }
 0x55e   : > { %2697 = vmatmul.mubr.f32.gmra.mrb[132].mxu0 %v2552_v55  ;;  %v2554_v32 = vmax.f32 %v2376_v17, 0.0 }
 0x55f   : > { %v2555_v21 = vmax.f32 %v2378_v39, 0.0  ;;  %v2381_v62 = vpop.f32.mrb[136].mxu1 }
 0x560   : > { %v2382_v30 = vadd.f32 %v2381_v62, %v6756_v29  ;;  %v2383_v43 = vpop.f32.mrb[137].mxu1 }
 0x561   : > { %v2384_v52 = vadd.f32 %v2383_v43, %v6764_v51  ;;  %2702 = vmatprep.mubr.f32.mxu0 %v2555_v21 }
 0x562   : > { %2703 = vmatmul.mubr.f32.gmra.mrb[134].mxu0 %v2554_v32  ;;  %v2556_v38 = vmax.f32 %v2382_v30, 0.0 }
 0x563   : > { %v2557_v40 = vmax.f32 %v2384_v52, 0.0  ;;  %v2387_v9 = vpop.f32.mrb[138].mxu1 }
 0x564   : > { %v2388_v46 = vadd.f32 %v2387_v9, %v6756_v29  ;;  %v2389_v63 = vpop.f32.mrb[139].mxu1 }
 0x565   : > { %v2390_v60 = vadd.f32 %v2389_v63, %v6764_v51  ;;  %2708 = vmatprep.mubr.f32.mxu0 %v2557_v40 }
 0x566   : > { %2709 = vmatmul.mubr.f32.gmra.mrb[136].mxu0 %v2556_v38  ;;  %v2558_v56 = vmax.f32 %v2388_v46, 0.0 }
 0x567   : > { %v2559_v7 = vmax.f32 %v2390_v60, 0.0  ;;  %v2393_v2 = vpop.f32.mrb[140].mxu1 }
 0x568   : > { %v2394_v14 = vadd.f32 %v2393_v2, %v6756_v29  ;;  %v2395_v49 = vpop.f32.mrb[141].mxu1 }
 0x569   : > { %v2396_v47 = vadd.f32 %v2395_v49, %v6764_v51  ;;  %2714 = vmatprep.mubr.f32.mxu0 %v2559_v7 }
 0x56a   : > { %2715 = vmatmul.mubr.f32.gmra.mrb[138].mxu0 %v2558_v56  ;;  %v2560_v11 = vmax.f32 %v2394_v14, 0.0 }
 0x56b   : > { %v2561_v26 = vmax.f32 %v2396_v47, 0.0  ;;  %v2399_v31 = vpop.f32.mrb[142].mxu1 }
 0x56c   : > { %v2400_v53 = vadd.f32 %v2399_v31, %v6756_v29  ;;  %v2401_v8 = vpop.f32.mrb[143].mxu1 }
 0x56d   : > { %v2402_v35 = vadd.f32 %v2401_v8, %v6764_v51  ;;  %2720 = vmatprep.mubr.f32.mxu0 %v2561_v26 }
 0x56e   : > { %2721 = vmatmul.mubr.f32.gmra.mrb[140].mxu0 %v2560_v11  ;;  %v2562_v45 = vmax.f32 %v2400_v53, 0.0 }
 0x56f   : > { %v2563_v44 = vmax.f32 %v2402_v35, 0.0  ;;  %v2405_v5 = vpop.f32.mrb[144].mxu1 }
 0x570   : > { %v2406_v25 = vadd.f32 %v2405_v5, %v6756_v29  ;;  %v2407_v28 = vpop.f32.mrb[145].mxu1 }
 0x571   : > { %v2408_v6 = vadd.f32 %v2407_v28, %v6764_v51  ;;  %2726 = vmatprep.mubr.f32.mxu0 %v2563_v44 }
 0x572   : > { %2727 = vmatmul.mubr.f32.gmra.mrb[142].mxu0 %v2562_v45  ;;  %v2564_v24 = vmax.f32 %v2406_v25, 0.0 }
 0x573   : > { %v2565_v4 = vmax.f32 %v2408_v6, 0.0  ;;  %v2411_v1 = vpop.f32.mrb[146].mxu1 }
 0x574   : > { %v2412_v13 = vadd.f32 %v2411_v1, %v6756_v29  ;;  %v2413_v61 = vpop.f32.mrb[147].mxu1 }
 0x575   : > { %v2414_v10 = vadd.f32 %v2413_v61, %v6764_v51  ;;  %2732 = vmatprep.mubr.f32.mxu0 %v2565_v4 }
 0x576   : > { %2733 = vmatmul.mubr.f32.gmra.mrb[144].mxu0 %v2564_v24  ;;  %v2566_v27 = vmax.f32 %v2412_v13, 0.0 }
 0x577   : > { %v2567_v37 = vmax.f32 %v2414_v10, 0.0  ;;  %v2417_v0 = vpop.f32.mrb[148].mxu1 }
 0x578   : > { %v2418_v36 = vadd.f32 %v2417_v0, %v6756_v29  ;;  %v2419_v16 = vpop.f32.mrb[149].mxu1 }
 0x579   : > { %v2420_v18 = vadd.f32 %v2419_v16, %v6764_v51  ;;  %2738 = vmatprep.mubr.f32.mxu0 %v2567_v37 }
 0x57a   : > { %2739 = vmatmul.mubr.f32.gmra.mrb[146].mxu0 %v2566_v27  ;;  %v2568_v59 = vmax.f32 %v2418_v36, 0.0 }
 0x57b   : > { %v2569_v57 = vmax.f32 %v2420_v18, 0.0  ;;  %v2423_v22 = vpop.f32.mrb[150].mxu1 }
 0x57c   : > { %v2424_v48 = vadd.f32 %v2423_v22, %v6756_v29  ;;  %v2425_v55 = vpop.f32.mrb[151].mxu1 }
 0x57d   : > { %v2426_v17 = vadd.f32 %v2425_v55, %v6764_v51  ;;  %2744 = vmatprep.mubr.f32.mxu0 %v2569_v57 }
 0x57e   : > { %2745 = vmatmul.mubr.f32.gmra.mrb[148].mxu0 %v2568_v59  ;;  %v2570_v23 = vmax.f32 %v2424_v48, 0.0 }
 0x57f   : > { %v2571_v58 = vmax.f32 %v2426_v17, 0.0  ;;  %v2429_v54 = vpop.f32.mrb[152].mxu1 }
 0x580   : > { %v2430_v39 = vadd.f32 %v2429_v54, %v6756_v29  ;;  %v2431_v21 = vpop.f32.mrb[153].mxu1 }
 0x581   : > { %v2432_v62 = vadd.f32 %v2431_v21, %v6764_v51  ;;  %2750 = vmatprep.mubr.f32.mxu0 %v2571_v58 }
 0x582   : > { %2751 = vmatmul.mubr.f32.gmra.mrb[150].mxu0 %v2570_v23  ;;  %v2572_v43 = vmax.f32 %v2430_v39, 0.0 }
 0x583   : > { %v2573_v32 = vmax.f32 %v2432_v62, 0.0  ;;  %v2435_v30 = vpop.f32.mrb[154].mxu1 }
 0x584   : > { %v2436_v20 = vadd.f32 %v2435_v30, %v6756_v29  ;;  %v2437_v33 = vpop.f32.mrb[155].mxu1  ;;  %v3188_v30 = vld [vmem:[%s6733_s26 + $0xf0] sm:$0xff] }
 0x585   : > { %v2438_v52 = vadd.f32 %v2437_v33, %v6764_v51  ;;  %2756 = vmatprep.mubr.f32.mxu0 %v2573_v32  ;;  %3342 = vperm.xlu1 %4720, %v3188_v30  }
 0x586   : > { %2757 = vmatmul.mubr.f32.gmra.mrb[152].mxu0 %v2572_v43  ;;  %v2574_v38 = vmax.f32 %v2436_v20, 0.0 }
 0x587   : > { %v2575_v40 = vmax.f32 %v2438_v52, 0.0  ;;  %v2441_v9 = vpop.f32.mrb[156].mxu1 }
 0x588   : > { %v2442_v46 = vadd.f32 %v2441_v9, %v6756_v29  ;;  %v2443_v63 = vpop.f32.mrb[157].mxu1 }
 0x589   : > { %v2444_v19 = vadd.f32 %v2443_v63, %v6764_v51  ;;  %2762 = vmatprep.mubr.f32.mxu0 %v2575_v40 }
 0x58a   : > { %2763 = vmatmul.mubr.f32.gmra.mrb[154].mxu0 %v2574_v38  ;;  %v2576_v7 = vmax.f32 %v2442_v46, 0.0  ;;  %v3189_v38 = vld [vmem:[%s6733_s26 + $0xf8] sm:$0xff] }
 0x58b   : > { %v2577_v50 = vmax.f32 %v2444_v19, 0.0  ;;  %v2447_v60 = vpop.f32.mrb[158].mxu1  ;;  %3347 = vperm.xlu1 %4720, %v3189_v38  }
 0x58c   : > { %v2448_v2 = vadd.f32 %v2447_v60, %v6756_v29  ;;  %v2449_v56 = vpop.f32.mrb[159].mxu1 }
 0x58d   : > { %v2450_v14 = vadd.f32 %v2449_v56, %v6764_v51  ;;  %2768 = vmatprep.mubr.f32.mxu0 %v2577_v50 }
 0x58e   : > { %2769 = vmatmul.mubr.f32.gmra.mrb[156].mxu0 %v2576_v7  ;;  %v2578_v42 = vmax.f32 %v2448_v2, 0.0 }
 0x58f   : > { %v2579_v49 = vmax.f32 %v2450_v14, 0.0  ;;  %v2453_v41 = vpop.f32.mrb[160].mxu1 }
 0x590   : > { %v2454_v47 = vadd.f32 %v2453_v41, %v6756_v29  ;;  %v2455_v26 = vpop.f32.mrb[161].mxu1 }
 0x591   : > { %v2456_v31 = vadd.f32 %v2455_v26, %v6764_v51  ;;  %2774 = vmatprep.mubr.f32.mxu0 %v2579_v49 }
 0x592   : > { %2775 = vmatmul.mubr.f32.gmra.mrb[158].mxu0 %v2578_v42  ;;  %v2580_v8 = vmax.f32 %v2454_v47, 0.0 }
 0x593   : > { %v2581_v11 = vmax.f32 %v2456_v31, 0.0  ;;  %v2459_v53 = vpop.f32.mrb[162].mxu1 }
 0x594   : > { %v2460_v15 = vadd.f32 %v2459_v53, %v6756_v29  ;;  %v2461_v35 = vpop.f32.mrb[163].mxu1 }
 0x595   : > { %v2462_v44 = vadd.f32 %v2461_v35, %v6764_v51  ;;  %2780 = vmatprep.mubr.f32.mxu0 %v2581_v11 }
 0x596   : > { %2781 = vmatmul.mubr.f32.gmra.mrb[160].mxu0 %v2580_v8  ;;  %v2582_v25 = vmax.f32 %v2460_v15, 0.0 }
 0x597   : > { %v2583_v5 = vmax.f32 %v2462_v44, 0.0  ;;  %v2465_v45 = vpop.f32.mrb[164].mxu1 }
 0x598   : > { %v2466_v28 = vadd.f32 %v2465_v45, %v6756_v29  ;;  %v2467_v6 = vpop.f32.mrb[165].mxu1 }
 0x599   : > { %v2468_v4 = vadd.f32 %v2467_v6, %v6764_v51  ;;  %2786 = vmatprep.mubr.f32.mxu0 %v2583_v5 }
 0x59a   : > { %2787 = vmatmul.mubr.f32.gmra.mrb[162].mxu0 %v2582_v25  ;;  %v2584_v13 = vmax.f32 %v2466_v28, 0.0 }
 0x59b   : > { %v2585_v1 = vmax.f32 %v2468_v4, 0.0  ;;  %v2471_v24 = vpop.f32.mrb[166].mxu1 }
 0x59c   : > { %v2472_v61 = vadd.f32 %v2471_v24, %v6756_v29  ;;  %v2473_v10 = vpop.f32.mrb[167].mxu1 }
 0x59d   : > { %v2474_v37 = vadd.f32 %v2473_v10, %v6764_v51  ;;  %2792 = vmatprep.mubr.f32.mxu0 %v2585_v1 }
 0x59e   : > { %2793 = vmatmul.mubr.f32.gmra.mrb[164].mxu0 %v2584_v13  ;;  %v2586_v36 = vmax.f32 %v2472_v61, 0.0 }
 0x59f   : > { %v2587_v0 = vmax.f32 %v2474_v37, 0.0  ;;  %v2477_v27 = vpop.f32.mrb[168].mxu1 }
 0x5a0   : > { %v2478_v16 = vadd.f32 %v2477_v27, %v6756_v29  ;;  %v2479_v18 = vpop.f32.mrb[169].mxu1 }
 0x5a1   : > { %v2480_v57 = vadd.f32 %v2479_v18, %v6764_v51  ;;  %2798 = vmatprep.mubr.f32.mxu0 %v2587_v0 }
 0x5a2   : > { %2799 = vmatmul.mubr.f32.gmra.mrb[166].mxu0 %v2586_v36  ;;  %v2588_v48 = vmax.f32 %v2478_v16, 0.0 }
 0x5a3   : > { %v2589_v22 = vmax.f32 %v2480_v57, 0.0  ;;  %v2483_v59 = vpop.f32.mrb[170].mxu1 }
 0x5a4   : > { %v2484_v55 = vadd.f32 %v2483_v59, %v6756_v29  ;;  %v2485_v17 = vpop.f32.mrb[171].mxu1 }
 0x5a5   : > { %v2486_v58 = vadd.f32 %v2485_v17, %v6764_v51  ;;  %2804 = vmatprep.mubr.f32.mxu0 %v2589_v22 }
 0x5a6   : > { %2805 = vmatmul.mubr.f32.gmra.mrb[168].mxu0 %v2588_v48  ;;  %v2590_v39 = vmax.f32 %v2484_v55, 0.0 }
 0x5a7   : > { %v2591_v54 = vmax.f32 %v2486_v58, 0.0  ;;  %v2489_v23 = vpop.f32.mrb[172].mxu1 }
 0x5a8   : > { %v2490_v21 = vadd.f32 %v2489_v23, %v6756_v29  ;;  %v2491_v62 = vpop.f32.mrb[173].mxu1 }
 0x5a9   : > { %v2492_v32 = vadd.f32 %v2491_v62, %v6764_v51  ;;  %2810 = vmatprep.mubr.f32.mxu0 %v2591_v54 }
 0x5aa   : > { %2811 = vmatmul.mubr.f32.gmra.mrb[170].mxu0 %v2590_v39  ;;  %v2592_v33 = vmax.f32 %v2490_v21, 0.0 }
 0x5ab   : > { %v2593_v43 = vmax.f32 %v2492_v32, 0.0  ;;  %v2495_v20 = vpop.f32.mrb[174].mxu1  ;;  %v6848_v32 = vpop.permute.xlu1 %3212 }
 0x5ac   : > { %v2496_v52 = vadd.f32 %v2495_v20, %v6756_v29  ;;  %v2497_v40 = vpop.f32.mrb[175].mxu1 }
 0x5ad   : > { %v2498_v9 = vadd.f32 %v2497_v40, %v6764_v51  ;;  %2816 = vmatprep.mubr.f32.mxu0 %v2593_v43  ;;  %v2614_v43 = vsub.s32 3, %v7514_v3  ;;  %v4093_v40 = vld [vmem:[%s7439_s6 + $0x100] sm:$0xff] }
 0x5ae   : > { %2817 = vmatmul.mubr.f32.gmra.mrb[172].mxu0 %v2592_v33  ;;  %v2594_v19 = vmax.f32 %v2496_v52, 0.0  ;;  %v6855_v33 = vpop.permute.xlu0 %3192 }
 0x5af   : > { %v2595_v46 = vmax.f32 %v2498_v9, 0.0  ;;  %v2501_v63 = vpop.f32.mrb[176].mxu1  ;;  %v6850_v30 = vpop.permute.xlu1 %3217  ;;  %v4094_v9 = vld [vmem:[%s7439_s6 + $0x108] sm:$0xff]  ;;  %v6870_v38 = vrot.slane %v6753_v12, %v2614_v43 }
 0x5b0   : > { %v2502_v50 = vadd.f32 %v2501_v63, %v6756_v29  ;;  %v2503_v60 = vpop.f32.mrb[177].mxu1  ;;  %v4601_v63 = vpack.c.bf16 %v4094_v9, %v4093_v40 }
 0x5b1   : > { %v2504_v7 = vadd.f32 %v2503_v60, %v6764_v51  ;;  %2822 = vmatprep.mubr.f32.mxu0 %v2595_v46  ;;  %v2943_v46 = vsub.s32 6, %v7514_v3  ;;  %v4111_v60 = vld [vmem:[%s7439_s6 + $0x190] sm:$0xff] }
 0x5b2   : > { %2823 = vmatmul.mubr.f32.gmra.mrb[174].mxu0 %v2594_v19  ;;  %v2596_v14 = vmax.f32 %v2502_v50, 0.0  ;;  %v6874_v19 = vrot.slane %v6761_v34, %v2614_v43  ;;  %v3015_v50 = vsub.s32 7, %v7514_v3  ;;  %v4096_v3 = vld [vmem:[%s7439_s6 + $0x118] sm:$0xff] }
 0x5b3   : > { %v2597_v2 = vmax.f32 %v2504_v7, 0.0  ;;  %v2507_v56 = vpop.f32.mrb[178].mxu1  ;;  %v6853_v20 = vpop.permute.xlu1 %3237  ;;  %v4112_v7 = vld [vmem:[%s7439_s6 + $0x198] sm:$0xff] }
 0x5b4   : > { %v2508_v49 = vadd.f32 %v2507_v56, %v6756_v29  ;;  %v2509_v41 = vpop.f32.mrb[179].mxu1 }
 0x5b5   : > { %v2510_v42 = vadd.f32 %v2509_v41, %v6764_v51  ;;  %2828 = vmatprep.mubr.f32.mxu0 %v2597_v2 }
 0x5b6   : > { %2829 = vmatmul.mubr.f32.gmra.mrb[176].mxu0 %v2596_v14  ;;  %v2598_v31 = vmax.f32 %v2508_v49, 0.0  ;;  %v4603_v14 = vpack.c.bf16 %v4112_v7, %v4111_v60  ;;  %v4095_v49 = vld [vmem:[%s7439_s6 + $0x110] sm:$0xff]  ;;  %v4101_v7 = vld [vmem:[%s7439_s6 + $0x140] sm:$0xff] }
 0x5b7   : > { %v2599_v47 = vmax.f32 %v2510_v42, 0.0  ;;  %v2513_v26 = vpop.f32.mrb[180].mxu1  ;;  %v6883_v56 = vpop.permute.xlu1 %3222  ;;  %v6893_v42 = vrot.slane %v6753_v12, %v2943_v46 }
 0x5b8   : > { %v2514_v11 = vadd.f32 %v2513_v26, %v6756_v29  ;;  %v2515_v53 = vpop.f32.mrb[181].mxu1  ;;  %v6895_v26 = vpop.permute.xlu0 %3197 }
 0x5b9   : > { %v2516_v8 = vadd.f32 %v2515_v53, %v6764_v51  ;;  %2834 = vmatprep.mubr.f32.mxu0 %v2599_v47  ;;  %v6899_v53 = vrot.slane %v6761_v34, %v2943_v46 }
 0x5ba   : > { %2835 = vmatmul.mubr.f32.gmra.mrb[178].mxu0 %v2598_v31  ;;  %v2600_v44 = vmax.f32 %v2514_v11, 0.0  ;;  %v4605_v31 = vpack.c.bf16 %v4096_v3, %v4095_v49 }
 0x5bb   : > { %v2601_v15 = vmax.f32 %v2516_v8, 0.0  ;;  %v2519_v35 = vpop.f32.mrb[182].mxu1 }
 0x5bc   : > { %v2520_v5 = vadd.f32 %v2519_v35, %v6756_v29  ;;  %v2521_v45 = vpop.f32.mrb[183].mxu1  ;;  %v4113_v35 = vld [vmem:[%s7439_s6 + $0x1a0] sm:$0xff] }
 0x5bd   : > { %v2522_v25 = vadd.f32 %v2521_v45, %v6764_v51  ;;  %2840 = vmatprep.mubr.f32.mxu0 %v2601_v15  ;;  %v6902_v15 = vrot.slane %v6753_v12, %v3015_v50  ;;  %v6911_v45 = vrot.slane %v6761_v34, %v3015_v50  ;;  %v4097_v12 = vld [vmem:[%s7439_s6 + $0x120] sm:$0xff] }
 0x5be   : > { %2841 = vmatmul.mubr.f32.gmra.mrb[180].mxu0 %v2600_v44  ;;  %v2602_v4 = vmax.f32 %v2520_v5, 0.0  ;;  %v4114_v44 = vld [vmem:[%s7439_s6 + $0x1a8] sm:$0xff] }
 0x5bf   : > { %v2603_v28 = vmax.f32 %v2522_v25, 0.0  ;;  %v2525_v6 = vpop.f32.mrb[184].mxu1 }
 0x5c0   : > { %v2526_v1 = vadd.f32 %v2525_v6, %v6756_v29  ;;  %v2527_v24 = vpop.f32.mrb[185].mxu1  ;;  %v4098_v6 = vld [vmem:[%s7439_s6 + $0x128] sm:$0xff] }
 0x5c1   : > { %v2528_v13 = vadd.f32 %v2527_v24, %v6764_v51  ;;  %2846 = vmatprep.mubr.f32.mxu0 %v2603_v28  ;;  %v4607_v28 = vpack.c.bf16 %v4114_v44, %v4113_v35 }
 0x5c2   : > { %2847 = vmatmul.mubr.f32.gmra.mrb[182].mxu0 %v2602_v4  ;;  %v2604_v37 = vmax.f32 %v2526_v1, 0.0 }
 0x5c3   : > { %v2605_v61 = vmax.f32 %v2528_v13, 0.0  ;;  %v2531_v10 = vpop.f32.mrb[186].mxu1  ;;  %v4609_v13 = vpack.c.bf16 %v4098_v6, %v4097_v12  ;;  %v4120_v12 = vld [vmem:[%s7439_s6 + $0x1d8] sm:$0xff] }
 0x5c4   : > { %v2532_v0 = vadd.f32 %v2531_v10, %v6756_v29  ;;  %v2533_v27 = vpop.f32.mrb[187].mxu1  ;;  %v6923_v10 = vpop.permute.xlu1 %3257 }
 0x5c5   : > { %v2534_v36 = vadd.f32 %v2533_v27, %v6764_v51  ;;  %2852 = vmatprep.mubr.f32.mxu0 %v2605_v61  ;;  %v6928_v27 = vpop.permute.xlu0 %3232 }
 0x5c6   : > { %2853 = vmatmul.mubr.f32.gmra.mrb[184].mxu0 %v2604_v37  ;;  %v2606_v57 = vmax.f32 %v2532_v0, 0.0 }
 0x5c7   : > { %v2607_v16 = vmax.f32 %v2534_v36, 0.0  ;;  %v2537_v18 = vpop.f32.mrb[188].mxu1  ;;  %v4115_v36 = vld [vmem:[%s7439_s6 + $0x1b0] sm:$0xff] }
 0x5c8   : > { %v2538_v22 = vadd.f32 %v2537_v18, %v6756_v29  ;;  %v2539_v59 = vpop.f32.mrb[189].mxu1  ;;  %v6963_v50 = vpop.permute.xlu1 %3272 }
 0x5c9   : > { %v2540_v48 = vadd.f32 %v2539_v59, %v6764_v51  ;;  %2858 = vmatprep.mubr.f32.mxu0 %v2607_v16  ;;  %v4116_v16 = vld [vmem:[%s7439_s6 + $0x1b8] sm:$0xff] }
 0x5ca   : > { %2859 = vmatmul.mubr.f32.gmra.mrb[186].mxu0 %v2606_v57  ;;  %v2608_v58 = vmax.f32 %v2538_v22, 0.0  ;;  %v4611_v59 = vpack.c.bf16 %v4116_v16, %v4115_v36 }
 0x5cb   : > { %v2609_v55 = vmax.f32 %v2540_v48, 0.0  ;;  %v2543_v17 = vpop.f32.mrb[190].mxu1  ;;  %v4099_v48 = vld [vmem:[%s7439_s6 + $0x130] sm:$0xff] }
 0x5cc   : > { %v2544_v54 = vadd.f32 %v2543_v17, %v6756_v29  ;;  %v2545_v23 = vpop.f32.mrb[191].mxu1  ;;  %v4109_v29 = vld [vmem:[%s7439_s6 + $0x180] sm:$0xff] }
 0x5cd   : > { %v2546_v39 = vadd.f32 %v2545_v23, %v6764_v51  ;;  %2864 = vmatprep.mubr.f32.mxu0 %v2609_v55  ;;  %v4110_v51 = vld [vmem:[%s7439_s6 + $0x188] sm:$0xff]  ;;  %v4100_v55 = vld [vmem:[%s7439_s6 + $0x138] sm:$0xff] }
 0x5ce   : > { %2865 = vmatmul.mubr.f32.gmra.mrb[188].mxu0 %v2608_v58  ;;  %v2610_v62 = vmax.f32 %v2544_v54, 0.0  ;;  %v4599_v52 = vpack.c.bf16 %v4110_v51, %v4109_v29  ;;  %v4613_v23 = vpack.c.bf16 %v4100_v55, %v4099_v48  ;;  %v4117_v51 = vld [vmem:[%s7439_s6 + $0x1c0] sm:$0xff]  ;;  %v3208_v55 = vpop.permute.xlu1 %3207 }
 0x5cf   : > { %v2611_v21 = vmax.f32 %v2546_v39, 0.0 }
 0x5d0   : > { %4600 = vmatprep.subr.bf16.mxu0 %v4599_v52  ;;  %v4118_v52 = vld [vmem:[%s7439_s6 + $0x1c8] sm:$0xff] }
 0x5d1   : > { %2870 = vmatprep.mubr.f32.mxu0 %v2611_v21  ;;  %4602 = vmatpush3.bf16.msra.mxu0 %v4601_v63  ;;  %v4615_v60 = vpack.c.bf16 %v4118_v52, %v4117_v51 }
 0x5d2   : > { %2871 = vmatmul.mubr.f32.gmra.mrb[190].mxu0 %v2610_v62  ;;  %4604 = vmatprep.subr.bf16.mxu0 %v4603_v14 }
 0x5d5   : > { %4606 = vmatpush3.bf16.msra.mxu0 %v4605_v31 }
 0x5d6   : > { %4608 = vmatprep.subr.bf16.mxu0 %v4607_v28 }
 0x5d9   : > { %4610 = vmatpush3.bf16.msra.mxu0 %v4609_v13  ;;  %v3086_v13 = vld [vmem:[%s6985_s18 + $0x8] sm:$0xff] }
 0x5da   : > { %4612 = vmatprep.subr.bf16.mxu0 %v4611_v59  ;;  %3151 = vmatprep.mubr.f32.mxu1 %v3086_v13 }
 0x5dd   : > { %4614 = vmatpush3.bf16.msra.mxu0 %v4613_v23 }
 0x5de   : > { %4616 = vmatprep.subr.bf16.mxu0 %v4615_v60 }
 0x629   : > { %v2686_v2 = vpop.f32.mrb[128].mxu0 }
 0x62a   : > { %v2687_v41 = vadd.f32 %v2686_v2, %v6870_v38  ;;  %v2688_v47 = vpop.f32.mrb[129].mxu0  ;;  %v4102_v2 = vld [vmem:[%s7439_s6 + $0x148] sm:$0xff] }
 0x62b   : > { %v2689_v11 = vadd.f32 %v2688_v47, %v6874_v19  ;;  %v3203_v47 = vpop.permute.xlu0 %3202  ;;  %v4617_v28 = vpack.c.bf16 %v4102_v2, %v4101_v7  ;;  %v4123_v2 = vld [vmem:[%s7439_s6 + $0x1f0] sm:$0xff] }
 0x62c   : > { %v2877_v8 = vmax.f32 %v2687_v41, 0.0 }
 0x62d   : > { %v2878_v5 = vmax.f32 %v2689_v11, 0.0  ;;  %v2692_v25 = vpop.f32.mrb[130].mxu0  ;;  %4618 = vmatpush3.bf16.msra.mxu0 %v4617_v28 }
 0x62e   : > { %v2949_v4 = vmul.f32 %v6893_v42, %v2877_v8  ;;  %v2693_v1 = vadd.f32 %v2692_v25, %v6870_v38  ;;  %v2694_v24 = vpop.f32.mrb[131].mxu0 }
 0x62f   : > { %v2950_v61 = vmul.f32 %v6899_v53, %v2878_v5  ;;  %v2695_v34 = vadd.f32 %v2694_v24, %v6874_v19 }
 0x630   : > { %v6926_v37 = vadd.f32 %v6902_v15, %v2949_v4  ;;  %v2879_v0 = vmax.f32 %v2693_v1, 0.0 }
 0x631   : > { %v3022_v18 = vadd.f32 %v6911_v45, %v2950_v61  ;;  %v2880_v57 = vmax.f32 %v2695_v34, 0.0  ;;  %v2698_v22 = vpop.f32.mrb[132].mxu0  ;;  %v4103_v34 = vld [vmem:[%s7439_s6 + $0x150] sm:$0xff] }
 0x632   : > { %v2951_v17 = vmul.f32 %v6893_v42, %v2879_v0  ;;  %v2699_v58 = vadd.f32 %v2698_v22, %v6870_v38  ;;  %v2700_v54 = vpop.f32.mrb[133].mxu0  ;;  %v3350_v62 = vadd.f32 %v6855_v33, %v6926_v37 }
 0x633   : > { %v2952_v39 = vmul.f32 %v6899_v53, %v2880_v57  ;;  %v2701_v21 = vadd.f32 %v2700_v54, %v6874_v19  ;;  %v3351_v40 = vadd.f32 %v6855_v33, %v3022_v18  ;;  %v7004_v57 = vpop.permute.xlu0 %3252 }
 0x634   : > { %v3023_v43 = vadd.f32 %v6902_v15, %v2951_v17  ;;  %v2881_v29 = vmax.f32 %v2699_v58, 0.0 }
 0x635   : > { %v3024_v9 = vadd.f32 %v6911_v45, %v2952_v39  ;;  %v2882_v46 = vmax.f32 %v2701_v21, 0.0  ;;  %v2704_v63 = vpop.f32.mrb[134].mxu0  ;;  %v4121_v39 = vld [vmem:[%s7439_s6 + $0x1e0] sm:$0xff]  ;;  %v4122_v21 = vld [vmem:[%s7439_s6 + $0x1e8] sm:$0xff] }
 0x636   : > { %v4537_v14 = vpack.c.bf16 %v3023_v43, %v6926_v37  ;;  %v3352_v33 = vadd.f32 %v6895_v26, %v3023_v43  ;;  %v2953_v49 = vmul.f32 %v6893_v42, %v2881_v29  ;;  %v2705_v3 = vadd.f32 %v2704_v63, %v6870_v38  ;;  %v2706_v41 = vpop.f32.mrb[135].mxu0  ;;  %v4104_v37 = vld [vmem:[%s7439_s6 + $0x158] sm:$0xff] }
 0x637   : > { %v3353_v31 = vadd.f32 %v6895_v26, %v3024_v9  ;;  %v2954_v11 = vmul.f32 %v6899_v53, %v2882_v46  ;;  %v2707_v8 = vadd.f32 %v2706_v41, %v6874_v19  ;;  %v4535_v35 = vpack.c.bf16 %v3024_v9, %v3022_v18  ;;  %v4119_v26 = vld [vmem:[%s7439_s6 + $0x1d0] sm:$0xff]  ;;  %v4106_v9 = vld [vmem:[%s7439_s6 + $0x168] sm:$0xff] }
 0x638   : > { %v3414_v44 = vmax.f32 %v3350_v62, %v3352_v33  ;;  %v2883_v5 = vmax.f32 %v2705_v3, 0.0  ;;  %v6980_v25 = vadd.f32 %v6902_v15, %v2953_v49  ;;  %v4619_v61 = vpack.c.bf16 %v4120_v12, %v4119_v26  ;;  %v4107_v26 = vld [vmem:[%s7439_s6 + $0x170] sm:$0xff]  ;;  %v4108_v12 = vld [vmem:[%s7439_s6 + $0x178] sm:$0xff] }
 0x639   : > { %v3423_v6 = vmax.f32 %v3351_v40, %v3353_v31  ;;  %v2884_v4 = vmax.f32 %v2707_v8, 0.0  ;;  %v3026_v1 = vadd.f32 %v6911_v45, %v2954_v11  ;;  %v2710_v24 = vpop.f32.mrb[136].mxu0  ;;  %4536 = vmatprep.subr.bf16.mxu1 %v4535_v35  ;;  %v4621_v23 = vpack.c.bf16 %v4104_v37, %v4103_v34  ;;  %v4105_v40 = vld [vmem:[%s7439_s6 + $0x160] sm:$0xff]  ;;  %v7032_v11 = vpop.permute.xlu0 %3242 }
 0x63a   : > { %v2955_v0 = vmul.f32 %v6893_v42, %v2883_v5  ;;  %v3354_v36 = vadd.f32 %v3203_v47, %v6980_v25  ;;  %v2711_v16 = vadd.f32 %v2710_v24, %v6870_v38  ;;  %v2712_v18 = vpop.f32.mrb[137].mxu0  ;;  %4538 = vmatpush1.bf16.msra.mxu1 %v4537_v14  ;;  %4620 = vmatprep.subr.bf16.mxu0 %v4619_v61  ;;  %v4124_v14 = vld [vmem:[%s7439_s6 + $0x1f8] sm:$0xff] }
 0x63b   : > { %v2956_v22 = vmul.f32 %v6899_v53, %v2884_v4  ;;  %v3355_v59 = vadd.f32 %v3203_v47, %v3026_v1  ;;  %v2713_v48 = vadd.f32 %v2712_v18, %v6874_v19  ;;  %v4623_v52 = vpack.c.bf16 %v4122_v21, %v4121_v39  ;;  %4622 = vmatpush3.bf16.msra.mxu0 %v4621_v23 }
 0x63c   : > { %v3415_v17 = vmax.f32 %v3414_v44, %v3354_v36  ;;  %v2885_v58 = vmax.f32 %v2711_v16, 0.0  ;;  %v3027_v54 = vadd.f32 %v6902_v15, %v2955_v0  ;;  %v4625_v8 = vpack.c.bf16 %v4106_v9, %v4105_v40 }
 0x63d   : > { %v3424_v62 = vmax.f32 %v3423_v6, %v3355_v59  ;;  %v2886_v43 = vmax.f32 %v2713_v48, 0.0  ;;  %v3028_v29 = vadd.f32 %v6911_v45, %v2956_v22  ;;  %v2716_v51 = vpop.f32.mrb[138].mxu0  ;;  %4624 = vmatprep.subr.bf16.mxu0 %v4623_v52  ;;  %v4627_v28 = vpack.c.bf16 %v4124_v14, %v4123_v2 }
 0x63e   : > { %v4541_v46 = vpack.c.bf16 %v3027_v54, %v6980_v25  ;;  %v3356_v63 = vadd.f32 %v3208_v55, %v3027_v54  ;;  %v2717_v60 = vadd.f32 %v2716_v51, %v6870_v38  ;;  %v2718_v7 = vpop.f32.mrb[139].mxu0  ;;  %v2957_v33 = vmul.f32 %v6893_v42, %v2885_v58 }
 0x63f   : > { %v3357_v49 = vadd.f32 %v3208_v55, %v3028_v29  ;;  %v2719_v3 = vadd.f32 %v2718_v7, %v6874_v19  ;;  %v4539_v41 = vpack.c.bf16 %v3028_v29, %v3026_v1  ;;  %v2958_v35 = vmul.f32 %v6899_v53, %v2886_v43  ;;  %4626 = vmatpush3.bf16.msra.mxu0 %v4625_v8 }
 0x640   : > { %v3416_v47 = vmax.f32 %v3415_v17, %v3356_v63  ;;  %v2887_v31 = vmax.f32 %v2717_v60, 0.0  ;;  %v3029_v13 = vadd.f32 %v6902_v15, %v2957_v33  ;;  %4628 = vmatprep.subr.bf16.mxu0 %v4627_v28  ;;  %v4629_v18 = vpack.c.bf16 %v4108_v12, %v4107_v26 }
 0x641   : > { %v3425_v44 = vmax.f32 %v3424_v62, %v3357_v49  ;;  %v2888_v5 = vmax.f32 %v2719_v3, 0.0  ;;  %v2722_v25 = vpop.f32.mrb[140].mxu0  ;;  %4540 = vmatprep.subr.bf16.mxu1 %v4539_v41  ;;  %v3030_v22 = vadd.f32 %v6911_v45, %v2958_v35  ;;  %v7051_v62 = vpop.permute.xlu0 %3277 }
 0x642   : > { %v3417_v6 = vrot.slane %v3416_v47, 4  ;;  %v2959_v4 = vmul.f32 %v6893_v42, %v2887_v31  ;;  %v2723_v1 = vadd.f32 %v2722_v25, %v6870_v38  ;;  %v2724_v24 = vpop.f32.mrb[141].mxu0  ;;  %4542 = vmatpush1.bf16.msra.mxu1 %v4541_v46  ;;  %v3358_v43 = vadd.f32 %v6848_v32, %v3029_v13 }
 0x643   : > { %v3426_v61 = vrot.slane %v3425_v44, 4  ;;  %v2960_v34 = vmul.f32 %v6899_v53, %v2888_v5  ;;  %v2725_v37 = vadd.f32 %v2724_v24, %v6874_v19  ;;  %4630 = vmatpush3.bf16.msra.mxu0 %v4629_v18 }
 0x644   : > { %v3418_v0 = vmax.f32 %v3416_v47, %v3417_v6  ;;  %v3031_v36 = vadd.f32 %v6902_v15, %v2959_v4  ;;  %v2889_v16 = vmax.f32 %v2723_v1, 0.0 }
 0x645   : > { %v3427_v59 = vmax.f32 %v3425_v44, %v3426_v61  ;;  %v3032_v48 = vadd.f32 %v6911_v45, %v2960_v34  ;;  %v2890_v55 = vmax.f32 %v2725_v37, 0.0  ;;  %v2728_v17 = vpop.f32.mrb[142].mxu0  ;;  %v3228_v28 = vpop.permute.xlu0 %3227 }
 0x646   : > { %v3419_v58 = vrot.slane %v3418_v0, 2  ;;  %v4545_v54 = vpack.c.bf16 %v3031_v36, %v3029_v13  ;;  %v3360_v23 = vadd.f32 %v6850_v30, %v3031_v36  ;;  %v2961_v39 = vmul.f32 %v6893_v42, %v2889_v16  ;;  %v2730_v21 = vpop.f32.mrb[143].mxu0 }
 0x647   : > { %v3428_v29 = vrot.slane %v3427_v59, 2  ;;  %v2962_v51 = vmul.f32 %v6899_v53, %v2890_v55  ;;  %v2729_v52 = vadd.f32 %v2728_v17, %v6870_v38  ;;  %v3361_v40 = vadd.f32 %v6850_v30, %v3032_v48 }
 0x648   : > { %v3033_v9 = vadd.f32 %v6902_v15, %v2961_v39  ;;  %v2731_v46 = vadd.f32 %v2730_v21, %v6874_v19  ;;  %v4543_v63 = vpack.c.bf16 %v3032_v48, %v3030_v22  ;;  %v3420_v60 = vmax.f32 %v3418_v0, %v3419_v58 }
 0x649   : > { %v3034_v7 = vadd.f32 %v6911_v45, %v2962_v51  ;;  %v2891_v2 = vmax.f32 %v2729_v52, 0.0  ;;  %v2734_v14 = vpop.f32.mrb[144].mxu0  ;;  %v3432_v33 = vmax.f32 %v3358_v43, %v3360_v23  ;;  %v3429_v49 = vmax.f32 %v3427_v59, %v3428_v29 }
 0x64a   : > { %v3362_v3 = vadd.f32 %v6883_v56, %v3033_v9  ;;  %v2892_v41 = vmax.f32 %v2731_v46, 0.0  ;;  %v2735_v47 = vadd.f32 %v2734_v14, %v6870_v38  ;;  %4544 = vmatprep.subr.bf16.mxu1 %v4543_v63  ;;  %v2736_v31 = vpop.f32.mrb[145].mxu0  ;;  %v3359_v30 = vadd.f32 %v6848_v32, %v3030_v22 }
 0x64b   : > { %v3363_v8 = vadd.f32 %v6883_v56, %v3034_v7  ;;  %v2963_v35 = vmul.f32 %v6893_v42, %v2891_v2  ;;  %v2737_v44 = vadd.f32 %v2736_v31, %v6874_v19  ;;  %4546 = vmatpush1.bf16.msra.mxu1 %v4545_v54  ;;  %v3421_v12 = vrot.slane %v3420_v60, 1 }
 0x64c   : > { %v2964_v5 = vmul.f32 %v6899_v53, %v2892_v41  ;;  %v2893_v25 = vmax.f32 %v2735_v47, 0.0  ;;  %v3433_v26 = vmax.f32 %v3432_v33, %v3362_v3  ;;  %v3441_v1 = vmax.f32 %v3359_v30, %v3361_v40 }
 0x64d   : > { %v2894_v6 = vmax.f32 %v2737_v44, 0.0  ;;  %v3035_v4 = vadd.f32 %v6902_v15, %v2963_v35  ;;  %v2740_v24 = vpop.f32.mrb[146].mxu0  ;;  %v3430_v13 = vrot.slane %v3429_v49, 1  ;;  %v7075_v23 = vmax.f32 %v3420_v60, %v3421_v12  ;;  %v7088_v35 = vpop.permute.xlu0 %3292 }
 0x64e   : > { %v2965_v32 = vmul.f32 %v6893_v42, %v2893_v25  ;;  %v3036_v56 = vadd.f32 %v6911_v45, %v2964_v5  ;;  %v2741_v61 = vadd.f32 %v2740_v24, %v6870_v38  ;;  %v2742_v34 = vpop.f32.mrb[147].mxu0  ;;  %v3442_v16 = vmax.f32 %v3441_v1, %v3363_v8 }
 0x64f   : > { %v2966_v37 = vmul.f32 %v6899_v53, %v2894_v6  ;;  %v4549_v0 = vpack.c.bf16 %v3035_v4, %v3033_v9  ;;  %v3364_v36 = vadd.f32 %v3228_v28, %v3035_v4  ;;  %v2743_v48 = vadd.f32 %v2742_v34, %v6874_v19 }
 0x650   : > { %v3037_v18 = vadd.f32 %v6902_v15, %v2965_v32  ;;  %v3365_v22 = vadd.f32 %v3228_v28, %v3036_v56  ;;  %v2895_v59 = vmax.f32 %v2741_v61, 0.0  ;;  %v4547_v54 = vpack.c.bf16 %v3036_v56, %v3034_v7 }
 0x651   : > { %v3038_v55 = vadd.f32 %v6911_v45, %v2966_v37  ;;  %v3434_v17 = vmax.f32 %v3433_v26, %v3364_v36  ;;  %v2746_v58 = vpop.f32.mrb[148].mxu0  ;;  %v2896_v43 = vmax.f32 %v2743_v48, 0.0  ;;  %v7078_v51 = vmax.f32 %v3429_v49, %v3430_v13 }
 0x652   : > { %v3443_v39 = vmax.f32 %v3442_v16, %v3365_v22  ;;  %v2967_v21 = vmul.f32 %v6893_v42, %v2895_v59  ;;  %v2748_v29 = vpop.f32.mrb[149].mxu0  ;;  %v2747_v40 = vadd.f32 %v2746_v58, %v6870_v38  ;;  %4548 = vmatprep.subr.bf16.mxu1 %v4547_v54  ;;  %v3366_v46 = vadd.f32 %v6928_v27, %v3037_v18 }
 0x653   : > { %v3435_v52 = vrot.slane %v3434_v17, 4  ;;  %v2749_v9 = vadd.f32 %v2748_v29, %v6874_v19  ;;  %v2968_v7 = vmul.f32 %v6899_v53, %v2896_v43  ;;  %4550 = vmatpush1.bf16.msra.mxu1 %v4549_v0  ;;  %v3367_v2 = vadd.f32 %v6928_v27, %v3038_v55 }
 0x654   : > { %v3444_v63 = vrot.slane %v3443_v39, 4  ;;  %v3039_v60 = vadd.f32 %v6902_v15, %v2967_v21  ;;  %v2897_v33 = vmax.f32 %v2747_v40, 0.0 }
 0x655   : > { %v3436_v14 = vmax.f32 %v3434_v17, %v3435_v52  ;;  %v2898_v49 = vmax.f32 %v2749_v9, 0.0  ;;  %v2752_v3 = vpop.f32.mrb[150].mxu0  ;;  %v3040_v30 = vadd.f32 %v6911_v45, %v2968_v7  ;;  %v3248_v17 = vpop.permute.xlu0 %3247 }
 0x656   : > { %v3445_v41 = vmax.f32 %v3443_v39, %v3444_v63  ;;  %v4553_v47 = vpack.c.bf16 %v3039_v60, %v3037_v18  ;;  %v3368_v31 = vadd.f32 %v6853_v20, %v3039_v60  ;;  %v2754_v8 = vpop.f32.mrb[151].mxu0  ;;  %v2969_v5 = vmul.f32 %v6893_v42, %v2897_v33 }
 0x657   : > { %v3437_v44 = vrot.slane %v3436_v14, 2  ;;  %v2970_v25 = vmul.f32 %v6899_v53, %v2898_v49  ;;  %v2753_v27 = vadd.f32 %v2752_v3, %v6870_v38  ;;  %v3369_v26 = vadd.f32 %v6853_v20, %v3040_v30 }
 0x658   : > { %v3446_v28 = vrot.slane %v3445_v41, 2  ;;  %v2755_v12 = vadd.f32 %v2754_v8, %v6874_v19  ;;  %v4551_v6 = vpack.c.bf16 %v3040_v30, %v3038_v55  ;;  %v3041_v1 = vadd.f32 %v6902_v15, %v2969_v5 }
 0x659   : > { %v3438_v4 = vmax.f32 %v3436_v14, %v3437_v44  ;;  %v3042_v24 = vadd.f32 %v6911_v45, %v2970_v25  ;;  %v2899_v13 = vmax.f32 %v2753_v27, 0.0  ;;  %v2758_v32 = vpop.f32.mrb[152].mxu0  ;;  %v3450_v0 = vmax.f32 %v3366_v46, %v3368_v31 }
 0x65a   : > { %v3447_v56 = vmax.f32 %v3445_v41, %v3446_v28  ;;  %v2900_v61 = vmax.f32 %v2755_v12, 0.0  ;;  %v2759_v34 = vadd.f32 %v2758_v32, %v6870_v38  ;;  %4552 = vmatprep.subr.bf16.mxu1 %v4551_v6  ;;  %v2760_v37 = vpop.f32.mrb[153].mxu0  ;;  %v3370_v20 = vadd.f32 %v7032_v11, %v3041_v1 }
 0x65b   : > { %v3439_v36 = vrot.slane %v3438_v4, 1  ;;  %v3371_v16 = vadd.f32 %v7032_v11, %v3042_v24  ;;  %v2971_v18 = vmul.f32 %v6893_v42, %v2899_v13  ;;  %4554 = vmatpush1.bf16.msra.mxu1 %v4553_v47  ;;  %v2761_v55 = vadd.f32 %v2760_v37, %v6874_v19 }
 0x65c   : > { %v3448_v22 = vrot.slane %v3447_v56, 1  ;;  %v2972_v59 = vmul.f32 %v6899_v53, %v2900_v61  ;;  %v2901_v48 = vmax.f32 %v2759_v34, 0.0  ;;  %v3451_v39 = vmax.f32 %v3450_v0, %v3370_v20 }
 0x65d   : > { %v3440_v58 = vmax.f32 %v3438_v4, %v3439_v36  ;;  %v3043_v54 = vadd.f32 %v6902_v15, %v2971_v18  ;;  %v3459_v21 = vmax.f32 %v3367_v2, %v3369_v26  ;;  %v2764_v43 = vpop.f32.mrb[154].mxu0  ;;  %v2902_v11 = vmax.f32 %v2761_v55, 0.0 }
 0x65e   : > { %v3449_v29 = vmax.f32 %v3447_v56, %v3448_v22  ;;  %v2973_v52 = vmul.f32 %v6893_v42, %v2901_v48  ;;  %v3044_v40 = vadd.f32 %v6911_v45, %v2972_v59  ;;  %v2766_v9 = vpop.f32.mrb[155].mxu0  ;;  %v2765_v41 = vadd.f32 %v2764_v43, %v6870_v38  ;;  %v7136_v22 = vpop.permute.xlu0 %3312 }
 0x65f   : > { %v7108_v46 = vsel %vm3639_vm0, %v3440_v58, %v7075_v23  ;;  %v4557_v63 = vpack.c.bf16 %v3043_v54, %v3041_v1  ;;  %v3372_v60 = vadd.f32 %v3248_v17, %v3043_v54  ;;  %v3460_v7 = vmax.f32 %v3459_v21, %v3371_v16 }
 0x660   : > { %v7112_v14 = vsel %vm3639_vm0, %v3449_v29, %v7078_v51  ;;  %v7115_v2 = vadd.f32 %v6902_v15, %v2973_v52  ;;  %v2974_v33 = vmul.f32 %v6899_v53, %v2902_v11  ;;  %v3373_v49 = vadd.f32 %v3248_v17, %v3044_v40 }
 0x661   : > { %v3452_v3 = vmax.f32 %v3451_v39, %v3372_v60  ;;  %v2767_v47 = vadd.f32 %v2766_v9, %v6874_v19  ;;  %v2770_v23 = vpop.f32.mrb[156].mxu0  ;;  %v4555_v31 = vpack.c.bf16 %v3044_v40, %v3042_v24  ;;  %v2903_v25 = vmax.f32 %v2765_v41, 0.0 }
 0x662   : > { %v7121_v30 = vadd.f32 %v6911_v45, %v2974_v33  ;;  %v3461_v8 = vmax.f32 %v3460_v7, %v3373_v49  ;;  %v2771_v51 = vadd.f32 %v2770_v23, %v6870_v38  ;;  %v2772_v44 = vpop.f32.mrb[157].mxu0  ;;  %v3374_v26 = vadd.f32 %v7004_v57, %v7115_v2 }
 0x663   : > { %v3453_v5 = vrot.slane %v3452_v3, 4  ;;  %v2904_v27 = vmax.f32 %v2767_v47, 0.0  ;;  %4556 = vmatprep.subr.bf16.mxu1 %v4555_v31  ;;  %v2773_v28 = vadd.f32 %v2772_v44, %v6874_v19  ;;  %v2975_v1 = vmul.f32 %v6893_v42, %v2903_v25 }
 0x664   : > { %v3462_v12 = vrot.slane %v3461_v8, 4  ;;  %v2905_v6 = vmax.f32 %v2771_v51, 0.0  ;;  %4558 = vmatpush1.bf16.msra.mxu1 %v4557_v63  ;;  %v3375_v56 = vadd.f32 %v7004_v57, %v7121_v30  ;;  %v3263_v57 = vpop.permute.xlu1 %3262 }
 0x665   : > { %v3454_v4 = vmax.f32 %v3452_v3, %v3453_v5  ;;  %v2976_v24 = vmul.f32 %v6899_v53, %v2904_v27  ;;  %v2906_v13 = vmax.f32 %v2773_v28, 0.0  ;;  %v2776_v32 = vpop.f32.mrb[158].mxu0  ;;  %v3047_v20 = vadd.f32 %v6902_v15, %v2975_v1 }
 0x666   : > { %v3463_v61 = vmax.f32 %v3461_v8, %v3462_v12  ;;  %v2977_v34 = vmul.f32 %v6893_v42, %v2905_v6  ;;  %v2777_v37 = vadd.f32 %v2776_v32, %v6870_v38  ;;  %v2778_v0 = vpop.f32.mrb[159].mxu0  ;;  %v3268_v8 = vpop.permute.xlu0 %3267 }
 0x667   : > { %v3455_v36 = vrot.slane %v3454_v4, 2  ;;  %v3048_v16 = vadd.f32 %v6911_v45, %v2976_v24  ;;  %v2978_v18 = vmul.f32 %v6899_v53, %v2906_v13  ;;  %v2779_v55 = vadd.f32 %v2778_v0, %v6874_v19 }
 0x668   : > { %v3464_v59 = vrot.slane %v3463_v61, 2  ;;  %v2907_v48 = vmax.f32 %v2777_v37, 0.0  ;;  %v3049_v17 = vadd.f32 %v6902_v15, %v2977_v34  ;;  %v4561_v54 = vpack.c.bf16 %v3047_v20, %v7115_v2 }
 0x669   : > { %v3456_v58 = vmax.f32 %v3454_v4, %v3455_v36  ;;  %v3376_v39 = vadd.f32 %v6923_v10, %v3047_v20  ;;  %v3377_v21 = vadd.f32 %v6923_v10, %v3048_v16  ;;  %v2782_v43 = vpop.f32.mrb[160].mxu0  ;;  %v2908_v11 = vmax.f32 %v2779_v55, 0.0 }
 0x66a   : > { %v3465_v29 = vmax.f32 %v3463_v61, %v3464_v59  ;;  %v2979_v52 = vmul.f32 %v6893_v42, %v2907_v48  ;;  %v3050_v40 = vadd.f32 %v6911_v45, %v2978_v18  ;;  %v2784_v9 = vpop.f32.mrb[161].mxu0  ;;  %v3378_v60 = vadd.f32 %v3263_v57, %v3049_v17  ;;  %v7165_v18 = vpop.permute.xlu1 %3297 }
 0x66b   : > { %v3457_v63 = vrot.slane %v3456_v58, 1  ;;  %v3468_v7 = vmax.f32 %v3374_v26, %v3376_v39  ;;  %v3477_v33 = vmax.f32 %v3375_v56, %v3377_v21  ;;  %v2980_v3 = vmul.f32 %v6899_v53, %v2908_v11 }
 0x66c   : > { %v3466_v49 = vrot.slane %v3465_v29, 1  ;;  %v3379_v2 = vadd.f32 %v3263_v57, %v3050_v40  ;;  %v2783_v41 = vadd.f32 %v2782_v43, %v6870_v38  ;;  %v4559_v23 = vpack.c.bf16 %v3048_v16, %v7121_v30 }
 0x66d   : > { %v3458_v47 = vmax.f32 %v3456_v58, %v3457_v63  ;;  %v3469_v10 = vmax.f32 %v3468_v7, %v3378_v60  ;;  %v2785_v31 = vadd.f32 %v2784_v9, %v6874_v19  ;;  %v2788_v51 = vpop.f32.mrb[162].mxu0  ;;  %v3051_v27 = vadd.f32 %v6902_v15, %v2979_v52 }
 0x66e   : > { %v7149_v44 = vmax.f32 %v3465_v29, %v3466_v49  ;;  %v3478_v5 = vmax.f32 %v3477_v33, %v3379_v2  ;;  %v2909_v25 = vmax.f32 %v2783_v41, 0.0  ;;  %v2790_v28 = vpop.f32.mrb[163].mxu0  ;;  %4560 = vmatprep.subr.bf16.mxu1 %v4559_v23  ;;  %v3052_v6 = vadd.f32 %v6911_v45, %v2980_v3  ;;  %v7181_v2 = vpop.permute.xlu0 %3332 }
 0x66f   : > { %v7154_v26 = vsel %vm3641_vm1, %v3458_v47, %v7108_v46  ;;  %v2910_v12 = vmax.f32 %v2785_v31, 0.0  ;;  %v2789_v30 = vadd.f32 %v2788_v51, %v6870_v38  ;;  %4562 = vmatpush1.bf16.msra.mxu1 %v4561_v54  ;;  %v4565_v1 = vpack.c.bf16 %v3051_v27, %v3049_v17  ;;  %v3283_v31 = vpop.permute.xlu1 %3282 }
 0x670   : > { %v2981_v4 = vmul.f32 %v6893_v42, %v2909_v25  ;;  %v3380_v24 = vadd.f32 %v3268_v8, %v3051_v27  ;;  %v2791_v13 = vadd.f32 %v2790_v28, %v6874_v19  ;;  %v3381_v56 = vadd.f32 %v3268_v8, %v3052_v6 }
 0x671   : > { %v2982_v32 = vmul.f32 %v6899_v53, %v2910_v12  ;;  %v2911_v61 = vmax.f32 %v2789_v30, 0.0  ;;  %v2794_v34 = vpop.f32.mrb[164].mxu0  ;;  %v4563_v46 = vpack.c.bf16 %v3052_v6, %v3050_v40 }
 0x672   : > { %v7162_v37 = vadd.f32 %v6902_v15, %v2981_v4  ;;  %v3470_v0 = vmax.f32 %v3469_v10, %v3380_v24  ;;  %v2912_v36 = vmax.f32 %v2791_v13, 0.0  ;;  %v2795_v20 = vadd.f32 %v2794_v34, %v6870_v38  ;;  %v2796_v16 = vpop.f32.mrb[165].mxu0 }
 0x673   : > { %v3054_v59 = vadd.f32 %v6911_v45, %v2982_v32  ;;  %v3479_v48 = vmax.f32 %v3478_v5, %v3381_v56  ;;  %v2983_v55 = vmul.f32 %v6893_v42, %v2911_v61  ;;  %4564 = vmatprep.subr.bf16.mxu1 %v4563_v46  ;;  %v2797_v57 = vadd.f32 %v2796_v16, %v6874_v19 }
 0x674   : > { %v3382_v17 = vadd.f32 %v6963_v50, %v7162_v37  ;;  %v3471_v58 = vrot.slane %v3470_v0, 4  ;;  %v2984_v54 = vmul.f32 %v6899_v53, %v2912_v36  ;;  %v2913_v39 = vmax.f32 %v2795_v20, 0.0  ;;  %4566 = vmatpush1.bf16.msra.mxu1 %v4565_v1  ;;  %v3288_v20 = vpop.permute.xlu0 %3287 }
 0x675   : > { %v3383_v21 = vadd.f32 %v6963_v50, %v3054_v59  ;;  %v3480_v43 = vrot.slane %v3479_v48, 4  ;;  %v3055_v29 = vadd.f32 %v6902_v15, %v2983_v55  ;;  %v2914_v52 = vmax.f32 %v2797_v57, 0.0  ;;  %v2800_v11 = vpop.f32.mrb[166].mxu0 }
 0x676   : > { %v3472_v40 = vmax.f32 %v3470_v0, %v3471_v58  ;;  %v3056_v9 = vadd.f32 %v6911_v45, %v2984_v54  ;;  %v2985_v63 = vmul.f32 %v6893_v42, %v2913_v39  ;;  %v2801_v60 = vadd.f32 %v2800_v11, %v6870_v38  ;;  %v2802_v7 = vpop.f32.mrb[167].mxu0 }
 0x677   : > { %v3481_v33 = vmax.f32 %v3479_v48, %v3480_v43  ;;  %v4569_v49 = vpack.c.bf16 %v3055_v29, %v7162_v37  ;;  %v3384_v3 = vadd.f32 %v7051_v62, %v3055_v29  ;;  %v2986_v50 = vmul.f32 %v6899_v53, %v2914_v52 }
 0x678   : > { %v3473_v41 = vrot.slane %v3472_v40, 2  ;;  %v3385_v47 = vadd.f32 %v7051_v62, %v3056_v9  ;;  %v2915_v10 = vmax.f32 %v2801_v60, 0.0  ;;  %v2803_v23 = vadd.f32 %v2802_v7, %v6874_v19 }
 0x679   : > { %v3482_v8 = vrot.slane %v3481_v33, 2  ;;  %v3057_v51 = vadd.f32 %v6902_v15, %v2985_v63  ;;  %v3058_v5 = vadd.f32 %v6911_v45, %v2986_v50  ;;  %v3486_v25 = vmax.f32 %v3382_v17, %v3384_v3  ;;  %v2806_v27 = vpop.f32.mrb[168].mxu0 }
 0x67a   : > { %v3474_v28 = vmax.f32 %v3472_v40, %v3473_v41  ;;  %v2987_v12 = vmul.f32 %v6893_v42, %v2915_v10  ;;  %v2916_v6 = vmax.f32 %v2803_v23, 0.0  ;;  %v3495_v30 = vmax.f32 %v3383_v21, %v3385_v47  ;;  %v2808_v4 = vpop.f32.mrb[169].mxu0  ;;  %v7206_v47 = vpop.permute.xlu1 %3317 }
 0x67b   : > { %v3483_v1 = vmax.f32 %v3481_v33, %v3482_v8  ;;  %v3386_v24 = vadd.f32 %v3283_v31, %v3057_v51  ;;  %v3387_v62 = vadd.f32 %v3283_v31, %v3058_v5  ;;  %v2807_v13 = vadd.f32 %v2806_v27, %v6870_v38 }
 0x67c   : > { %v3475_v32 = vrot.slane %v3474_v28, 1  ;;  %v2988_v56 = vmul.f32 %v6899_v53, %v2916_v6  ;;  %v4567_v61 = vpack.c.bf16 %v3056_v9, %v3054_v59  ;;  %v2809_v34 = vadd.f32 %v2808_v4, %v6874_v19 }
 0x67d   : > { %v3484_v46 = vrot.slane %v3483_v1, 1  ;;  %v3487_v37 = vmax.f32 %v3486_v25, %v3386_v24  ;;  %v3496_v0 = vmax.f32 %v3495_v30, %v3387_v62  ;;  %v2917_v36 = vmax.f32 %v2807_v13, 0.0  ;;  %v2812_v16 = vpop.f32.mrb[170].mxu0 }
 0x67e   : > { %v7191_v48 = vmax.f32 %v3474_v28, %v3475_v32  ;;  %4568 = vmatprep.subr.bf16.mxu1 %v4567_v61  ;;  %v2918_v55 = vmax.f32 %v2809_v34, 0.0  ;;  %v3059_v57 = vadd.f32 %v6902_v15, %v2987_v12  ;;  %v3060_v17 = vadd.f32 %v6911_v45, %v2988_v56  ;;  %v2814_v58 = vpop.f32.mrb[171].mxu0 }
 0x67f   : > { %v7195_v54 = vmax.f32 %v3483_v1, %v3484_v46  ;;  %v2989_v59 = vmul.f32 %v6893_v42, %v2917_v36  ;;  %4570 = vmatpush1.bf16.msra.mxu1 %v4569_v49  ;;  %v2813_v39 = vadd.f32 %v2812_v16, %v6870_v38  ;;  %v2815_v21 = vadd.f32 %v2814_v58, %v6874_v19 }
 0x680   : > { %v2990_v43 = vmul.f32 %v6899_v53, %v2918_v55  ;;  %v4573_v29 = vpack.c.bf16 %v3059_v57, %v3057_v51  ;;  %v3388_v52 = vadd.f32 %v3288_v20, %v3059_v57  ;;  %v3389_v11 = vadd.f32 %v3288_v20, %v3060_v17 }
 0x681   : > { %v7202_v40 = vadd.f32 %v6902_v15, %v2989_v59  ;;  %v2919_v9 = vmax.f32 %v2813_v39, 0.0  ;;  %v2920_v63 = vmax.f32 %v2815_v21, 0.0  ;;  %v2818_v60 = vpop.f32.mrb[172].mxu0  ;;  %v4571_v7 = vpack.c.bf16 %v3060_v17, %v3058_v5 }
 0x682   : > { %v3062_v33 = vadd.f32 %v6911_v45, %v2990_v43  ;;  %v3488_v3 = vmax.f32 %v3487_v37, %v3388_v52  ;;  %v3497_v49 = vmax.f32 %v3496_v0, %v3389_v11  ;;  %v2819_v50 = vadd.f32 %v2818_v60, %v6870_v38  ;;  %v2820_v41 = vpop.f32.mrb[173].mxu0  ;;  %v3308_v60 = vpop.permute.xlu0 %3307 }
 0x683   : > { %v3390_v10 = vadd.f32 %v7088_v35, %v7202_v40  ;;  %v2991_v23 = vmul.f32 %v6893_v42, %v2919_v9  ;;  %v2992_v31 = vmul.f32 %v6899_v53, %v2920_v63  ;;  %4572 = vmatprep.subr.bf16.mxu1 %v4571_v7  ;;  %v2821_v8 = vadd.f32 %v2820_v41, %v6874_v19 }
 0x684   : > { %v3391_v51 = vadd.f32 %v7088_v35, %v3062_v33  ;;  %v3489_v5 = vrot.slane %v3488_v3, 4  ;;  %v3498_v25 = vrot.slane %v3497_v49, 4  ;;  %v2921_v27 = vmax.f32 %v2819_v50, 0.0  ;;  %4574 = vmatpush1.bf16.msra.mxu1 %v4573_v29 }
 0x685   : > { %v3063_v28 = vadd.f32 %v6902_v15, %v2991_v23  ;;  %v3064_v12 = vadd.f32 %v6911_v45, %v2992_v31  ;;  %v2922_v6 = vmax.f32 %v2821_v8, 0.0  ;;  %v2824_v30 = vpop.f32.mrb[174].mxu0  ;;  %v3654_v4 = vsel %vm3641_vm1, %v7149_v44, %v7112_v14  ;;  %v3303_v44 = vpop.permute.xlu1 %3302 }
 0x686   : > { %v3490_v1 = vmax.f32 %v3488_v3, %v3489_v5  ;;  %v3499_v24 = vmax.f32 %v3497_v49, %v3498_v25  ;;  %v2993_v62 = vmul.f32 %v6893_v42, %v2921_v27  ;;  %v2825_v35 = vadd.f32 %v2824_v30, %v6870_v38  ;;  %v2826_v13 = vpop.f32.mrb[175].mxu0 }
 0x687   : > { %v4577_v32 = vpack.c.bf16 %v3063_v28, %v7202_v40  ;;  %v3392_v56 = vadd.f32 %v7165_v18, %v3063_v28  ;;  %v3393_v61 = vadd.f32 %v7165_v18, %v3064_v12  ;;  %v2994_v34 = vmul.f32 %v6899_v53, %v2922_v6 }
 0x688   : > { %v3491_v46 = vrot.slane %v3490_v1, 2  ;;  %v3500_v37 = vrot.slane %v3499_v24, 2  ;;  %v2923_v0 = vmax.f32 %v2825_v35, 0.0  ;;  %v2827_v14 = vadd.f32 %v2826_v13, %v6874_v19 }
 0x689   : > { %v3065_v36 = vadd.f32 %v6902_v15, %v2993_v62  ;;  %v3066_v20 = vadd.f32 %v6911_v45, %v2994_v34  ;;  %v3504_v16 = vmax.f32 %v3390_v10, %v3392_v56  ;;  %v3513_v55 = vmax.f32 %v3391_v51, %v3393_v61  ;;  %v2830_v57 = vpop.f32.mrb[176].mxu0 }
 0x68a   : > { %v3492_v17 = vmax.f32 %v3490_v1, %v3491_v46  ;;  %v3501_v58 = vmax.f32 %v3499_v24, %v3500_v37  ;;  %v2995_v59 = vmul.f32 %v6893_v42, %v2923_v0  ;;  %v2924_v18 = vmax.f32 %v2827_v14, 0.0  ;;  %v2832_v39 = vpop.f32.mrb[177].mxu0  ;;  %v7247_v37 = vpop.permute.xlu1 %3337 }
 0x68b   : > { %v3394_v21 = vadd.f32 %v3303_v44, %v3065_v36  ;;  %v3395_v43 = vadd.f32 %v3303_v44, %v3066_v20  ;;  %v2831_v29 = vadd.f32 %v2830_v57, %v6870_v38  ;;  %v4575_v52 = vpack.c.bf16 %v3064_v12, %v3062_v33 }
 0x68c   : > { %v3493_v11 = vrot.slane %v3492_v17, 1  ;;  %v3502_v40 = vrot.slane %v3501_v58, 1  ;;  %v2996_v9 = vmul.f32 %v6899_v53, %v2924_v18  ;;  %v2833_v63 = vadd.f32 %v2832_v39, %v6874_v19 }
 0x68d   : > { %v3505_v7 = vmax.f32 %v3504_v16, %v3394_v21  ;;  %v3514_v3 = vmax.f32 %v3513_v55, %v3395_v43  ;;  %v2925_v49 = vmax.f32 %v2831_v29, 0.0  ;;  %4576 = vmatprep.subr.bf16.mxu1 %v4575_v52  ;;  %v3067_v50 = vadd.f32 %v6902_v15, %v2995_v59  ;;  %v2836_v41 = vpop.f32.mrb[178].mxu0 }
 0x68e   : > { %v7233_v10 = vmax.f32 %v3492_v17, %v3493_v11  ;;  %v3503_v23 = vmax.f32 %v3501_v58, %v3502_v40  ;;  %v2926_v31 = vmax.f32 %v2833_v63, 0.0  ;;  %4578 = vmatpush1.bf16.msra.mxu1 %v4577_v32  ;;  %v3068_v33 = vadd.f32 %v6911_v45, %v2996_v9  ;;  %v2838_v8 = vpop.f32.mrb[179].mxu0 }
 0x68f   : > { %v2997_v51 = vmul.f32 %v6893_v42, %v2925_v49  ;;  %v4581_v5 = vpack.c.bf16 %v3067_v50, %v3065_v36  ;;  %v3396_v25 = vadd.f32 %v3308_v60, %v3067_v50  ;;  %v2837_v27 = vadd.f32 %v2836_v41, %v6870_v38 }
 0x690   : > { %v2998_v28 = vmul.f32 %v6899_v53, %v2926_v31  ;;  %v3397_v12 = vadd.f32 %v3308_v60, %v3068_v33  ;;  %v2839_v6 = vadd.f32 %v2838_v8, %v6874_v19  ;;  %v4579_v30 = vpack.c.bf16 %v3068_v33, %v3066_v20 }
 0x691   : > { %v7241_v1 = vadd.f32 %v6902_v15, %v2997_v51  ;;  %v3506_v24 = vmax.f32 %v3505_v7, %v3396_v25  ;;  %v2927_v62 = vmax.f32 %v2837_v27, 0.0  ;;  %v2842_v35 = vpop.f32.mrb[180].mxu0  ;;  %v3655_v13 = vsel %vm3643_vm2, %v7195_v54, %v3654_v4 }
 0x692   : > { %v3070_v32 = vadd.f32 %v6911_v45, %v2998_v28  ;;  %v3515_v56 = vmax.f32 %v3514_v3, %v3397_v12  ;;  %v2928_v61 = vmax.f32 %v2839_v6, 0.0  ;;  %v2843_v34 = vadd.f32 %v2842_v35, %v6870_v38  ;;  %4580 = vmatprep.subr.bf16.mxu1 %v4579_v30  ;;  %v2844_v46 = vpop.f32.mrb[181].mxu0  ;;  %v3323_v3 = vpop.permute.xlu1 %3322 }
 0x693   : > { %v3398_v0 = vadd.f32 %v7136_v22, %v7241_v1  ;;  %v3507_v14 = vrot.slane %v3506_v24, 4  ;;  %v2999_v44 = vmul.f32 %v6893_v42, %v2927_v62  ;;  %v2845_v36 = vadd.f32 %v2844_v46, %v6874_v19  ;;  %4582 = vmatpush1.bf16.msra.mxu1 %v4581_v5 }
 0x694   : > { %v3399_v54 = vadd.f32 %v7136_v22, %v3070_v32  ;;  %v3516_v4 = vrot.slane %v3515_v56, 4  ;;  %v3000_v20 = vmul.f32 %v6899_v53, %v2928_v61  ;;  %v2929_v16 = vmax.f32 %v2843_v34, 0.0  ;;  %v3328_v61 = vpop.permute.xlu0 %3327 }
 0x695   : > { %v3508_v55 = vmax.f32 %v3506_v24, %v3507_v14  ;;  %v3071_v57 = vadd.f32 %v6902_v15, %v2999_v44  ;;  %v2930_v17 = vmax.f32 %v2845_v36, 0.0  ;;  %v2848_v58 = vpop.f32.mrb[182].mxu0  ;;  %v7257_v59 = vsel %vm3645_vm3, %v3503_v23, %v3655_v13 }
 0x696   : > { %v3517_v18 = vmax.f32 %v3515_v56, %v3516_v4  ;;  %v3072_v39 = vadd.f32 %v6911_v45, %v3000_v20  ;;  %v3001_v21 = vmul.f32 %v6893_v42, %v2929_v16  ;;  %v2849_v43 = vadd.f32 %v2848_v58, %v6870_v38  ;;  %v2850_v22 = vpop.f32.mrb[183].mxu0 }
 0x697   : > { %v3509_v29 = vrot.slane %v3508_v55, 2  ;;  %v4585_v52 = vpack.c.bf16 %v3071_v57, %v7241_v1  ;;  %v3400_v11 = vadd.f32 %v7206_v47, %v3071_v57  ;;  %v3002_v40 = vmul.f32 %v6899_v53, %v2930_v17 }
 0x698   : > { %v3518_v9 = vrot.slane %v3517_v18, 2  ;;  %v3401_v63 = vadd.f32 %v7206_v47, %v3072_v39  ;;  %v2931_v60 = vmax.f32 %v2849_v43, 0.0  ;;  %v2851_v7 = vadd.f32 %v2850_v22, %v6874_v19 }
 0x699   : > { %v3510_v49 = vmax.f32 %v3508_v55, %v3509_v29  ;;  %v3073_v50 = vadd.f32 %v6902_v15, %v3001_v21  ;;  %v3074_v41 = vadd.f32 %v6911_v45, %v3002_v40  ;;  %v3522_v23 = vmax.f32 %v3398_v0, %v3400_v11  ;;  %v2854_v31 = vpop.f32.mrb[184].mxu0 }
 0x69a   : > { %v3519_v33 = vmax.f32 %v3517_v18, %v3518_v9  ;;  %v3003_v8 = vmul.f32 %v6893_v42, %v2931_v60  ;;  %v2932_v51 = vmax.f32 %v2851_v7, 0.0  ;;  %v3531_v5 = vmax.f32 %v3399_v54, %v3401_v63  ;;  %v2856_v25 = vpop.f32.mrb[185].mxu0 }
 0x69b   : > { %v3511_v27 = vrot.slane %v3510_v49, 1  ;;  %v3402_v47 = vadd.f32 %v3323_v3, %v3073_v50  ;;  %v3403_v28 = vadd.f32 %v3323_v3, %v3074_v41  ;;  %v2855_v12 = vadd.f32 %v2854_v31, %v6870_v38 }
 0x69c   : > { %v3520_v6 = vrot.slane %v3519_v33, 1  ;;  %v3004_v30 = vmul.f32 %v6899_v53, %v2932_v51  ;;  %v4583_v1 = vpack.c.bf16 %v3072_v39, %v3070_v32  ;;  %v2857_v24 = vadd.f32 %v2856_v25, %v6874_v19 }
 0x69d   : > { %v7273_v62 = vmax.f32 %v3510_v49, %v3511_v27  ;;  %v3523_v35 = vmax.f32 %v3522_v23, %v3402_v47  ;;  %v3532_v13 = vmax.f32 %v3531_v5, %v3403_v28  ;;  %v2933_v56 = vmax.f32 %v2855_v12, 0.0  ;;  %v2860_v34 = vpop.f32.mrb[186].mxu0 }
 0x69e   : > { %v3521_v46 = vmax.f32 %v3519_v33, %v3520_v6  ;;  %4584 = vmatprep.subr.bf16.mxu1 %v4583_v1  ;;  %v2934_v0 = vmax.f32 %v2857_v24, 0.0  ;;  %v3075_v14 = vadd.f32 %v6902_v15, %v3003_v8  ;;  %v3076_v44 = vadd.f32 %v6911_v45, %v3004_v30  ;;  %v2862_v36 = vpop.f32.mrb[187].mxu0  ;;  %v3343_v33 = vpop.permute.xlu1 %3342 }
 0x69f   : > { %v3005_v54 = vmul.f32 %v6893_v42, %v2933_v56  ;;  %4586 = vmatpush1.bf16.msra.mxu1 %v4585_v52  ;;  %v2861_v32 = vadd.f32 %v2860_v34, %v6870_v38  ;;  %v2863_v4 = vadd.f32 %v2862_v36, %v6874_v19  ;;  %v3644_v20 = vsel %vm3643_vm2, %v7191_v48, %v7154_v26 }
 0x6a0   : > { %v3006_v16 = vmul.f32 %v6899_v53, %v2934_v0  ;;  %v4589_v55 = vpack.c.bf16 %v3075_v14, %v3073_v50  ;;  %v3404_v57 = vadd.f32 %v3328_v61, %v3075_v14  ;;  %v3405_v17 = vadd.f32 %v3328_v61, %v3076_v44 }
 0x6a1   : > { %v7285_v58 = vadd.f32 %v6902_v15, %v3005_v54  ;;  %v2935_v18 = vmax.f32 %v2861_v32, 0.0  ;;  %v2936_v39 = vmax.f32 %v2863_v4, 0.0  ;;  %v2866_v21 = vpop.f32.mrb[188].mxu0  ;;  %v4587_v43 = vpack.c.bf16 %v3076_v44, %v3074_v41 }
 0x6a2   : > { %v3078_v22 = vadd.f32 %v6911_v45, %v3006_v16  ;;  %v3524_v29 = vmax.f32 %v3523_v35, %v3404_v57  ;;  %v3533_v52 = vmax.f32 %v3532_v13, %v3405_v17  ;;  %v2867_v11 = vadd.f32 %v2866_v21, %v6870_v38  ;;  %v2868_v40 = vpop.f32.mrb[189].mxu0  ;;  %v3348_v36 = vpop.permute.xlu1 %3347 }
 0x6a3   : > { %v3406_v26 = vadd.f32 %v7181_v2, %v7285_v58  ;;  %v3007_v48 = vmul.f32 %v6893_v42, %v2935_v18  ;;  %v3008_v9 = vmul.f32 %v6899_v53, %v2936_v39  ;;  %4588 = vmatprep.subr.bf16.mxu1 %v4587_v43  ;;  %v2869_v63 = vadd.f32 %v2868_v40, %v6874_v19  ;;  %v3577_v40 = vld [vmem:[%s7439_s6 + $0x98] sm:$0xff] }
 0x6a4   : > { %v3407_v60 = vadd.f32 %v7181_v2, %v3078_v22  ;;  %v3525_v7 = vrot.slane %v3524_v29, 4  ;;  %v3534_v3 = vrot.slane %v3533_v52, 4  ;;  %v2937_v49 = vmax.f32 %v2867_v11, 0.0  ;;  %4590 = vmatpush1.bf16.msra.mxu1 %v4589_v55  ;;  %v3574_v55 = vld [vmem:[%s7439_s6 + $0x80] sm:$0xff] }
 0x6a5   : > { %v3079_v50 = vadd.f32 %v6902_v15, %v3007_v48  ;;  %v3080_v41 = vadd.f32 %v6911_v45, %v3008_v9  ;;  %v2938_v23 = vmax.f32 %v2869_v63, 0.0  ;;  %v2872_v31 = vpop.f32.mrb[190].mxu0  ;;  %v3657_v8 = vsel %vm3647_vm4, %v3521_v46, %v7257_v59  ;;  %v3085_v9 = vld [vmem:[%s6985_s18] sm:$0xff] }
 0x6a6   : > { %v3526_v51 = vmax.f32 %v3524_v29, %v3525_v7  ;;  %v3535_v5 = vmax.f32 %v3533_v52, %v3534_v3  ;;  %v3009_v25 = vmul.f32 %v6893_v42, %v2937_v49  ;;  %v2873_v2 = vadd.f32 %v2872_v31, %v6870_v38  ;;  %v2874_v27 = vpop.f32.mrb[191].mxu0  ;;  %v3558_v52 = vld [vmem:[%s7439_s6] sm:$0xff]  ;;  %v3560_v49 = vld [vmem:[%s7439_s6 + $0x10] sm:$0xff] }
 0x6a7   : > { %v4593_v47 = vpack.c.bf16 %v3079_v50, %v7285_v58  ;;  %v3408_v28 = vadd.f32 %v7247_v37, %v3079_v50  ;;  %v3409_v12 = vadd.f32 %v7247_v37, %v3080_v41  ;;  %v3010_v6 = vmul.f32 %v6899_v53, %v2938_v23  ;;  %v3561_v50 = vld [vmem:[%s7439_s6 + $0x18] sm:$0xff]  ;;  %v3579_v23 = vld [vmem:[%s7439_s6 + $0xa8] sm:$0xff] }
 0x6a8   : > { %v3527_v30 = vrot.slane %v3526_v51, 2  ;;  %v3536_v1 = vrot.slane %v3535_v5, 2  ;;  %v2939_v24 = vmax.f32 %v2873_v2, 0.0  ;;  %v2875_v59 = vadd.f32 %v2874_v27, %v6874_v19  ;;  %v3562_v2 = vld [vmem:[%s7439_s6 + $0x20] sm:$0xff]  ;;  %v3563_v27 = vld [vmem:[%s7439_s6 + $0x28] sm:$0xff] }
 0x6a9   : > { %v3081_v35 = vadd.f32 %v6902_v15, %v3009_v25  ;;  %v3082_v13 = vadd.f32 %v6911_v45, %v3010_v6  ;;  %v3540_v56 = vmax.f32 %v3406_v26, %v3408_v28  ;;  %v3549_v38 = vmax.f32 %v3407_v60, %v3409_v12  ;;  %v3581_v28 = vld [vmem:[%s7439_s6 + $0xb8] sm:$0xff] }
 0x6aa   : > { %v3528_v61 = vmax.f32 %v3526_v51, %v3527_v30  ;;  %v3537_v34 = vmax.f32 %v3535_v5, %v3536_v1  ;;  %v3011_v46 = vmul.f32 %v6893_v42, %v2939_v24  ;;  %v2940_v0 = vmax.f32 %v2875_v59, 0.0  ;;  %v3575_v42 = vld [vmem:[%s7439_s6 + $0x88] sm:$0xff] }
 0x6ab   : > { %v3410_v14 = vadd.f32 %v3343_v33, %v3081_v35  ;;  %v3411_v37 = vadd.f32 %v3343_v33, %v3082_v13  ;;  %v4591_v44 = vpack.c.bf16 %v3080_v41, %v3078_v22  ;;  %v3646_v54 = vsel %vm3645_vm3, %v7233_v10, %v3644_v20  ;;  %v3578_v41 = vld [vmem:[%s7439_s6 + $0xa0] sm:$0xff] }
 0x6ac   : > { %v3529_v32 = vrot.slane %v3528_v61, 1  ;;  %v3538_v19 = vrot.slane %v3537_v34, 1  ;;  %v3012_v4 = vmul.f32 %v6899_v53, %v2940_v0  ;;  %v3083_v16 = vadd.f32 %v6902_v15, %v3011_v46 }
 0x6ad   : > { %v3541_v57 = vmax.f32 %v3540_v56, %v3410_v14  ;;  %v3550_v17 = vmax.f32 %v3549_v38, %v3411_v37  ;;  %4592 = vmatprep.subr.bf16.mxu1 %v4591_v44  ;;  %v3648_v10 = vsel %vm3647_vm4, %v7273_v62, %v3646_v54  ;;  %v4631_v39 = vpack.c.bf16 %v3575_v42, %v3574_v55  ;;  %v3559_v62 = vld [vmem:[%s7439_s6 + $0x8] sm:$0xff]  ;;  %v3582_v56 = vld [vmem:[%s7439_s6 + $0xc0] sm:$0xff]  ;;  %v3585_v54 = vld [vmem:[%s7439_s6 + $0xd8] sm:$0xff] }
 0x6ae   : > { %v3530_v20 = vmax.f32 %v3528_v61, %v3529_v32  ;;  %4594 = vmatpush1.bf16.msra.mxu1 %v4593_v47  ;;  %v3084_v53 = vadd.f32 %v6911_v45, %v3012_v4  ;;  %v4597_v15 = vpack.c.bf16 %v3083_v16, %v3081_v35  ;;  %v3412_v58 = vadd.f32 %v3348_v36, %v3083_v16  ;;  %v3576_v45 = vld [vmem:[%s7439_s6 + $0x90] sm:$0xff]  ;;  %v3583_v38 = vld [vmem:[%s7439_s6 + $0xc8] sm:$0xff]  ;;  %v3566_v37 = vld [vmem:[%s7439_s6 + $0x40] sm:$0xff] }
 0x6af   : > { %v3539_v18 = vmax.f32 %v3537_v34, %v3538_v19  ;;  %v4633_v63 = vpack.c.bf16 %v3559_v62, %v3558_v52  ;;  %v4635_v3 = vpack.c.bf16 %v3577_v40, %v3576_v45  ;;  %v4639_v25 = vpack.c.bf16 %v3579_v23, %v3578_v41  ;;  %v3580_v47 = vld [vmem:[%s7439_s6 + $0xb0] sm:$0xff]  ;;  %v3567_v44 = vld [vmem:[%s7439_s6 + $0x48] sm:$0xff]  ;;  %v3569_v16 = vld [vmem:[%s7439_s6 + $0x58] sm:$0xff] }
 0x6b0   : > { %v3413_v21 = vadd.f32 %v3348_v36, %v3084_v53  ;;  %v3542_v43 = vmax.f32 %v3541_v57, %v3412_v58  ;;  %v4595_v22 = vpack.c.bf16 %v3084_v53, %v3082_v13  ;;  %v3650_v29 = vsel %vm3649_vm5, %v3530_v20, %v3648_v10  ;;  %v3564_v35 = vld [vmem:[%s7439_s6 + $0x30] sm:$0xff]  ;;  %v3565_v13 = vld [vmem:[%s7439_s6 + $0x38] sm:$0xff]  ;;  %v3586_v55 = vld [vmem:[%s7439_s6 + $0xe0] sm:$0xff] }
 0x6b1   : > { %v3658_v11 = vsel %vm3649_vm5, %v3539_v18, %v3657_v8  ;;  %v4637_v8 = vpack.c.bf16 %v3561_v50, %v3560_v49  ;;  %v4641_v30 = vpack.c.bf16 %v3563_v27, %v3562_v2  ;;  %v4643_v59 = vpack.c.bf16 %v3581_v28, %v3580_v47  ;;  %v3584_v36 = vld [vmem:[%s7439_s6 + $0xd0] sm:$0xff]  ;;  %v3587_v42 = vld [vmem:[%s7439_s6 + $0xe8] sm:$0xff]  ;;  %v3570_v10 = vld [vmem:[%s7439_s6 + $0x60] sm:$0xff] }
 0x6b2   : > { %v3543_v26 = vrot.slane %v3542_v43, 4  ;;  %v3551_v48 = vmax.f32 %v3550_v17, %v3413_v21  ;;  %4596 = vmatprep.subr.bf16.mxu1 %v4595_v22  ;;  %v4645_v46 = vpack.c.bf16 %v3565_v13, %v3564_v35  ;;  %v4647_v14 = vpack.c.bf16 %v3583_v38, %v3582_v56  ;;  %v3568_v4 = vld [vmem:[%s7439_s6 + $0x50] sm:$0xff]  ;;  %v3571_v20 = vld [vmem:[%s7439_s6 + $0x68] sm:$0xff]  ;;  %v3573_v21 = vld [vmem:[%s7439_s6 + $0x78] sm:$0xff] }
 0x6b3   : > { %4598 = vmatpush1.bf16.msra.mxu1 %v4597_v15  ;;  %v4649_v32 = vpack.c.bf16 %v3567_v44, %v3566_v37  ;;  %v4651_v19 = vpack.c.bf16 %v3585_v54, %v3584_v36  ;;  %v4653_v57 = vpack.c.bf16 %v3569_v16, %v3568_v4  ;;  %v4655_v17 = vpack.c.bf16 %v3587_v42, %v3586_v55  ;;  %v3588_v53 = vld [vmem:[%s7439_s6 + $0xf0] sm:$0xff]  ;;  %v3589_v15 = vld [vmem:[%s7439_s6 + $0xf8] sm:$0xff] }
 0x6b4   : > { %v3544_v60 = vmax.f32 %v3542_v43, %v3543_v26  ;;  %v3552_v7 = vrot.slane %v3551_v48, 4  ;;  %4632 = vmatprep.subr.bf16.mxu1 %v4631_v39  ;;  %v4657_v58 = vpack.c.bf16 %v3571_v20, %v3570_v10  ;;  %v4659_v18 = vpack.c.bf16 %v3589_v15, %v3588_v53  ;;  %v3572_v39 = vld [vmem:[%s7439_s6 + $0x70] sm:$0xff] }
 0x6b5   : > { %v4661_v43 = vpack.c.bf16 %v3573_v21, %v3572_v39 }
 0x6b6   : > { %v3545_v31 = vrot.slane %v3544_v60, 2  ;;  %v3553_v33 = vmax.f32 %v3551_v48, %v3552_v7  ;;  %3152 = vmatmul.mubr.f32.vlgmr.msra.gmra.mrb[192].mxu1 %v3085_v9  ;;  %v4125_v48 = vld [vmem:[%s7440_s7] ss:$0 sm:$0xff] }
 0x6b7   : > { %4634 = vmatpush3.bf16.msra.mxu1 %v4633_v63 }
 0x6b8   : > { %v3546_v51 = vmax.f32 %v3544_v60, %v3545_v31  ;;  %v3554_v5 = vrot.slane %v3553_v33, 2  ;;  %4636 = vmatprep.subr.bf16.mxu1 %v4635_v3 }
 0x6ba   : > { %v3547_v12 = vrot.slane %v3546_v51, 1  ;;  %v3555_v6 = vmax.f32 %v3553_v33, %v3554_v5 }
 0x6bb   : > { %4638 = vmatpush3.bf16.msra.mxu1 %v4637_v8 }
 0x6bc   : > { %v3548_v1 = vmax.f32 %v3546_v51, %v3547_v12  ;;  %v3556_v24 = vrot.slane %v3555_v6, 1  ;;  %4640 = vmatprep.subr.bf16.mxu1 %v4639_v25 }
 0x6be   : > { %v3557_v61 = vmax.f32 %v3555_v6, %v3556_v24  ;;  %v3652_v34 = vsel %vm3651_vm6, %v3548_v1, %v3650_v29 }
 0x6bf   : > { %4642 = vmatpush3.bf16.msra.mxu1 %v4641_v30 }
 0x6c0   : > { %v3659_v0 = vsel %vm3651_vm6, %v3557_v61, %v3658_v11  ;;  %4644 = vmatprep.subr.bf16.mxu1 %v4643_v59 }
 0x6c1   : > { %3726 = vmatprep.mubr.f32.mxu0 %v3659_v0 }
 0x6c2   : > { %3727 = vmatmul.mubr.f32.vlgmr.msra.gmra.mrb[192].mxu0 %v3652_v34 }
 0x6c3   : > { %4646 = vmatpush3.bf16.msra.mxu1 %v4645_v46 }
 0x6c4   : > { %4648 = vmatprep.subr.bf16.mxu1 %v4647_v14 }
 0x6c7   : > { %4650 = vmatpush3.bf16.msra.mxu1 %v4649_v32 }
 0x6c8   : > { %4652 = vmatprep.subr.bf16.mxu1 %v4651_v19 }
 0x6cb   : > { %4654 = vmatpush3.bf16.msra.mxu1 %v4653_v57 }
 0x6cc   : > { %4656 = vmatprep.subr.bf16.mxu1 %v4655_v17 }
 0x6cf   : > { %4658 = vmatpush3.bf16.msra.mxu1 %v4657_v58 }
 0x6d0   : > { %4660 = vmatprep.subr.bf16.mxu1 %v4659_v18 }
 0x6d3   : > { %4662 = vmatpush3.bf16.msra.mxu1 %v4661_v43 }
 0x789   : > { %v3153_v22 = vpop.f32.mrb[192].mxu1 }
 0x78a   : > { %v3155_v29 = vpop.f32.mrb[193].mxu1 }
 0x78b   : > { %3796 = vmatprep.mubr.f32.mxu1 %v3155_v29 }
 0x78c   : > { %3797 = vmatmul.mubr.f32.vlgmr.msra.gmra.mrb[194].mxu1 %v3153_v22 }
 0x795   : > { %v4161_v52 = vpop.f32.mrb[192].mxu0 }
 0x796   : > { %v4162_v62 = vpop.f32.mrb[193].mxu0 }
 0x797   : > { %v4163_v11 = vadd.f32 %v4162_v62, %v4161_v52 }
 0x85f   : > { %v4196_v45 = vpop.f32.mrb[194].mxu1 }
 0x860   : > { %v4197_v40 = vpop.f32.mrb[195].mxu1 }
 0x861   : > { %v4198_v26 = vadd.f32 %v4197_v40, %v4196_v45 }
 0x863   : > { %v3799_v9 = vadd.f32 %v4198_v26, %v4163_v11 }
 0x865   : > { %v3809_v63 = vadd.f32 %v4125_v48, %v3799_v9 }
 0x867   : > { %3810 = vmax.xlane.f32.xlu0 %v3809_v63 }
 0x8f4   : > { %v3811_v60 = vpop.xlane.xlu0 %3810 }
 0x8f5   : > { %v3812_v7 = vsub.f32 %v3809_v63, %v3811_v60 }
 0x8f7   : > { %v3813_v3 = vmul.f32 1.442695, %v3812_v7 }
 0x8f9   : > { %4721 = vpow2.f32 %v3813_v3 }
 0x903   : > { %v4722_v49 = vpop.eup %4721 }
 0x904   : > { %3815 = vadd.xlane.f32.xlu1 %v4722_v49 }
 0x991   : > { %v3816_v50 = vpop.xlane.xlu1 %3815 }
 0x992   : > { %4723 = vlog2.f32 %v3816_v50 }
 0x99c   : > { %v4724_v41 = vpop.eup %4723 }
 0x99d   : > { %v3818_v23 = vmul.f32 0.6931472, %v4724_v41 }
 0x99f   : > { %v3819_v31 = vadd.f32 %v3818_v23, %v3811_v60 }
 0x9a1   : > { %v3820_v33 = vsub.f32 %v3809_v63, %v3819_v31 }
 0x9a3   : > { %3821 = vst [vmem:[%s478_s20] sm:$0xff] %v3820_v33 }
 0x9a4 PF: > { %s7515_s16 = sld [smem:[#allocation9_spill]]  ;;  %s7516_s15 = sld [smem:[#allocation8_spill]] }
 0x9a5   : > { %s7517_s21 = sld [smem:[#allocation10_spill]]  ;;  %s7518_s13 = smov %s4866_s14 }
 0x9aa   : > { %p21_p2 = scmp.ge.s32.totalorder %s7515_s16, 4   ;;  %s7519_s14 = smov %s7516_s15 }
 0x9ab   : > { %s7520_s15 = smov %s7517_s21 }
 0x9ac   :  { %23 = sbr.rel (!%p21_p2) target bundleno = 6 (0x6), region = 117 }
 0x9b3   :  { %3841 = vsyncpa [#allocation3], 1 }
 0x9b4   :  { %3843 = vsyncpa [#allocation3 + $0x1], 1 }
 0x9b5   :  { %3844 = vsyncpa [#allocation4], 1 }
 0x9b6   :  { %3846 = vsyncpa [#allocation4 + $0x1], 1 }

</bundles_post_ra>
